<compile_context>
chip_gen: v5e
topology: v5e:2x2
jax: 0.10.0
libtpu: 0.0.40
codegen_flags: <defaults>
</compile_context>

<pallas_src>
import math

import jax
import jax.numpy as jnp
from jax import lax
from jax.experimental import pallas as pl
from jax.experimental.pallas import tpu as pltpu


def _round_up(x, k):
    return (x + k - 1) // k * k


# ---------------------------------------------------------------------------
# Constant spatial matrices (reduce / scatter / transpose) for flattened (m*m)
# ---------------------------------------------------------------------------

def _spatial_mats(m):
    mm = m * m
    idx = jnp.arange(mm)
    i = idx // m
    j = idx % m
    R = jnp.zeros((mm, 3 * m), jnp.float32)
    R = R.at[jnp.arange(m) * (m + 1), jnp.arange(m)].set(1.0)   # diagonal picks
    R = R.at[idx, m + i].set(1.0)                               # row sums
    R = R.at[idx, 2 * m + j].set(1.0)                           # col sums
    A = R.T                                                     # scatter back
    P = jnp.zeros((mm, mm), jnp.float32).at[idx, j * m + i].set(1.0)
    return R, A, P


# ---------------------------------------------------------------------------
# Fold the 15-basis 2->2 coefficients into grouped matrices (scales included)
# feats row blocks: [diag | row-sum | col-sum | trace-bcast | total-bcast]
# ---------------------------------------------------------------------------

def _prep_eq2to2(coeffs, m):
    fm = float(m)
    ct = [coeffs[:, :, b].T for b in range(15)]                 # each (S, Din)
    z = jnp.zeros_like(ct[0])
    Cd = jnp.concatenate([ct[0], ct[2] / fm, ct[3] / fm,
                          ct[1] / fm, ct[4] / (fm * fm)], axis=1)       # on-diag
    Cr = jnp.concatenate([ct[11], ct[6] / fm, ct[5] / fm,
                          ct[13] / fm, ct[14] / (fm * fm)], axis=1)     # row-bcast
    Cc = jnp.concatenate([ct[12], ct[8] / fm, ct[7] / fm, z, z], axis=1)  # col-bcast
    C_all = jnp.concatenate([Cd, Cr, Cc], axis=0)               # (3S, 5Din)
    CiCt = jnp.concatenate([ct[9], ct[10]], axis=0)             # (2S, Din) identity|transpose
    return C_all, CiCt


# ---------------------------------------------------------------------------
# Fused Pallas kernel: B graphs per grid step, whole forward pass on-chip
# ---------------------------------------------------------------------------

def _make_kernel(n_layers, m, B):
    mm = m * m
    BDN = (((2,), (1,)), ((0,), (0,)))   # batched 'bij,bjk->bik' dims

    def kernel(x_ref, R_ref, A_ref, P_ref, *rest):
        layer_refs = rest[:2 * n_layers]
        (c21_ref, vb_ref, w1_ref, b1_ref, w2_ref, b2_ref,
         w3_ref, b3_ref, out_ref) = rest[2 * n_layers:]

        R = R_ref[...]            # (mm, 3m)  [diag | row-sum | col-sum] reducer
        A = A_ref[...]            # (3m, mm)  = R^T, scatter-back
        P = P_ref[...]            # (mm, mm)  spatial-transpose permutation
        x = x_ref[0]              # (B, Din, mm)  one block of graphs

        # ------------------- equivariant 2 -> 2 layers (bias-free) -----------
        for l in range(n_layers):
            C_all = layer_refs[2 * l][...]       # (3S, 5*Din)
            CiCt = layer_refs[2 * l + 1][...]    # (2S, Din)
            Din = x.shape[1]
            S = C_all.shape[0] // 3

            # structural reduce for the whole block in one 2-D GEMM
            red = jnp.dot(x.reshape(B * Din, mm), R,
                          preferred_element_type=jnp.float32).reshape(B, Din, 3 * m)
            diag = red[..., :m]
            srow = red[..., m:2 * m]
            scol = red[..., 2 * m:]
            tr = jnp.sum(diag, axis=-1, keepdims=True)
            tot = jnp.sum(srow, axis=-1, keepdims=True)
            feats = jnp.concatenate(
                [diag, srow, scol,
                 jnp.broadcast_to(tr, (B, Din, m)),
                 jnp.broadcast_to(tot, (B, Din, m))], axis=1)           # (B, 5Din, m)

            # grouped basis contraction (batched matmul, coeff bcast over B)
            Cb = jnp.broadcast_to(C_all, (B,) + C_all.shape)
            on_cat = lax.dot_general(Cb, feats, BDN,
                                     preferred_element_type=jnp.float32)  # (B, 3S, m)

            # scatter back to the (i, j) grid: three 2-D GEMMs with M = B*S
            od = on_cat[:, :S].reshape(B * S, m)
            orw = on_cat[:, S:2 * S].reshape(B * S, m)
            oc = on_cat[:, 2 * S:].reshape(B * S, m)
            rest_sc = (jnp.dot(od, A[:m], preferred_element_type=jnp.float32)
                       + jnp.dot(orw, A[m:2 * m], preferred_element_type=jnp.float32)
                       + jnp.dot(oc, A[2 * m:], preferred_element_type=jnp.float32))

            # identity / transpose bases: channel mix (batched) + P GEMM
            Mb = jnp.broadcast_to(CiCt, (B,) + CiCt.shape)
            both = lax.dot_general(Mb, x, BDN,
                                   preferred_element_type=jnp.float32)  # (B, 2S, mm)
            ident = both[:, :S].reshape(B * S, mm)
            trans = jnp.dot(both[:, S:].reshape(B * S, mm), P,
                            preferred_element_type=jnp.float32)

            x = (rest_sc + ident + trans).reshape(B, S, mm)

        # ------------- 2 -> 1 layer with the node-sum folded in -------------
        D = x.shape[1]
        red = jnp.dot(x.reshape(B * D, mm), R,
                      preferred_element_type=jnp.float32).reshape(B, D, 3 * m)
        tr2 = jnp.sum(red[..., :m], axis=-1)            # (B, D)  per-channel trace
        tot2 = jnp.sum(red[..., m:2 * m], axis=-1)      # (B, D)  per-channel total sum
        c21 = c21_ref[...]                              # (2D, 1024) [trace rows | total rows]
        v = (jnp.dot(tr2, c21[:D], preferred_element_type=jnp.float32)
             + jnp.dot(tot2, c21[D:], preferred_element_type=jnp.float32)
             + vb_ref[...])                             # (B, 1024), all biases folded here

        # ----------------------------- MLP head ------------------------------
        h = jnp.maximum(
            jnp.dot(v, w1_ref[...], preferred_element_type=jnp.float32) + b1_ref[...], 0.0)
        h = jnp.maximum(
            jnp.dot(h, w2_ref[...], preferred_element_type=jnp.float32) + b2_ref[...], 0.0)
        logits = jnp.dot(h, w3_ref[...], preferred_element_type=jnp.float32) + b3_ref[...]
        mx = jnp.max(logits, axis=-1, keepdims=True)
        lse = jnp.log(jnp.sum(jnp.exp(logits - mx), axis=-1, keepdims=True))
        out_ref[0] = logits - mx - lse                  # lane-dense (B, 128) slab

    return kernel


# ---------------------------------------------------------------------------
# Wrapper: parameter folding + pallas_call
# ---------------------------------------------------------------------------

@jax.jit
def forward(params, x):
    N, D0, m, _ = x.shape
    mm = m * m
    fm = float(m)
    CP = 128                                   # padded logit lanes (lane-dense store)
    n_layers = len(params["eq2to2"])

    # graph-block sizing: B graphs per grid step (M dim of every head matmul)
    D0p = _round_up(D0, 8)
    B = min(128, _round_up(N, 8))
    N_pad = _round_up(N, B)
    nb = N_pad // B

    # pack input: pad graphs & channels, lane-flatten spatial dims
    xp = jnp.pad(x.astype(jnp.float32),
                 ((0, N_pad - N), (0, D0p - D0), (0, 0), (0, 0)))
    xp = xp.reshape(nb, B, D0p, mm)

    R3, A3, P = _spatial_mats(m)

    # per-layer folded coefficient matrices (first layer padded to D0p channels)
    layer_ops = []
    for idx, (coeffs, _db, _ab) in enumerate(params["eq2to2"]):
        if idx == 0 and D0p != D0:
            coeffs = jnp.pad(coeffs, ((0, D0p - D0), (0, 0), (0, 0)))
        C_all, CiCt = _prep_eq2to2(coeffs, m)
        layer_ops += [C_all, CiCt]

    # 2->1 + node-sum folded: only trace / total-sum invariants survive
    c21 = params["c21"]                                  # (D_last, 1024, 5)
    w_tr = c21[:, :, 0] + c21[:, :, 1]
    w_tot = (c21[:, :, 2] + c21[:, :, 3] + c21[:, :, 4]) / fm
    C21r = jnp.concatenate([w_tr, w_tot], axis=0)        # (2*D_last, 1024)

    # all equivariant biases (and m*b21) propagate to a constant 1024-vector
    T = jnp.zeros((1, D0, m, m), jnp.float32)
    for coeffs, db_, ab_ in params["eq2to2"]:
        T = _ref_layer_2_to_2(T, coeffs, db_, ab_)
    v_bias = jnp.sum(_ref_layer_2_to_1(T, params["c21"], params["b21"]), axis=2)  # (1, 1024)

    # head weights; classes padded to a 128-wide lane-dense output tile
    w1, b1 = params["w1"], params["b1"].reshape(1, -1)
    w2, b2 = params["w2"], params["b2"].reshape(1, -1)
    w3, b3 = params["w3"], params["b3"]
    C = w3.shape[1]
    w3p = jnp.zeros((w3.shape[0], CP), jnp.float32).at[:, :C].set(w3)
    b3p = jnp.full((1, CP), -1e9, jnp.float32).at[0, :C].set(b3)

    operands = [xp, R3, A3, P] + layer_ops + [C21r, v_bias, w1, b1, w2, b2, w3p, b3p]

    in_specs = [pl.BlockSpec((1, B, D0p, mm), lambda i: (i, 0, 0, 0))]
    for op in operands[1:]:
        nd = op.ndim
        in_specs.append(pl.BlockSpec(op.shape, lambda i, nd=nd: (0,) * nd))

    out = pl.pallas_call(
        _make_kernel(n_layers, m, B),
        out_shape=jax.ShapeDtypeStruct((nb, B, CP), jnp.float32),
        grid=(nb,),
        in_specs=in_specs,
        out_specs=pl.BlockSpec((1, B, CP), lambda i: (i, 0, 0)),
        compiler_params=pltpu.CompilerParams(
            dimension_semantics=("parallel",),
            vmem_limit_bytes=48 * 1024 * 1024),
    )(*operands)

    return out.reshape(N_pad, CP)[:N, :C]


# ---------------------------------------------------------------------------
# Pure-JAX reference (mirrors the PyTorch module exactly) for verification
# ---------------------------------------------------------------------------

def _ref_ops_2_to_2(x, m):
    fm = float(m)
    diag = jnp.diagonal(x, axis1=2, axis2=3)
    sdiag = jnp.sum(diag, axis=2, keepdims=True)
    sr = jnp.sum(x, axis=3)
    sc = jnp.sum(x, axis=2)
    sa = jnp.sum(sr, axis=2)
    eye = jnp.eye(m, dtype=x.dtype)

    def de(v):
        return v[..., :, None] * eye

    ops = [
        de(diag),
        de(jnp.broadcast_to(sdiag, diag.shape)) / fm,
        de(sr) / fm,
        de(sc) / fm,
        de(jnp.broadcast_to(sa[..., None], diag.shape)) / (fm * fm),
        jnp.broadcast_to(sc[..., :, None], x.shape) / fm,
        jnp.broadcast_to(sr[..., :, None], x.shape) / fm,
        jnp.broadcast_to(sc[..., None, :], x.shape) / fm,
        jnp.broadcast_to(sr[..., None, :], x.shape) / fm,
        x,
        jnp.swapaxes(x, 2, 3),
        jnp.broadcast_to(diag[..., :, None], x.shape),
        jnp.broadcast_to(diag[..., None, :], x.shape),
        jnp.broadcast_to(sdiag[..., None], x.shape) / fm,
        jnp.broadcast_to(sa[..., None, None], x.shape) / (fm * fm),
    ]
    return jnp.stack(ops, axis=2)


def _ref_layer_2_to_2(x, coeffs, diag_bias, all_bias):
    m = x.shape[-1]
    ops = _ref_ops_2_to_2(x, m)
    out = jnp.einsum('dsb,ndbij->nsij', coeffs, ops)
    eye = jnp.eye(m, dtype=x.dtype)
    return out + all_bias + eye[None, None] * diag_bias


def _ref_layer_2_to_1(x, coeffs, bias):
    m = x.shape[-1]
    fm = float(m)
    diag = jnp.diagonal(x, axis1=2, axis2=3)
    sdiag = jnp.sum(diag, axis=2, keepdims=True)
    sr = jnp.sum(x, axis=3)
    sc = jnp.sum(x, axis=2)
    sa = jnp.sum(x, axis=(2, 3))
    ops = jnp.stack([
        diag,
        jnp.broadcast_to(sdiag, diag.shape) / fm,
        sr / fm,
        sc / fm,
        jnp.broadcast_to(sa[..., None], diag.shape) / (fm * fm),
    ], axis=2)
    return jnp.einsum('dsb,ndbi->nsi', coeffs, ops) + bias


def ref_forward(params, x):
    out = x
    for coeffs, diag_bias, all_bias in params["eq2to2"]:
        out = _ref_layer_2_to_2(out, coeffs, diag_bias, all_bias)
    out = _ref_layer_2_to_1(out, params["c21"], params["b21"])
    v = jnp.sum(out, axis=2)
    h = jax.nn.relu(v @ params["w1"] + params["b1"])
    h = jax.nn.relu(h @ params["w2"] + params["b2"])
    logits = h @ params["w3"] + params["b3"]
    return jax.nn.log_softmax(logits, axis=-1)


# ---------------------------------------------------------------------------
# Deterministic synthetic parameters
# ---------------------------------------------------------------------------

def init_params(key, in_depth, architecture, num_classes):
    n_eq = len(architecture)
    keys = jax.random.split(key, 3 * n_eq + 8)
    dims = [in_depth] + list(architecture)
    eq2to2 = []
    for i in range(n_eq):
        d_in, d_out = dims[i], dims[i + 1]
        coeffs = jax.random.normal(keys[3 * i], (d_in, d_out, 15), jnp.float32) \
            * (math.sqrt(2.0) / (d_in + d_out))
        diag_bias = 0.1 * jax.random.normal(keys[3 * i + 1], (1, d_out, 1, 1), jnp.float32)
        all_bias = 0.1 * jax.random.normal(keys[3 * i + 2], (1, d_out, 1, 1), jnp.float32)
        eq2to2.append((coeffs, diag_bias, all_bias))
    d_last = dims[-1]
    c21 = jax.random.normal(keys[-8], (d_last, 1024, 5), jnp.float32) \
        * (math.sqrt(2.0) / (d_last + 1024))
    b21 = 0.1 * jax.random.normal(keys[-7], (1, 1024, 1), jnp.float32)
    w1 = jax.random.normal(keys[-6], (1024, 512), jnp.float32) / math.sqrt(1024.0)
    b1 = 0.1 * jax.random.normal(keys[-5], (512,), jnp.float32)
    w2 = jax.random.normal(keys[-4], (512, 256), jnp.float32) / math.sqrt(512.0)
    b2 = 0.1 * jax.random.normal(keys[-3], (256,), jnp.float32)
    w3 = jax.random.normal(keys[-2], (256, num_classes), jnp.float32) / math.sqrt(256.0)
    b3 = 0.1 * jax.random.normal(keys[-1], (num_classes,), jnp.float32)
    return {"eq2to2": eq2to2, "c21": c21, "b21": b21,
            "w1": w1, "b1": b1, "w2": w2, "b2": b2, "w3": w3, "b3": b3}


if __name__ == "__main__":
    N, D_in, m = 2, 4, 8             # batch, input feature depth, graph nodes
    architecture = [8, 16]           # config.architecture
    num_classes = 3                  # config.num_classes

    key = jax.random.PRNGKey(0)
    kx, kp = jax.random.split(key)
    x = jax.random.normal(kx, (N, D_in, m, m), jnp.float32)
    params = init_params(kp, D_in, architecture, num_classes)

    out = jax.block_until_ready(forward(params, x))
    ref = jax.block_until_ready(ref_forward(params, x))

    assert out.shape == (N, num_classes)
    assert bool(jnp.all(jnp.isfinite(out)))
    # log_softmax rows exponentiate to 1
    assert bool(jnp.allclose(jnp.sum(jnp.exp(out), axis=-1), 1.0, atol=1e-3))
    # Both sides use default MXU matmul precision (bf16-class passes on f32).
    assert bool(jnp.allclose(out, ref, rtol=5e-2, atol=5e-2)), (out, ref)
    print("KERNEL_OK")
</pallas_src>

<mosaic_0001>
module attributes {stable_mosaic.version = 11 : i64} {
  func.func @kernel(%arg0: i32, %arg1: memref<1x8x8x64xf32, #tpu.memory_space<vmem>>, %arg2: memref<64x24xf32, #tpu.memory_space<vmem>>, %arg3: memref<24x64xf32, #tpu.memory_space<vmem>>, %arg4: memref<64x64xf32, #tpu.memory_space<vmem>>, %arg5: memref<24x40xf32, #tpu.memory_space<vmem>>, %arg6: memref<16x8xf32, #tpu.memory_space<vmem>>, %arg7: memref<48x40xf32, #tpu.memory_space<vmem>>, %arg8: memref<32x8xf32, #tpu.memory_space<vmem>>, %arg9: memref<32x1024xf32, #tpu.memory_space<vmem>>, %arg10: memref<1x1024xf32, #tpu.memory_space<vmem>>, %arg11: memref<1024x512xf32, #tpu.memory_space<vmem>>, %arg12: memref<1x512xf32, #tpu.memory_space<vmem>>, %arg13: memref<512x256xf32, #tpu.memory_space<vmem>>, %arg14: memref<1x256xf32, #tpu.memory_space<vmem>>, %arg15: memref<256x128xf32, #tpu.memory_space<vmem>>, %arg16: memref<1x128xf32, #tpu.memory_space<vmem>>, %arg17: memref<1x8x128xf32, #tpu.memory_space<vmem>>) attributes {dimension_semantics = [#tpu.dimension_semantics<parallel>], iteration_bounds = array<i64: 1>, scalar_prefetch = 0 : i64, scratch_operands = 0 : i64, tpu.core_type = #tpu.core_type<tc>, window_params = [{transform_indices = @transform_0, window_bounds = array<i64: 1, 8, 8, 64>}, {pipeline_mode = #tpu.pipeline_mode<synchronous>, transform_indices = @transform_1, window_bounds = array<i64: 64, 24>}, {pipeline_mode = #tpu.pipeline_mode<synchronous>, transform_indices = @transform_2, window_bounds = array<i64: 24, 64>}, {pipeline_mode = #tpu.pipeline_mode<synchronous>, transform_indices = @transform_3, window_bounds = array<i64: 64, 64>}, {pipeline_mode = #tpu.pipeline_mode<synchronous>, transform_indices = @transform_4, window_bounds = array<i64: 24, 40>}, {pipeline_mode = #tpu.pipeline_mode<synchronous>, transform_indices = @transform_5, window_bounds = array<i64: 16, 8>}, {pipeline_mode = #tpu.pipeline_mode<synchronous>, transform_indices = @transform_6, window_bounds = array<i64: 48, 40>}, {pipeline_mode = #tpu.pipeline_mode<synchronous>, transform_indices = @transform_7, window_bounds = array<i64: 32, 8>}, {pipeline_mode = #tpu.pipeline_mode<synchronous>, transform_indices = @transform_8, window_bounds = array<i64: 32, 1024>}, {pipeline_mode = #tpu.pipeline_mode<synchronous>, transform_indices = @transform_9, window_bounds = array<i64: 1, 1024>}, {pipeline_mode = #tpu.pipeline_mode<synchronous>, transform_indices = @transform_10, window_bounds = array<i64: 1024, 512>}, {pipeline_mode = #tpu.pipeline_mode<synchronous>, transform_indices = @transform_11, window_bounds = array<i64: 1, 512>}, {pipeline_mode = #tpu.pipeline_mode<synchronous>, transform_indices = @transform_12, window_bounds = array<i64: 512, 256>}, {pipeline_mode = #tpu.pipeline_mode<synchronous>, transform_indices = @transform_13, window_bounds = array<i64: 1, 256>}, {pipeline_mode = #tpu.pipeline_mode<synchronous>, transform_indices = @transform_14, window_bounds = array<i64: 256, 128>}, {pipeline_mode = #tpu.pipeline_mode<synchronous>, transform_indices = @transform_15, window_bounds = array<i64: 1, 128>}, {transform_indices = @transform_16, window_bounds = array<i64: 1, 8, 128>}]} {
    %c0 = arith.constant 0 : index
    %c0_0 = arith.constant 0 : index
    %0 = vector.load %arg2[%c0, %c0_0] : memref<64x24xf32, #tpu.memory_space<vmem>>, vector<64x24xf32>
    %c0_1 = arith.constant 0 : index
    %c0_2 = arith.constant 0 : index
    %1 = vector.load %arg3[%c0_1, %c0_2] : memref<24x64xf32, #tpu.memory_space<vmem>>, vector<24x64xf32>
    %c0_3 = arith.constant 0 : index
    %c0_4 = arith.constant 0 : index
    %2 = vector.load %arg4[%c0_3, %c0_4] : memref<64x64xf32, #tpu.memory_space<vmem>>, vector<64x64xf32>
    %c0_5 = arith.constant 0 : index
    %c0_6 = arith.constant 0 : index
    %c0_7 = arith.constant 0 : index
    %c0_8 = arith.constant 0 : index
    %3 = vector.load %arg1[%c0_5, %c0_6, %c0_7, %c0_8] : memref<1x8x8x64xf32, #tpu.memory_space<vmem>>, vector<1x8x8x64xf32>
    %4 = vector.shape_cast %3 : vector<1x8x8x64xf32> to vector<8x8x64xf32>
    %c0_9 = arith.constant 0 : index
    %c0_10 = arith.constant 0 : index
    %5 = vector.load %arg5[%c0_9, %c0_10] : memref<24x40xf32, #tpu.memory_space<vmem>>, vector<24x40xf32>
    %c0_11 = arith.constant 0 : index
    %c0_12 = arith.constant 0 : index
    %6 = vector.load %arg6[%c0_11, %c0_12] : memref<16x8xf32, #tpu.memory_space<vmem>>, vector<16x8xf32>
    %7 = vector.shape_cast %4 : vector<8x8x64xf32> to vector<64x64xf32>
    %cst = arith.constant dense<0.000000e+00> : vector<64x24xf32>
    %8 = tpu.matmul %7, %0, %cst {dimension_numbers = #tpu.dot_dimension_numbers<[1], [0], [0], [1], [0, 0, 1, 1], [], []>} : vector<64x64xf32>, vector<64x24xf32>, vector<64x24xf32> -> vector<64x24xf32>
    %9 = vector.shape_cast %8 : vector<64x24xf32> to vector<8x8x24xf32>
    %10 = vector.extract_strided_slice %9 {offsets = [0, 0, 0], sizes = [8, 8, 8], strides = [1, 1, 1]} : vector<8x8x24xf32> to vector<8x8x8xf32>
    %11 = vector.extract_strided_slice %9 {offsets = [0, 0, 8], sizes = [8, 8, 8], strides = [1, 1, 1]} : vector<8x8x24xf32> to vector<8x8x8xf32>
    %12 = vector.extract_strided_slice %9 {offsets = [0, 0, 16], sizes = [8, 8, 8], strides = [1, 1, 1]} : vector<8x8x24xf32> to vector<8x8x8xf32>
    %cst_13 = arith.constant dense<0.000000e+00> : vector<8x8xf32>
    %13 = vector.multi_reduction <add>, %10, %cst_13 [2] : vector<8x8x8xf32> to vector<8x8xf32>
    %14 = vector.shape_cast %13 : vector<8x8xf32> to vector<8x8x1xf32>
    %cst_14 = arith.constant dense<0.000000e+00> : vector<8x8xf32>
    %15 = vector.multi_reduction <add>, %11, %cst_14 [2] : vector<8x8x8xf32> to vector<8x8xf32>
    %16 = vector.shape_cast %15 : vector<8x8xf32> to vector<8x8x1xf32>
    %17 = vector.shape_cast %14 : vector<8x8x1xf32> to vector<8x8x1xf32>
    %18 = vector.broadcast %17 : vector<8x8x1xf32> to vector<8x8x8xf32>
    %19 = vector.shape_cast %16 : vector<8x8x1xf32> to vector<8x8x1xf32>
    %20 = vector.broadcast %19 : vector<8x8x1xf32> to vector<8x8x8xf32>
    %21 = tpu.concatenate %10, %11, %12, %18, %20 in 1 : vector<8x8x8xf32>, vector<8x8x8xf32>, vector<8x8x8xf32>, vector<8x8x8xf32>, vector<8x8x8xf32> -> vector<8x40x8xf32>
    %22 = vector.shape_cast %5 : vector<24x40xf32> to vector<1x24x40xf32>
    %23 = vector.broadcast %22 : vector<1x24x40xf32> to vector<8x24x40xf32>
    %cst_15 = arith.constant dense<0.000000e+00> : vector<8x24x8xf32>
    %24 = tpu.matmul %23, %21, %cst_15 {dimension_numbers = #tpu.dot_dimension_numbers<[2], [1], [1], [2], [0, 0, 0, 1, 1, 2], [0], [0]>} : vector<8x24x40xf32>, vector<8x40x8xf32>, vector<8x24x8xf32> -> vector<8x24x8xf32>
    %25 = vector.extract_strided_slice %24 {offsets = [0, 0, 0], sizes = [8, 8, 8], strides = [1, 1, 1]} : vector<8x24x8xf32> to vector<8x8x8xf32>
    %26 = vector.shape_cast %25 : vector<8x8x8xf32> to vector<64x8xf32>
    %27 = vector.extract_strided_slice %24 {offsets = [0, 8, 0], sizes = [8, 8, 8], strides = [1, 1, 1]} : vector<8x24x8xf32> to vector<8x8x8xf32>
    %28 = vector.shape_cast %27 : vector<8x8x8xf32> to vector<64x8xf32>
    %29 = vector.extract_strided_slice %24 {offsets = [0, 16, 0], sizes = [8, 8, 8], strides = [1, 1, 1]} : vector<8x24x8xf32> to vector<8x8x8xf32>
    %30 = vector.shape_cast %29 : vector<8x8x8xf32> to vector<64x8xf32>
    %31 = vector.extract_strided_slice %1 {offsets = [0, 0], sizes = [8, 64], strides = [1, 1]} : vector<24x64xf32> to vector<8x64xf32>
    %cst_16 = arith.constant dense<0.000000e+00> : vector<64x64xf32>
    %32 = tpu.matmul %26, %31, %cst_16 {dimension_numbers = #tpu.dot_dimension_numbers<[1], [0], [0], [1], [0, 0, 1, 1], [], []>} : vector<64x8xf32>, vector<8x64xf32>, vector<64x64xf32> -> vector<64x64xf32>
    %33 = vector.extract_strided_slice %1 {offsets = [8, 0], sizes = [8, 64], strides = [1, 1]} : vector<24x64xf32> to vector<8x64xf32>
    %cst_17 = arith.constant dense<0.000000e+00> : vector<64x64xf32>
    %34 = tpu.matmul %28, %33, %cst_17 {dimension_numbers = #tpu.dot_dimension_numbers<[1], [0], [0], [1], [0, 0, 1, 1], [], []>} : vector<64x8xf32>, vector<8x64xf32>, vector<64x64xf32> -> vector<64x64xf32>
    %35 = arith.addf %32, %34 : vector<64x64xf32>
    %36 = vector.extract_strided_slice %1 {offsets = [16, 0], sizes = [8, 64], strides = [1, 1]} : vector<24x64xf32> to vector<8x64xf32>
    %cst_18 = arith.constant dense<0.000000e+00> : vector<64x64xf32>
    %37 = tpu.matmul %30, %36, %cst_18 {dimension_numbers = #tpu.dot_dimension_numbers<[1], [0], [0], [1], [0, 0, 1, 1], [], []>} : vector<64x8xf32>, vector<8x64xf32>, vector<64x64xf32> -> vector<64x64xf32>
    %38 = arith.addf %35, %37 : vector<64x64xf32>
    %39 = vector.shape_cast %6 : vector<16x8xf32> to vector<1x16x8xf32>
    %40 = vector.broadcast %39 : vector<1x16x8xf32> to vector<8x16x8xf32>
    %cst_19 = arith.constant dense<0.000000e+00> : vector<8x16x64xf32>
    %41 = tpu.matmul %40, %4, %cst_19 {dimension_numbers = #tpu.dot_dimension_numbers<[2], [1], [1], [2], [0, 0, 0, 1, 1, 2], [0], [0]>} : vector<8x16x8xf32>, vector<8x8x64xf32>, vector<8x16x64xf32> -> vector<8x16x64xf32>
    %42 = vector.extract_strided_slice %41 {offsets = [0, 0, 0], sizes = [8, 8, 64], strides = [1, 1, 1]} : vector<8x16x64xf32> to vector<8x8x64xf32>
    %43 = vector.shape_cast %42 : vector<8x8x64xf32> to vector<64x64xf32>
    %44 = vector.extract_strided_slice %41 {offsets = [0, 8, 0], sizes = [8, 8, 64], strides = [1, 1, 1]} : vector<8x16x64xf32> to vector<8x8x64xf32>
    %45 = vector.shape_cast %44 : vector<8x8x64xf32> to vector<64x64xf32>
    %cst_20 = arith.constant dense<0.000000e+00> : vector<64x64xf32>
    %46 = tpu.matmul %45, %2, %cst_20 {dimension_numbers = #tpu.dot_dimension_numbers<[1], [0], [0], [1], [0, 0, 1, 1], [], []>} : vector<64x64xf32>, vector<64x64xf32>, vector<64x64xf32> -> vector<64x64xf32>
    %47 = arith.addf %38, %43 : vector<64x64xf32>
    %48 = arith.addf %47, %46 : vector<64x64xf32>
    %49 = vector.shape_cast %48 : vector<64x64xf32> to vector<8x8x64xf32>
    %c0_21 = arith.constant 0 : index
    %c0_22 = arith.constant 0 : index
    %50 = vector.load %arg7[%c0_21, %c0_22] : memref<48x40xf32, #tpu.memory_space<vmem>>, vector<48x40xf32>
    %c0_23 = arith.constant 0 : index
    %c0_24 = arith.constant 0 : index
    %51 = vector.load %arg8[%c0_23, %c0_24] : memref<32x8xf32, #tpu.memory_space<vmem>>, vector<32x8xf32>
    %52 = vector.shape_cast %49 : vector<8x8x64xf32> to vector<64x64xf32>
    %cst_25 = arith.constant dense<0.000000e+00> : vector<64x24xf32>
    %53 = tpu.matmul %52, %0, %cst_25 {dimension_numbers = #tpu.dot_dimension_numbers<[1], [0], [0], [1], [0, 0, 1, 1], [], []>} : vector<64x64xf32>, vector<64x24xf32>, vector<64x24xf32> -> vector<64x24xf32>
    %54 = vector.shape_cast %53 : vector<64x24xf32> to vector<8x8x24xf32>
    %55 = vector.extract_strided_slice %54 {offsets = [0, 0, 0], sizes = [8, 8, 8], strides = [1, 1, 1]} : vector<8x8x24xf32> to vector<8x8x8xf32>
    %56 = vector.extract_strided_slice %54 {offsets = [0, 0, 8], sizes = [8, 8, 8], strides = [1, 1, 1]} : vector<8x8x24xf32> to vector<8x8x8xf32>
    %57 = vector.extract_strided_slice %54 {offsets = [0, 0, 16], sizes = [8, 8, 8], strides = [1, 1, 1]} : vector<8x8x24xf32> to vector<8x8x8xf32>
    %cst_26 = arith.constant dense<0.000000e+00> : vector<8x8xf32>
    %58 = vector.multi_reduction <add>, %55, %cst_26 [2] : vector<8x8x8xf32> to vector<8x8xf32>
    %59 = vector.shape_cast %58 : vector<8x8xf32> to vector<8x8x1xf32>
    %cst_27 = arith.constant dense<0.000000e+00> : vector<8x8xf32>
    %60 = vector.multi_reduction <add>, %56, %cst_27 [2] : vector<8x8x8xf32> to vector<8x8xf32>
    %61 = vector.shape_cast %60 : vector<8x8xf32> to vector<8x8x1xf32>
    %62 = vector.shape_cast %59 : vector<8x8x1xf32> to vector<8x8x1xf32>
    %63 = vector.broadcast %62 : vector<8x8x1xf32> to vector<8x8x8xf32>
    %64 = vector.shape_cast %61 : vector<8x8x1xf32> to vector<8x8x1xf32>
    %65 = vector.broadcast %64 : vector<8x8x1xf32> to vector<8x8x8xf32>
    %66 = tpu.concatenate %55, %56, %57, %63, %65 in 1 : vector<8x8x8xf32>, vector<8x8x8xf32>, vector<8x8x8xf32>, vector<8x8x8xf32>, vector<8x8x8xf32> -> vector<8x40x8xf32>
    %67 = vector.shape_cast %50 : vector<48x40xf32> to vector<1x48x40xf32>
    %68 = vector.broadcast %67 : vector<1x48x40xf32> to vector<8x48x40xf32>
    %cst_28 = arith.constant dense<0.000000e+00> : vector<8x48x8xf32>
    %69 = tpu.matmul %68, %66, %cst_28 {dimension_numbers = #tpu.dot_dimension_numbers<[2], [1], [1], [2], [0, 0, 0, 1, 1, 2], [0], [0]>} : vector<8x48x40xf32>, vector<8x40x8xf32>, vector<8x48x8xf32> -> vector<8x48x8xf32>
    %70 = vector.extract_strided_slice %69 {offsets = [0, 0, 0], sizes = [8, 16, 8], strides = [1, 1, 1]} : vector<8x48x8xf32> to vector<8x16x8xf32>
    %71 = vector.shape_cast %70 : vector<8x16x8xf32> to vector<128x8xf32>
    %72 = vector.extract_strided_slice %69 {offsets = [0, 16, 0], sizes = [8, 16, 8], strides = [1, 1, 1]} : vector<8x48x8xf32> to vector<8x16x8xf32>
    %73 = vector.shape_cast %72 : vector<8x16x8xf32> to vector<128x8xf32>
    %74 = vector.extract_strided_slice %69 {offsets = [0, 32, 0], sizes = [8, 16, 8], strides = [1, 1, 1]} : vector<8x48x8xf32> to vector<8x16x8xf32>
    %75 = vector.shape_cast %74 : vector<8x16x8xf32> to vector<128x8xf32>
    %76 = vector.extract_strided_slice %1 {offsets = [0, 0], sizes = [8, 64], strides = [1, 1]} : vector<24x64xf32> to vector<8x64xf32>
    %cst_29 = arith.constant dense<0.000000e+00> : vector<128x64xf32>
    %77 = tpu.matmul %71, %76, %cst_29 {dimension_numbers = #tpu.dot_dimension_numbers<[1], [0], [0], [1], [0, 0, 1, 1], [], []>} : vector<128x8xf32>, vector<8x64xf32>, vector<128x64xf32> -> vector<128x64xf32>
    %78 = vector.extract_strided_slice %1 {offsets = [8, 0], sizes = [8, 64], strides = [1, 1]} : vector<24x64xf32> to vector<8x64xf32>
    %cst_30 = arith.constant dense<0.000000e+00> : vector<128x64xf32>
    %79 = tpu.matmul %73, %78, %cst_30 {dimension_numbers = #tpu.dot_dimension_numbers<[1], [0], [0], [1], [0, 0, 1, 1], [], []>} : vector<128x8xf32>, vector<8x64xf32>, vector<128x64xf32> -> vector<128x64xf32>
    %80 = arith.addf %77, %79 : vector<128x64xf32>
    %81 = vector.extract_strided_slice %1 {offsets = [16, 0], sizes = [8, 64], strides = [1, 1]} : vector<24x64xf32> to vector<8x64xf32>
    %cst_31 = arith.constant dense<0.000000e+00> : vector<128x64xf32>
    %82 = tpu.matmul %75, %81, %cst_31 {dimension_numbers = #tpu.dot_dimension_numbers<[1], [0], [0], [1], [0, 0, 1, 1], [], []>} : vector<128x8xf32>, vector<8x64xf32>, vector<128x64xf32> -> vector<128x64xf32>
    %83 = arith.addf %80, %82 : vector<128x64xf32>
    %84 = vector.shape_cast %51 : vector<32x8xf32> to vector<1x32x8xf32>
    %85 = vector.broadcast %84 : vector<1x32x8xf32> to vector<8x32x8xf32>
    %cst_32 = arith.constant dense<0.000000e+00> : vector<8x32x64xf32>
    %86 = tpu.matmul %85, %49, %cst_32 {dimension_numbers = #tpu.dot_dimension_numbers<[2], [1], [1], [2], [0, 0, 0, 1, 1, 2], [0], [0]>} : vector<8x32x8xf32>, vector<8x8x64xf32>, vector<8x32x64xf32> -> vector<8x32x64xf32>
    %87 = vector.extract_strided_slice %86 {offsets = [0, 0, 0], sizes = [8, 16, 64], strides = [1, 1, 1]} : vector<8x32x64xf32> to vector<8x16x64xf32>
    %88 = vector.shape_cast %87 : vector<8x16x64xf32> to vector<128x64xf32>
    %89 = vector.extract_strided_slice %86 {offsets = [0, 16, 0], sizes = [8, 16, 64], strides = [1, 1, 1]} : vector<8x32x64xf32> to vector<8x16x64xf32>
    %90 = vector.shape_cast %89 : vector<8x16x64xf32> to vector<128x64xf32>
    %cst_33 = arith.constant dense<0.000000e+00> : vector<128x64xf32>
    %91 = tpu.matmul %90, %2, %cst_33 {dimension_numbers = #tpu.dot_dimension_numbers<[1], [0], [0], [1], [0, 0, 1, 1], [], []>} : vector<128x64xf32>, vector<64x64xf32>, vector<128x64xf32> -> vector<128x64xf32>
    %92 = arith.addf %83, %88 : vector<128x64xf32>
    %93 = arith.addf %92, %91 : vector<128x64xf32>
    %94 = vector.shape_cast %93 : vector<128x64xf32> to vector<8x16x64xf32>
    %95 = vector.shape_cast %94 : vector<8x16x64xf32> to vector<128x64xf32>
    %cst_34 = arith.constant dense<0.000000e+00> : vector<128x24xf32>
    %96 = tpu.matmul %95, %0, %cst_34 {dimension_numbers = #tpu.dot_dimension_numbers<[1], [0], [0], [1], [0, 0, 1, 1], [], []>} : vector<128x64xf32>, vector<64x24xf32>, vector<128x24xf32> -> vector<128x24xf32>
    %97 = vector.shape_cast %96 : vector<128x24xf32> to vector<8x16x24xf32>
    %98 = vector.extract_strided_slice %97 {offsets = [0, 0, 0], sizes = [8, 16, 8], strides = [1, 1, 1]} : vector<8x16x24xf32> to vector<8x16x8xf32>
    %cst_35 = arith.constant dense<0.000000e+00> : vector<8x16xf32>
    %99 = vector.multi_reduction <add>, %98, %cst_35 [2] : vector<8x16x8xf32> to vector<8x16xf32>
    %100 = vector.extract_strided_slice %97 {offsets = [0, 0, 8], sizes = [8, 16, 8], strides = [1, 1, 1]} : vector<8x16x24xf32> to vector<8x16x8xf32>
    %cst_36 = arith.constant dense<0.000000e+00> : vector<8x16xf32>
    %101 = vector.multi_reduction <add>, %100, %cst_36 [2] : vector<8x16x8xf32> to vector<8x16xf32>
    %c0_37 = arith.constant 0 : index
    %c0_38 = arith.constant 0 : index
    %102 = vector.load %arg9[%c0_37, %c0_38] : memref<32x1024xf32, #tpu.memory_space<vmem>>, vector<32x1024xf32>
    %103 = vector.extract_strided_slice %102 {offsets = [0, 0], sizes = [16, 1024], strides = [1, 1]} : vector<32x1024xf32> to vector<16x1024xf32>
    %cst_39 = arith.constant dense<0.000000e+00> : vector<8x1024xf32>
    %104 = tpu.matmul %99, %103, %cst_39 {dimension_numbers = #tpu.dot_dimension_numbers<[1], [0], [0], [1], [0, 0, 1, 1], [], []>} : vector<8x16xf32>, vector<16x1024xf32>, vector<8x1024xf32> -> vector<8x1024xf32>
    %105 = vector.extract_strided_slice %102 {offsets = [16, 0], sizes = [16, 1024], strides = [1, 1]} : vector<32x1024xf32> to vector<16x1024xf32>
    %cst_40 = arith.constant dense<0.000000e+00> : vector<8x1024xf32>
    %106 = tpu.matmul %101, %105, %cst_40 {dimension_numbers = #tpu.dot_dimension_numbers<[1], [0], [0], [1], [0, 0, 1, 1], [], []>} : vector<8x16xf32>, vector<16x1024xf32>, vector<8x1024xf32> -> vector<8x1024xf32>
    %107 = arith.addf %104, %106 : vector<8x1024xf32>
    %c0_41 = arith.constant 0 : index
    %c0_42 = arith.constant 0 : index
    %108 = vector.load %arg10[%c0_41, %c0_42] : memref<1x1024xf32, #tpu.memory_space<vmem>>, vector<1x1024xf32>
    %109 = vector.broadcast %108 : vector<1x1024xf32> to vector<8x1024xf32>
    %110 = arith.addf %107, %109 : vector<8x1024xf32>
    %c0_43 = arith.constant 0 : index
    %c0_44 = arith.constant 0 : index
    %111 = vector.load %arg11[%c0_43, %c0_44] : memref<1024x512xf32, #tpu.memory_space<vmem>>, vector<1024x512xf32>
    %cst_45 = arith.constant dense<0.000000e+00> : vector<8x512xf32>
    %112 = tpu.matmul %110, %111, %cst_45 {dimension_numbers = #tpu.dot_dimension_numbers<[1], [0], [0], [1], [0, 0, 1, 1], [], []>} : vector<8x1024xf32>, vector<1024x512xf32>, vector<8x512xf32> -> vector<8x512xf32>
    %c0_46 = arith.constant 0 : index
    %c0_47 = arith.constant 0 : index
    %113 = vector.load %arg12[%c0_46, %c0_47] : memref<1x512xf32, #tpu.memory_space<vmem>>, vector<1x512xf32>
    %114 = vector.broadcast %113 : vector<1x512xf32> to vector<8x512xf32>
    %115 = arith.addf %112, %114 : vector<8x512xf32>
    %cst_48 = arith.constant 0.000000e+00 : f32
    %116 = vector.broadcast %cst_48 : f32 to vector<8x512xf32>
    %117 = arith.maximumf %115, %116 : vector<8x512xf32>
    %c0_49 = arith.constant 0 : index
    %c0_50 = arith.constant 0 : index
    %118 = vector.load %arg13[%c0_49, %c0_50] : memref<512x256xf32, #tpu.memory_space<vmem>>, vector<512x256xf32>
    %cst_51 = arith.constant dense<0.000000e+00> : vector<8x256xf32>
    %119 = tpu.matmul %117, %118, %cst_51 {dimension_numbers = #tpu.dot_dimension_numbers<[1], [0], [0], [1], [0, 0, 1, 1], [], []>} : vector<8x512xf32>, vector<512x256xf32>, vector<8x256xf32> -> vector<8x256xf32>
    %c0_52 = arith.constant 0 : index
    %c0_53 = arith.constant 0 : index
    %120 = vector.load %arg14[%c0_52, %c0_53] : memref<1x256xf32, #tpu.memory_space<vmem>>, vector<1x256xf32>
    %121 = vector.broadcast %120 : vector<1x256xf32> to vector<8x256xf32>
    %122 = arith.addf %119, %121 : vector<8x256xf32>
    %cst_54 = arith.constant 0.000000e+00 : f32
    %123 = vector.broadcast %cst_54 : f32 to vector<8x256xf32>
    %124 = arith.maximumf %122, %123 : vector<8x256xf32>
    %c0_55 = arith.constant 0 : index
    %c0_56 = arith.constant 0 : index
    %125 = vector.load %arg15[%c0_55, %c0_56] : memref<256x128xf32, #tpu.memory_space<vmem>>, vector<256x128xf32>
    %cst_57 = arith.constant dense<0.000000e+00> : vector<8x128xf32>
    %126 = tpu.matmul %124, %125, %cst_57 {dimension_numbers = #tpu.dot_dimension_numbers<[1], [0], [0], [1], [0, 0, 1, 1], [], []>} : vector<8x256xf32>, vector<256x128xf32>, vector<8x128xf32> -> vector<8x128xf32>
    %c0_58 = arith.constant 0 : index
    %c0_59 = arith.constant 0 : index
    %127 = vector.load %arg16[%c0_58, %c0_59] : memref<1x128xf32, #tpu.memory_space<vmem>>, vector<1x128xf32>
    %128 = vector.broadcast %127 : vector<1x128xf32> to vector<8x128xf32>
    %129 = arith.addf %126, %128 : vector<8x128xf32>
    %cst_60 = arith.constant dense<0xFF800000> : vector<8xf32>
    %130 = vector.multi_reduction <maximumf>, %129, %cst_60 [1] : vector<8x128xf32> to vector<8xf32>
    %131 = vector.shape_cast %130 : vector<8xf32> to vector<8x1xf32>
    %132 = vector.broadcast %131 : vector<8x1xf32> to vector<8x128xf32>
    %133 = arith.subf %129, %132 : vector<8x128xf32>
    %134 = math.exp %133 : vector<8x128xf32>
    %cst_61 = arith.constant dense<0.000000e+00> : vector<8xf32>
    %135 = vector.multi_reduction <add>, %134, %cst_61 [1] : vector<8x128xf32> to vector<8xf32>
    %136 = vector.shape_cast %135 : vector<8xf32> to vector<8x1xf32>
    %137 = math.log %136 : vector<8x1xf32>
    %138 = vector.broadcast %131 : vector<8x1xf32> to vector<8x128xf32>
    %139 = arith.subf %129, %138 : vector<8x128xf32>
    %140 = vector.broadcast %137 : vector<8x1xf32> to vector<8x128xf32>
    %141 = arith.subf %139, %140 : vector<8x128xf32>
    %c0_62 = arith.constant 0 : index
    %c0_63 = arith.constant 0 : index
    %c0_64 = arith.constant 0 : index
    %142 = vector.load %arg17[%c0_62, %c0_63, %c0_64] : memref<1x8x128xf32, #tpu.memory_space<vmem>>, vector<1x8x128xf32>
    %143 = vector.shape_cast %142 : vector<1x8x128xf32> to vector<8x128xf32>
    %144 = vector.shape_cast %141 : vector<8x128xf32> to vector<1x8x128xf32>
    tpu.vector_store %arg17[%c0_62, %c0_63, %c0_64], %144 {strides = array<i32>} : memref<1x8x128xf32, #tpu.memory_space<vmem>>, vector<1x8x128xf32>,
    return
  }
  func.func @transform_0(%arg0: i32) -> (i32, i32, i32, i32) {
    %c0_i32 = arith.constant 0 : i32
    %c0_i32_0 = arith.constant 0 : i32
    %c0_i32_1 = arith.constant 0 : i32
    %c0_i32_2 = arith.constant 0 : i32
    return %arg0, %c0_i32, %c0_i32_0, %c0_i32_1 : i32, i32, i32, i32
  }
  func.func @transform_1(%arg0: i32) -> (i32, i32) {
    %c0_i32 = arith.constant 0 : i32
    %c0_i32_0 = arith.constant 0 : i32
    %c0_i32_1 = arith.constant 0 : i32
    return %c0_i32, %c0_i32_0 : i32, i32
  }
  func.func @transform_2(%arg0: i32) -> (i32, i32) {
    %c0_i32 = arith.constant 0 : i32
    %c0_i32_0 = arith.constant 0 : i32
    %c0_i32_1 = arith.constant 0 : i32
    return %c0_i32, %c0_i32_0 : i32, i32
  }
  func.func @transform_3(%arg0: i32) -> (i32, i32) {
    %c0_i32 = arith.constant 0 : i32
    %c0_i32_0 = arith.constant 0 : i32
    %c0_i32_1 = arith.constant 0 : i32
    return %c0_i32, %c0_i32_0 : i32, i32
  }
  func.func @transform_4(%arg0: i32) -> (i32, i32) {
    %c0_i32 = arith.constant 0 : i32
    %c0_i32_0 = arith.constant 0 : i32
    %c0_i32_1 = arith.constant 0 : i32
    return %c0_i32, %c0_i32_0 : i32, i32
  }
  func.func @transform_5(%arg0: i32) -> (i32, i32) {
    %c0_i32 = arith.constant 0 : i32
    %c0_i32_0 = arith.constant 0 : i32
    %c0_i32_1 = arith.constant 0 : i32
    return %c0_i32, %c0_i32_0 : i32, i32
  }
  func.func @transform_6(%arg0: i32) -> (i32, i32) {
    %c0_i32 = arith.constant 0 : i32
    %c0_i32_0 = arith.constant 0 : i32
    %c0_i32_1 = arith.constant 0 : i32
    return %c0_i32, %c0_i32_0 : i32, i32
  }
  func.func @transform_7(%arg0: i32) -> (i32, i32) {
    %c0_i32 = arith.constant 0 : i32
    %c0_i32_0 = arith.constant 0 : i32
    %c0_i32_1 = arith.constant 0 : i32
    return %c0_i32, %c0_i32_0 : i32, i32
  }
  func.func @transform_8(%arg0: i32) -> (i32, i32) {
    %c0_i32 = arith.constant 0 : i32
    %c0_i32_0 = arith.constant 0 : i32
    %c0_i32_1 = arith.constant 0 : i32
    return %c0_i32, %c0_i32_0 : i32, i32
  }
  func.func @transform_9(%arg0: i32) -> (i32, i32) {
    %c0_i32 = arith.constant 0 : i32
    %c0_i32_0 = arith.constant 0 : i32
    %c0_i32_1 = arith.constant 0 : i32
    return %c0_i32, %c0_i32_0 : i32, i32
  }
  func.func @transform_10(%arg0: i32) -> (i32, i32) {
    %c0_i32 = arith.constant 0 : i32
    %c0_i32_0 = arith.constant 0 : i32
    %c0_i32_1 = arith.constant 0 : i32
    return %c0_i32, %c0_i32_0 : i32, i32
  }
  func.func @transform_11(%arg0: i32) -> (i32, i32) {
    %c0_i32 = arith.constant 0 : i32
    %c0_i32_0 = arith.constant 0 : i32
    %c0_i32_1 = arith.constant 0 : i32
    return %c0_i32, %c0_i32_0 : i32, i32
  }
  func.func @transform_12(%arg0: i32) -> (i32, i32) {
    %c0_i32 = arith.constant 0 : i32
    %c0_i32_0 = arith.constant 0 : i32
    %c0_i32_1 = arith.constant 0 : i32
    return %c0_i32, %c0_i32_0 : i32, i32
  }
  func.func @transform_13(%arg0: i32) -> (i32, i32) {
    %c0_i32 = arith.constant 0 : i32
    %c0_i32_0 = arith.constant 0 : i32
    %c0_i32_1 = arith.constant 0 : i32
    return %c0_i32, %c0_i32_0 : i32, i32
  }
  func.func @transform_14(%arg0: i32) -> (i32, i32) {
    %c0_i32 = arith.constant 0 : i32
    %c0_i32_0 = arith.constant 0 : i32
    %c0_i32_1 = arith.constant 0 : i32
    return %c0_i32, %c0_i32_0 : i32, i32
  }
  func.func @transform_15(%arg0: i32) -> (i32, i32) {
    %c0_i32 = arith.constant 0 : i32
    %c0_i32_0 = arith.constant 0 : i32
    %c0_i32_1 = arith.constant 0 : i32
    return %c0_i32, %c0_i32_0 : i32, i32
  }
  func.func @transform_16(%arg0: i32) -> (i32, i32, i32) {
    %c0_i32 = arith.constant 0 : i32
    %c0_i32_0 = arith.constant 0 : i32
    %c0_i32_1 = arith.constant 0 : i32
    return %arg0, %c0_i32, %c0_i32_0 : i32, i32, i32
  }
}

</mosaic_0001>

<bundles_post_ra>
// kernel: forward.1
= control target key start
LH: loop header
LB: loop body
LE: loop exit
PB: predicated region body
PF: predicated region fallthrough
CT: control target
= control target key end

     0   :  { %vm85_vm0 = vcmask 523264   ;;  %vm151_vm1 = vcmask 64512   ;;  %s4802_s26 = smov 120   ;;  %vm256_vm2 = vcmask 326656   ;;  %vm2495_vm3 = vcmask 130112   ;;  %s8426_s1 = inlined_call_operand.vmem [shape: f32[64,24], index: 1, kind: input, shape index: {}]   ;;  %s8427_s0 = inlined_call_operand.vmem [shape: f32[1,8,8,64], index: 0, kind: input, shape index: {}]   ;;  %s8428_s4 = inlined_call_operand.vmem [shape: f32[24,40], index: 4, kind: input, shape index: {}]   ;;  %s8429_s2 = inlined_call_operand.vmem [shape: f32[24,64], index: 2, kind: input, shape index: {}]   ;;  %s8430_s5 = inlined_call_operand.vmem [shape: f32[16,8], index: 5, kind: input, shape index: {}]   ;;  %s8431_s3 = inlined_call_operand.vmem [shape: f32[64,64], index: 3, kind: input, shape index: {}]   ;;  %s8432_s6 = inlined_call_operand.vmem [shape: f32[48,40], index: 6, kind: input, shape index: {}]   ;;  %s8433_s7 = inlined_call_operand.vmem [shape: f32[32,8], index: 7, kind: input, shape index: {}]   ;;  %s8434_s8 = inlined_call_operand.vmem [shape: f32[32,1024], index: 8, kind: input, shape index: {}]   ;;  %s8435_s10 = inlined_call_operand.vmem [shape: f32[1024,512], index: 10, kind: input, shape index: {}]   ;;  %s8436_s9 = inlined_call_operand.vmem [shape: f32[1,1024], index: 9, kind: input, shape index: {}]   ;;  %s8437_s11 = inlined_call_operand.vmem [shape: f32[1,512], index: 11, kind: input, shape index: {}]   ;;  %s8438_s12 = inlined_call_operand.vmem [shape: f32[512,256], index: 12, kind: input, shape index: {}]   ;;  %s8439_s15 = inlined_call_operand.vmem [shape: f32[1,128], index: 15, kind: input, shape index: {}]   ;;  %s8440_s14 = inlined_call_operand.vmem [shape: f32[256,128], index: 14, kind: input, shape index: {}]   ;;  %s8441_s13 = inlined_call_operand.vmem [shape: f32[1,256], index: 13, kind: input, shape index: {}]   ;;  %s8442_s16 = inlined_call_operand.vmem [shape: f32[1,8,128], index: 16, kind: output, shape index: {}]  }
   0x1   :  { %8444 = sst [smem:[#allocation6_spill]] %s8426_s1  ;;  %v4939_v8 = vld [vmem:[%s8427_s0] sm:$0xff]  ;;  %v4947_v9 = vld [vmem:[%s8427_s0 + $0x8] sm:$0xff]  ;;  %v4954_v10 = vld [vmem:[%s8427_s0 + $0x10] sm:$0xff]  ;;  %vm2518_vm4 = vcmask 1041409   ;;  %vm2520_vm5 = vcmask 1042434  }
   0x2   :  { %s8445_s23 = sld [smem:[#allocation6_spill]]  ;;  %v4961_v11 = vld [vmem:[%s8427_s0 + $0x18] sm:$0xff]  ;;  %v4968_v12 = vld [vmem:[%s8427_s0 + $0x20] sm:$0xff]  ;;  %v4975_v13 = vld [vmem:[%s8427_s0 + $0x28] sm:$0xff]  ;;  %vm2522_vm6 = vcmask 1043459   ;;  %vm2524_vm7 = vcmask 1044484  }
   0x3   :  { %v4982_v14 = vld [vmem:[%s8427_s0 + $0x30] sm:$0xff]  ;;  %v4989_v15 = vld [vmem:[%s8427_s0 + $0x38] sm:$0xff]  ;;  %s4803_s0 = smov 112   ;;  %v5074_v54 = vld [vmem:[%s8428_s4] sm:$0xff]  ;;  %vm2526_vm8 = vcmask 1045509   ;;  %vm2528_vm9 = vcmask 1046534  }
   0x4   :  { %v5085_v58 = vld [vmem:[%s8428_s4 + $0x8] sm:$0xff]  ;;  %v5094_v60 = vld [vmem:[%s8428_s4 + $0x10] sm:$0xff]  ;;  %vm2530_vm10 = vcmask 1047559   ;;  %vm2532_vm11 = vcmask 130048  }
   0x8   :  { %v4892_v0 = vld [vmem:[%s8445_s23 + $0x38] sm:$0xff]  ;;  %v4897_v1 = vld [vmem:[%s8445_s23 + $0x30] sm:$0xff]  ;;  %v4903_v2 = vld [vmem:[%s8445_s23 + $0x28] sm:$0xff] }
   0x9   :  { %118 = vmatpush.msra.mxu0 %v4892_v0  ;;  %v4909_v3 = vld [vmem:[%s8445_s23 + $0x20] sm:$0xff]  ;;  %v4915_v4 = vld [vmem:[%s8445_s23 + $0x18] sm:$0xff]  ;;  %v4921_v5 = vld [vmem:[%s8445_s23 + $0x10] sm:$0xff] }
   0xa   :  { %v4927_v6 = vld [vmem:[%s8445_s23 + $0x8] sm:$0xff]  ;;  %v4933_v7 = vld [vmem:[%s8445_s23] sm:$0xff] }
   0xb   :  { %119 = vmatpush.msra.mxu0 %v4897_v1 }
   0xd   :  { %120 = vmatpush.msra.mxu0 %v4903_v2 }
   0xf   :  { %121 = vmatpush.msra.mxu0 %v4909_v3 }
  0x11   :  { %122 = vmatpush.msra.mxu0 %v4915_v4 }
  0x13   :  { %123 = vmatpush.msra.mxu0 %v4921_v5 }
  0x15   :  { %124 = vmatpush.msra.mxu0 %v4927_v6 }
  0x17   :  { %125 = vmatpush.msra.mxu0 %v4933_v7 }
  0x18   :  { %4483 = vmatmul.msk.f32.vlgmr.msra.gmra.mxu0 %vm85_vm0, %v4939_v8 }
  0x20   :  { %4484 = vmatmul.msk.f32.gmra.mxu0 %vm85_vm0, %v4947_v9 }
  0x28   :  { %4485 = vmatmul.msk.f32.gmra.mxu0 %vm85_vm0, %v4954_v10 }
  0x30   :  { %4486 = vmatmul.msk.f32.gmra.mxu0 %vm85_vm0, %v4961_v11 }
  0x38   :  { %4487 = vmatmul.msk.f32.gmra.mxu0 %vm85_vm0, %v4968_v12 }
  0x40   :  { %4488 = vmatmul.msk.f32.gmra.mxu0 %vm85_vm0, %v4975_v13 }
  0x48   :  { %4489 = vmatmul.msk.f32.gmra.mxu0 %vm85_vm0, %v4982_v14 }
  0x50   :  { %4490 = vmatmul.msk.f32.gmra.mxu0 %vm85_vm0, %v4989_v15 }
  0x95   :  { %v4993_v16 = vpop.f32.mrf.mxu0 }
  0x96   :  { %184 = vrot.lane.b32.xlu0 %v4993_v16, %s4802_s26  ;;  %v152_v17 = vsel %vm151_vm1, %v4993_v16, 0.0 }
  0x97   :  { %153 = vadd.xlane.f32.xlu1 %v152_v17 }
  0x9d   :  { %v4999_v18 = vpop.f32.mrf.mxu0 }
  0x9e   :  { %186 = vrot.lane.b32.xlu0 %v4999_v18, %s4802_s26  ;;  %v4754_v19 = vpack.i.bf16 %v4999_v18, %v4993_v16  ;;  %v155_v25 = vsel %vm151_vm1, %v4999_v18, 0.0 }
  0xa0   :  { %4755 = vrot.lane.b32.xlu2 %v4754_v19, %s4803_s0 }
  0xa5   :  { %v5006_v20 = vpop.f32.mrf.mxu0 }
  0xa6   :  { %v158_v23 = vsel %vm151_vm1, %v5006_v20, 0.0 }
  0xad   :  { %v5010_v21 = vpop.f32.mrf.mxu0 }
  0xae   :  { %v161_v22 = vsel %vm151_vm1, %v5010_v21, 0.0  ;;  %v4759_v26 = vpack.i.bf16 %v5010_v21, %v5006_v20 }
  0xb0   :  { %188 = vrot.lane.b32.xlu1 %v5006_v20, %s4802_s26 }
  0xb5   :  { %v5018_v24 = vpop.f32.mrf.mxu0 }
  0xb6   :  { %v164_v29 = vsel %vm151_vm1, %v5018_v24, 0.0 }
  0xb8   :  { %190 = vrot.lane.b32.xlu1 %v5010_v21, %s4802_s26 }
  0xbd   :  { %v5030_v31 = vpop.f32.mrf.mxu0 }
  0xbe   :  { %v4764_v43 = vpack.i.bf16 %v5030_v31, %v5018_v24  ;;  %v167_v45 = vsel %vm151_vm1, %v5030_v31, 0.0 }
  0xc5   :  { %v5035_v34 = vpop.f32.mrf.mxu0 }
  0xc6   :  { %v170_v51 = vsel %vm151_vm1, %v5035_v34, 0.0 }
  0xc8   :  { %159 = vadd.xlane.f32.xlu0 %v158_v23 }
  0xc9   :  { %162 = vadd.xlane.f32.xlu2 %v161_v22 }
  0xcd   :  { %v5040_v37 = vpop.f32.mrf.mxu0 }
  0xce   :  { %v173_v46 = vsel %vm151_vm1, %v5040_v37, 0.0  ;;  %v4769_v22 = vpack.i.bf16 %v5040_v37, %v5035_v34 }
  0xe1   :  { %192 = vrot.lane.b32.xlu2 %v5018_v24, %s4802_s26 }
  0xe2   :  { %156 = vadd.xlane.f32.xlu1 %v155_v25 }
  0xfa   :  { %v5044_v38 = vpop.permute.xlu2 %4755 }
  0xfb   :  { %4760 = vrot.lane.b32.xlu1 %v4759_v26, %s4803_s0  ;;  %v4757_v50 = vunpack.i.l.bf16 %v5044_v38  ;;  %v4758_v23 = vunpack.i.h.bf16 %v5044_v38 }
 0x108   :  { %v185_v27 = vpop.permute.xlu0 %184 }
 0x109   :  { %v208_v28 = vsel %vm151_vm1, %v185_v27, 0.0 }
 0x10a   :  { %209 = vadd.xlane.f32.xlu0 %v208_v28  ;;  %165 = vadd.xlane.f32.xlu2 %v164_v29  ;;  %v154_v30 = vpop.xlane.xlu1 %153 }
 0x110   :  { %v5050_v42 = vpop.permute.xlu0 %186 }
 0x111   :  { %v211_v44 = vsel %vm151_vm1, %v5050_v42, 0.0 }
 0x122   :  { %v189_v32 = vpop.permute.xlu1 %188  ;;  %194 = vrot.lane.b32.xlu2 %v5030_v31, %s4802_s26 }
 0x123   :  { %v214_v33 = vsel %vm151_vm1, %v189_v32, 0.0 }
 0x124   :  { %215 = vadd.xlane.f32.xlu0 %v214_v33  ;;  %v5144_v33 = vld [vmem:[%s8429_s2 + $0x8] sm:$0xff] }
 0x12a   :  { %v191_v35 = vpop.permute.xlu1 %190  ;;  %196 = vrot.lane.b32.xlu2 %v5035_v34, %s4802_s26 }
 0x12b   :  { %v217_v36 = vsel %vm151_vm1, %v191_v35, 0.0 }
 0x12c   :  { %218 = vadd.xlane.f32.xlu0 %v217_v36  ;;  %v5153_v36 = vld [vmem:[%s8429_s2] sm:$0xff] }
 0x132   :  { %198 = vrot.lane.b32.xlu2 %v5040_v37, %s4802_s26 }
 0x13b   :  { %v160_v47 = vpop.xlane.xlu0 %159 }
 0x13c   :  { %v163_v39 = vpop.xlane.xlu2 %162 }
 0x144   :  { %v5046_v40 = vpop.permute.xlu2 %192 }
 0x145   :  { %v220_v41 = vsel %vm151_vm1, %v5046_v40, 0.0 }
 0x146   :  { %221 = vadd.xlane.f32.xlu0 %v220_v41 }
 0x155   :  { %v157_v57 = vpop.xlane.xlu1 %156 }
 0x15a   :  { %4765 = vrot.lane.b32.xlu0 %v4764_v43, %s4803_s0 }
 0x15b   :  { %212 = vadd.xlane.f32.xlu2 %v211_v44 }
 0x163   :  { %168 = vadd.xlane.f32.xlu2 %v167_v45 }
 0x16b   :  { %174 = vadd.xlane.f32.xlu2 %v173_v46 }
 0x16d   :  { %v4761_v62 = vpop.permute.xlu1 %4760 }
 0x16e   :  { %v4763_v19 = vunpack.i.h.bf16 %v4761_v62 }
 0x17d   :  { %v210_v48 = vpop.xlane.xlu0 %209  ;;  %v5061_v49 = vpop.xlane.xlu2 %165 }
 0x17e   :  { %277 = vmatpush.msra.mxu1 %v210_v48  ;;  %v5232_v48 = vld [vmem:[%s8431_s3 + $0x38] sm:$0xff] }
 0x180   :  { %278 = vmatpush.msra.mxu1 %v154_v30 }
 0x182   :  { %279 = vmatpush.msra.mxu1 %v4757_v50  ;;  %v5239_v50 = vld [vmem:[%s8431_s3 + $0x30] sm:$0xff] }
 0x184   :  { %280 = vmatpush.msra.mxu1 %v185_v27  ;;  %171 = vadd.xlane.f32.xlu0 %v170_v51  ;;  %v5244_v51 = vld [vmem:[%s8431_s3 + $0x28] sm:$0xff] }
 0x185   :  { %v5066_v52 = vpop.permute.xlu2 %194 }
 0x186   :  { %281 = vmatpush.msra.mxu1 %v4993_v16  ;;  %v223_v53 = vsel %vm151_vm1, %v5066_v52, 0.0  ;;  %v4762_v16 = vunpack.i.l.bf16 %v4761_v62 }
 0x187   :  { %224 = vadd.xlane.f32.xlu1 %v223_v53  ;;  %4491 = vmatmul.msk.f32.vlgmr.msra.gmra.mxu1 %vm256_vm2, %v5074_v54  ;;  %v5257_v53 = vld [vmem:[%s8431_s3 + $0x18] sm:$0xff] }
 0x18d   :  { %v5078_v55 = vpop.permute.xlu2 %196 }
 0x18e   :  { %v226_v56 = vsel %vm151_vm1, %v5078_v55, 0.0 }
 0x18f   :  { %227 = vadd.xlane.f32.xlu2 %v226_v56  ;;  %4492 = vmatmul.msk.f32.gmra.mxu1 %vm256_vm2, %v5085_v58  ;;  %v5264_v56 = vld [vmem:[%s8431_s3 + $0x10] sm:$0xff] }
 0x195   :  { %v5089_v59 = vpop.permute.xlu2 %198 }
 0x196   :  { %v229_v61 = vsel %vm151_vm1, %v5089_v59, 0.0 }
 0x197   :  { %v216_v63 = vpop.xlane.xlu0 %215  ;;  %230 = vadd.xlane.f32.xlu2 %v229_v61  ;;  %4493 = vmatmul.msk.f32.gmra.mxu1 %vm256_vm2, %v5094_v60 }
 0x198   :  { %329 = vmatpush.msra.mxu3 %v216_v63 }
 0x19a   :  { %330 = vmatpush.msra.mxu3 %v160_v47 }
 0x19c   :  { %331 = vmatpush.msra.mxu3 %v4762_v16 }
 0x19e   :  { %332 = vmatpush.msra.mxu3 %v189_v32 }
 0x19f   :  { %v219_v17 = vpop.xlane.xlu0 %218 }
 0x1a0   :  { %333 = vmatpush.msra.mxu3 %v5006_v20  ;;  %355 = vmatpush.msrb.mxu1 %v219_v17 }
 0x1a1   :  { %4497 = vmatmul.msk.f32.vlgmr.msra.gmra.mxu3 %vm256_vm2, %v5074_v54 }
 0x1a2   :  { %356 = vmatpush.msrb.mxu1 %v163_v39 }
 0x1a4   :  { %357 = vmatpush.msrb.mxu1 %v4763_v19 }
 0x1a6   :  { %358 = vmatpush.msrb.mxu1 %v191_v35 }
 0x1a8   :  { %359 = vmatpush.msrb.mxu1 %v5010_v21 }
 0x1a9   :  { %4498 = vmatmul.msk.f32.gmra.mxu3 %vm256_vm2, %v5085_v58  ;;  %4500 = vmatmul.msk.f32.vlgmr.msrb.gmra.mxu1 %vm256_vm2, %v5074_v54 }
 0x1af   :  { %4770 = vrot.lane.b32.xlu2 %v4769_v22, %s4803_s0 }
 0x1b1   :  { %4499 = vmatmul.msk.f32.gmra.mxu3 %vm256_vm2, %v5094_v60  ;;  %4501 = vmatmul.msk.f32.gmra.mxu1 %vm256_vm2, %v5085_v58 }
 0x1b9   :  { %4502 = vmatmul.msk.f32.gmra.mxu1 %vm256_vm2, %v5094_v60  ;;  %v222_v21 = vpop.xlane.xlu0 %221 }
 0x1cc   :  { %v4766_v25 = vpop.permute.xlu0 %4765 }
 0x1cd   :  { %v4767_v26 = vunpack.i.l.bf16 %v4766_v25  ;;  %v4768_v29 = vunpack.i.h.bf16 %v4766_v25 }
 0x1ce   :  { %v213_v20 = vpop.xlane.xlu2 %212 }
 0x1cf   :  { %303 = vmatpush.msrb.mxu0 %v213_v20  ;;  %4747 = vmatpush.msra.mxu2 %v213_v20 }
 0x1d1   :  { %304 = vmatpush.msrb.mxu0 %v157_v57  ;;  %4748 = vmatpush.msra.mxu2 %v157_v57  ;;  %v5270_v57 = vld [vmem:[%s8431_s3 + $0x8] sm:$0xff] }
 0x1d3   :  { %305 = vmatpush.msrb.mxu0 %v4758_v23  ;;  %4749 = vmatpush.msra.mxu2 %v4758_v23 }
 0x1d5   :  { %306 = vmatpush.msrb.mxu0 %v5050_v42  ;;  %4750 = vmatpush.msra.mxu2 %v5050_v42 }
 0x1d7   :  { %307 = vmatpush.msrb.mxu0 %v4999_v18  ;;  %4751 = vmatpush.msra.mxu2 %v4999_v18  ;;  %v169_v18 = vpop.xlane.xlu2 %168 }
 0x1d8   :  { %4495 = vmatmul.msk.f32.vlgmr.msra.gmra.mxu2 %vm256_vm2, %v5085_v58  ;;  %4494 = vmatmul.msk.f32.vlgmr.msrb.gmra.mxu0 %vm256_vm2, %v5074_v54 }
 0x1d9   :  { %381 = vmatpush.msrb.mxu2 %v222_v21  ;;  %578 = vmatpush.msra.mxu0 %v5153_v36 }
 0x1db   :  { %382 = vmatpush.msrb.mxu2 %v5061_v49  ;;  %836 = vmatpush.msrb.mxu0 %v4982_v14 }
 0x1dd   :  { %383 = vmatpush.msrb.mxu2 %v4767_v26 }
 0x1df   :  { %384 = vmatpush.msrb.mxu2 %v5046_v40  ;;  %v175_v27 = vpop.xlane.xlu2 %174 }
 0x1e0   :  { %4496 = vmatmul.msk.f32.gmra.mxu2 %vm256_vm2, %v5094_v60 }
 0x1e1   :  { %385 = vmatpush.msrb.mxu2 %v5018_v24 }
 0x1e8   :  { %4503 = vmatmul.msk.f32.vlgmr.msrb.gmra.mxu2 %vm256_vm2, %v5074_v54 }
 0x1f0   :  { %4504 = vmatmul.msk.f32.gmra.mxu2 %vm256_vm2, %v5085_v58 }
 0x1f7   :  { %v172_v24 = vpop.xlane.xlu0 %171 }
 0x1f8   :  { %4505 = vmatmul.msk.f32.gmra.mxu2 %vm256_vm2, %v5094_v60 }
 0x1fa   :  { %v225_v28 = vpop.xlane.xlu1 %224 }
 0x1fb   :  { %407 = vmatpush.msrb.mxu3 %v225_v28 }
 0x1fd   :  { %408 = vmatpush.msrb.mxu3 %v169_v18 }
 0x1ff   :  { %409 = vmatpush.msrb.mxu3 %v4768_v29 }
 0x201   :  { %410 = vmatpush.msrb.mxu3 %v5066_v52  ;;  %v5251_v52 = vld [vmem:[%s8431_s3 + $0x20] sm:$0xff] }
 0x202   :  { %v228_v30 = vpop.xlane.xlu2 %227 }
 0x203   :  { %411 = vmatpush.msrb.mxu3 %v5030_v31  ;;  %433 = vmatpush.msra.mxu1 %v228_v30 }
 0x204   :  { %4506 = vmatmul.msk.f32.vlgmr.msrb.gmra.mxu3 %vm256_vm2, %v5074_v54  ;;  %v283_v31 = vpop.f32.mrf.mxu1 }
 0x205   :  { %434 = vmatpush.msra.mxu1 %v172_v24  ;;  %513 = vmatpush.msra.mxu3 %v5144_v33 }
 0x206   :  { %4523 = vmatmul.msk.f32.vlgmr.msra.gmra.mxu0 %vm151_vm1, %v283_v31 }
 0x207   :  { %767 = vmatpush.msrb.mxu3 %v4961_v11  ;;  %v5165_v11 = vld [vmem:[%s8429_s2 + $0x10] sm:$0xff] }
 0x20a   :  { %v231_v32 = vpop.xlane.xlu2 %230 }
 0x20b   :  { %459 = vmatpush.msra.mxu2 %v231_v32 }
 0x20c   :  { %4507 = vmatmul.msk.f32.gmra.mxu3 %vm256_vm2, %v5085_v58  ;;  %v286_v40 = vpop.f32.mrf.mxu1 }
 0x20d   :  { %460 = vmatpush.msra.mxu2 %v175_v27 }
 0x212   :  { %v4771_v35 = vpop.permute.xlu2 %4770 }
 0x213   :  { %v4773_v38 = vunpack.i.h.bf16 %v4771_v35  ;;  %v4772_v39 = vunpack.i.l.bf16 %v4771_v35 }
 0x214   :  { %4508 = vmatmul.msk.f32.gmra.mxu3 %vm256_vm2, %v5094_v60 }
 0x215   :  { %435 = vmatpush.msra.mxu1 %v4772_v39  ;;  %461 = vmatpush.msra.mxu2 %v4773_v38 }
 0x217   :  { %436 = vmatpush.msra.mxu1 %v5078_v55  ;;  %462 = vmatpush.msra.mxu2 %v5089_v59  ;;  %v5277_v59 = vld [vmem:[%s8431_s3] sm:$0xff] }
 0x219   :  { %437 = vmatpush.msra.mxu1 %v5035_v34  ;;  %463 = vmatpush.msra.mxu2 %v5040_v37 }
 0x21a   :  { %4509 = vmatmul.msk.f32.vlgmr.msra.gmra.mxu1 %vm256_vm2, %v5074_v54  ;;  %4512 = vmatmul.msk.f32.vlgmr.msra.gmra.mxu2 %vm256_vm2, %v5074_v54 }
 0x21b   :  { %698 = vmatpush.msrb.mxu2 %v4939_v8  ;;  %643 = vmatpush.msrb.mxu1 %v5165_v11  ;;  %v5190_v8 = vld [vmem:[%s8430_s5] sm:$0xff] }
 0x21c   :  { %4515 = vmatmul.msk.f32.vlgmr.msra.gmra.mxu3 %vm151_vm1, %v286_v40 }
 0x21d   :  { %721 = vmatpush.msra.mxu2 %v4947_v9  ;;  %859 = vmatpush.msra.mxu1 %v4989_v15  ;;  %v289_v9 = vpop.f32.mrf.mxu1 }
 0x21e   :  { %813 = vmatpush.msra.mxu3 %v4975_v13  ;;  %v5199_v13 = vld [vmem:[%s8430_s5 + $0x8] sm:$0xff] }
 0x222   :  { %4510 = vmatmul.msk.f32.gmra.mxu1 %vm256_vm2, %v5085_v58  ;;  %4513 = vmatmul.msk.f32.gmra.mxu2 %vm256_vm2, %v5085_v58 }
 0x224   :  { %v335_v14 = vpop.f32.mrf.mxu3 }
 0x226   :  { %v361_v34 = vpop.f32.mrf.mxu1 }
 0x22a   :  { %4511 = vmatmul.msk.f32.gmra.mxu1 %vm256_vm2, %v5094_v60  ;;  %4514 = vmatmul.msk.f32.gmra.mxu2 %vm256_vm2, %v5094_v60 }
 0x22e   :  { %v364_v41 = vpop.f32.mrf.mxu1 }
 0x232   :  { %4539 = vmatmul.msk.f32.vlgmr.msrb.gmra.mxu2 %vm151_vm1, %v5190_v8  ;;  %4531 = vmatmul.msk.f32.vlgmr.msrb.gmra.mxu1 %vm151_vm1, %v289_v9 }
 0x233   :  { %744 = vmatpush.msrb.mxu2 %v4954_v10 }
 0x236   :  { %v367_v44 = vpop.f32.mrf.mxu1 }
 0x23a   :  { %4540 = vmatmul.msk.f32.gmra.mxu2 %vm151_vm1, %v5199_v13 }
 0x242   :  { %4541 = vmatmul.msk.f32.vlgmr.msra.gmra.mxu2 %vm151_vm1, %v5190_v8 }
 0x243   :  { %790 = vmatpush.msra.mxu2 %v4968_v12  ;;  %v338_v12 = vpop.f32.mrf.mxu3 }
 0x24a   :  { %4542 = vmatmul.msk.f32.gmra.mxu2 %vm151_vm1, %v5199_v13 }
 0x24b   :  { %v341_v42 = vpop.f32.mrf.mxu3 }
 0x252   :  { %4543 = vmatmul.msk.f32.vlgmr.msrb.gmra.mxu2 %vm151_vm1, %v5190_v8 }
 0x253   :  { %899 = vmatpush.msrb.mxu2 %v5232_v48 }
 0x255   :  { %v309_v10 = vpop.f32.mrf.mxu0  ;;  %900 = vmatpush.msrb.mxu2 %v5239_v50 }
 0x256   :  { %4524 = vmatmul.msk.f32.gmra.mxu0 %vm151_vm1, %v309_v10 }
 0x257   :  { %901 = vmatpush.msrb.mxu2 %v5244_v51 }
 0x259   :  { %902 = vmatpush.msrb.mxu2 %v5251_v52 }
 0x25a   :  { %4544 = vmatmul.msk.f32.gmra.mxu2 %vm151_vm1, %v5199_v13 }
 0x25b   :  { %v312_v15 = vpop.f32.mrf.mxu2  ;;  %903 = vmatpush.msrb.mxu2 %v5257_v53 }
 0x25c   :  { %4516 = vmatmul.msk.f32.gmra.mxu3 %vm151_vm1, %v312_v15 }
 0x25d   :  { %904 = vmatpush.msrb.mxu2 %v5264_v56 }
 0x25e   :  { %4525 = vmatmul.msk.f32.gmra.mxu0 %vm151_vm1, %v335_v14 }
 0x25f   :  { %905 = vmatpush.msrb.mxu2 %v5270_v57 }
 0x261   :  { %906 = vmatpush.msrb.mxu2 %v5277_v59 }
 0x262   :  { %4547 = vmatmul.msk.f32.vlgmr.msra.gmra.mxu2 %vm151_vm1, %v5190_v8 }
 0x263   :  { %v315_v37 = vpop.f32.mrf.mxu2 }
 0x264   :  { %4532 = vmatmul.msk.f32.gmra.mxu1 %vm151_vm1, %v315_v37  ;;  %4517 = vmatmul.msk.f32.gmra.mxu3 %vm151_vm1, %v338_v12 }
 0x266   :  { %4526 = vmatmul.msk.f32.gmra.mxu0 %vm151_vm1, %v361_v34 }
 0x26a   :  { %4548 = vmatmul.msk.f32.gmra.mxu2 %vm151_vm1, %v5199_v13 }
 0x26b   :  { %v387_v43 = vpop.f32.mrf.mxu2 }
 0x26c   :  { %4518 = vmatmul.msk.f32.gmra.mxu3 %vm151_vm1, %v364_v41  ;;  %4533 = vmatmul.msk.f32.gmra.mxu1 %vm151_vm1, %v341_v42 }
 0x26e   :  { %4527 = vmatmul.msk.f32.gmra.mxu0 %vm151_vm1, %v387_v43 }
 0x273   :  { %v390_v45 = vpop.f32.mrf.mxu2 }
 0x274   :  { %4519 = vmatmul.msk.f32.gmra.mxu3 %vm151_vm1, %v390_v45  ;;  %4534 = vmatmul.msk.f32.gmra.mxu1 %vm151_vm1, %v367_v44 }
 0x27b   :  { %v393_v46 = vpop.f32.mrf.mxu2 }
 0x27c   :  { %4535 = vmatmul.msk.f32.gmra.mxu1 %vm151_vm1, %v393_v46 }
 0x287   :  { %v413_v47 = vpop.f32.mrf.mxu3 }
 0x288   :  { %4528 = vmatmul.msk.f32.gmra.mxu0 %vm151_vm1, %v413_v47 }
 0x28f   :  { %v416_v49 = vpop.f32.mrf.mxu3 }
 0x290   :  { %4520 = vmatmul.msk.f32.gmra.mxu3 %vm151_vm1, %v416_v49 }
 0x297   :  { %v419_v54 = vpop.f32.mrf.mxu3  ;;  %v439_v55 = vpop.f32.mrf.mxu1 }
 0x298   :  { %4529 = vmatmul.msk.f32.gmra.mxu0 %vm151_vm1, %v439_v55  ;;  %4536 = vmatmul.msk.f32.gmra.mxu1 %vm151_vm1, %v419_v54 }
 0x29d   :  { %v465_v58 = vpop.f32.mrf.mxu2 }
 0x29f   :  { %v442_v60 = vpop.f32.mrf.mxu1 }
 0x2a0   :  { %4521 = vmatmul.msk.f32.gmra.mxu3 %vm151_vm1, %v442_v60  ;;  %4530 = vmatmul.msk.f32.gmra.mxu0 %vm151_vm1, %v465_v58 }
 0x2a5   :  { %v468_v61 = vpop.f32.mrf.mxu2 }
 0x2a7   :  { %v445_v62 = vpop.f32.mrf.mxu1 }
 0x2a8   :  { %4522 = vmatmul.msk.f32.gmra.mxu3 %vm151_vm1, %v468_v61  ;;  %4537 = vmatmul.msk.f32.gmra.mxu1 %vm151_vm1, %v445_v62 }
 0x2a9   :  { %4551 = vmatmul.msk.f32.vlgmr.msrb.gmra.mxu0 %vm151_vm1, %v5190_v8 }
 0x2ad   :  { %v471_v63 = vpop.f32.mrf.mxu2 }
 0x2af   :  { %v645_v22 = vpop.f32.mrf.mxu1 }
 0x2b0   :  { %4538 = vmatmul.msk.f32.gmra.mxu1 %vm151_vm1, %v471_v63  ;;  %4545 = vmatmul.msk.f32.vlgmr.msrb.gmra.mxu3 %vm151_vm1, %v5190_v8 }
 0x2b1   :  { %4552 = vmatmul.msk.f32.gmra.mxu0 %vm151_vm1, %v5199_v13  ;;  %990 = vmatpush.msrb.mxu3 %v4892_v0 }
 0x2b3   :  { %991 = vmatpush.msrb.mxu3 %v4897_v1 }
 0x2b5   :  { %v700_v16 = vpop.f32.mrf.mxu2  ;;  %992 = vmatpush.msrb.mxu3 %v4903_v2 }
 0x2b7   :  { %993 = vmatpush.msrb.mxu3 %v4909_v3 }
 0x2b8   :  { %4546 = vmatmul.msk.f32.gmra.mxu3 %vm151_vm1, %v5199_v13  ;;  %4553 = vmatmul.msk.f32.vlgmr.msra.gmra.mxu1 %vm151_vm1, %v5190_v8 }
 0x2b9   :  { %994 = vmatpush.msrb.mxu3 %v4915_v4  ;;  %v515_v4 = vpop.f32.mrf.mxu3 }
 0x2bb   :  { %995 = vmatpush.msrb.mxu3 %v4921_v5 }
 0x2bd   :  { %v703_v17 = vpop.f32.mrf.mxu2  ;;  %996 = vmatpush.msrb.mxu3 %v4927_v6 }
 0x2be   :  { %4555 = vmatmul.msk.f32.vlgmr.msrb.gmra.mxu2 %vm85_vm0, %v703_v17 }
 0x2bf   :  { %997 = vmatpush.msrb.mxu3 %v4933_v7  ;;  %v580_v7 = vpop.f32.mrf.mxu0 }
 0x2c0   :  { %4549 = vmatmul.msk.f32.vlgmr.msra.gmra.mxu3 %vm151_vm1, %v5190_v8  ;;  %4554 = vmatmul.msk.f32.gmra.mxu1 %vm151_vm1, %v5199_v13  ;;  %v581_v9 = vadd.f32 %v580_v7, %v515_v4 }
 0x2c2   :  { %v669_v10 = vadd.f32 %v645_v22, %v581_v9 }
 0x2c4   :  { %v932_v15 = vadd.f32 %v700_v16, %v669_v10 }
 0x2c5   :  { %v723_v0 = vpop.f32.mrf.mxu2 }
 0x2c8   :  { %4550 = vmatmul.msk.f32.gmra.mxu3 %vm151_vm1, %v5199_v13 }
 0x2cd   :  { %v726_v1 = vpop.f32.mrf.mxu2 }
 0x2ce   :  { %4556 = vmatmul.msk.f32.gmra.mxu2 %vm85_vm0, %v726_v1 }
 0x2d3   :  { %v583_v19 = vpop.f32.mrf.mxu0 }
 0x2d5   :  { %v746_v2 = vpop.f32.mrf.mxu2 }
 0x2db   :  { %v586_v21 = vpop.f32.mrf.mxu0 }
 0x2dd   :  { %v749_v3 = vpop.f32.mrf.mxu2 }
 0x2de   :  { %4557 = vmatmul.msk.f32.gmra.mxu2 %vm85_vm0, %v749_v3 }
 0x2df   :  { %v518_v5 = vpop.f32.mrf.mxu3 }
 0x2e0   :  { %v584_v43 = vadd.f32 %v583_v19, %v518_v5 }
 0x2e1   :  { %v648_v23 = vpop.f32.mrf.mxu1 }
 0x2e2   :  { %v670_v46 = vadd.f32 %v648_v23, %v584_v43 }
 0x2e3   :  { %v589_v18 = vpop.f32.mrf.mxu0 }
 0x2e4   :  { %v933_v47 = vadd.f32 %v723_v0, %v670_v46 }
 0x2e5   :  { %v792_v35 = vpop.f32.mrf.mxu2 }
 0x2e7   :  { %v521_v6 = vpop.f32.mrf.mxu3 }
 0x2e8   :  { %v587_v60 = vadd.f32 %v586_v21, %v521_v6 }
 0x2e9   :  { %v651_v26 = vpop.f32.mrf.mxu1 }
 0x2ea   :  { %v671_v62 = vadd.f32 %v651_v26, %v587_v60 }
 0x2eb   :  { %v592_v30 = vpop.f32.mrf.mxu0 }
 0x2ec   :  { %v934_v63 = vadd.f32 %v746_v2, %v671_v62 }
 0x2ed   :  { %v795_v8 = vpop.f32.mrf.mxu2 }
 0x2ef   :  { %v524_v20 = vpop.f32.mrf.mxu3 }
 0x2f0   :  { %v590_v0 = vadd.f32 %v589_v18, %v524_v20 }
 0x2f1   :  { %v654_v28 = vpop.f32.mrf.mxu1 }
 0x2f2   :  { %v672_v1 = vadd.f32 %v654_v28, %v590_v0 }
 0x2f7   :  { %v527_v25 = vpop.f32.mrf.mxu3 }
 0x2f8   :  { %v593_v3 = vadd.f32 %v592_v30, %v527_v25 }
 0x2f9   :  { %v657_v31 = vpop.f32.mrf.mxu1 }
 0x2fa   :  { %v673_v19 = vadd.f32 %v657_v31, %v593_v3 }
 0x2fc   :  { %v936_v6 = vadd.f32 %v792_v35, %v673_v19 }
 0x305   :  { %v595_v32 = vpop.f32.mrf.mxu0 }
 0x313   :  { %v530_v27 = vpop.f32.mrf.mxu3 }
 0x314   :  { %v596_v21 = vadd.f32 %v595_v32, %v530_v27 }
 0x315   :  { %v660_v39 = vpop.f32.mrf.mxu1  ;;  %v598_v40 = vpop.f32.mrf.mxu0 }
 0x316   :  { %v674_v20 = vadd.f32 %v660_v39, %v596_v21 }
 0x31d   :  { %v601_v34 = vpop.f32.mrf.mxu0 }
 0x323   :  { %v533_v29 = vpop.f32.mrf.mxu3 }
 0x324   :  { %v599_v25 = vadd.f32 %v598_v40, %v533_v29 }
 0x325   :  { %v663_v14 = vpop.f32.mrf.mxu1 }
 0x326   :  { %v838_v44 = vpop.f32.mrf.mxu0  ;;  %v675_v30 = vadd.f32 %v663_v14, %v599_v25 }
 0x328   :  { %v938_v31 = vadd.f32 %v838_v44, %v675_v30 }
 0x32b   :  { %v5312_v24 = vpop.f32.mrf.mxu3 }
 0x32c   :  { %v602_v35 = vadd.f32 %v601_v34, %v5312_v24 }
 0x32d   :  { %v666_v42 = vpop.f32.mrf.mxu1 }
 0x32e   :  { %v841_v49 = vpop.f32.mrf.mxu0  ;;  %v676_v39 = vadd.f32 %v666_v42, %v602_v35  ;;  %v5459_v35 = vld [vmem:[%s8432_s6 + $0x18] sm:$0xff] }
 0x333   :  { %v769_v38 = vpop.f32.mrf.mxu3 }
 0x334   :  { %v935_v4 = vadd.f32 %v769_v38, %v672_v1 }
 0x335   :  { %v861_v54 = vpop.f32.mrf.mxu1 }
 0x336   :  { %v939_v40 = vadd.f32 %v861_v54, %v676_v39 }
 0x33b   :  { %v772_v13 = vpop.f32.mrf.mxu3 }
 0x33c   :  { %4558 = vmatmul.msk.f32.gmra.mxu2 %vm85_vm0, %v772_v13 }
 0x33d   :  { %v864_v61 = vpop.f32.mrf.mxu1 }
 0x341   :  { %v908_v12 = vpop.f32.mrf.mxu2 }
 0x342   :  { %v5315_v37 = vadd.f32 %v932_v15, %v908_v12 }
 0x343   :  { %v815_v41 = vpop.f32.mrf.mxu3 }
 0x344   :  { %4559 = vmatmul.msk.f32.gmra.mxu2 %vm85_vm0, %v795_v8  ;;  %4563 = vmatmul.msk.f32.vlgmr.msrb.gmra.mxu3 %vm85_vm0, %v5315_v37  ;;  %v937_v26 = vadd.f32 %v815_v41, %v674_v20  ;;  %v5430_v20 = vld [vmem:[%s8432_s6 + $0x8] sm:$0xff] }
 0x34b   :  { %v818_v45 = vpop.f32.mrf.mxu3 }
 0x34c   :  { %4560 = vmatmul.msk.f32.gmra.mxu2 %vm85_vm0, %v818_v45 }
 0x351   :  { %v911_v55 = vpop.f32.mrf.mxu2 }
 0x352   :  { %v5321_v58 = vadd.f32 %v933_v47, %v911_v55 }
 0x354   :  { %4561 = vmatmul.msk.f32.gmra.mxu2 %vm85_vm0, %v841_v49  ;;  %4564 = vmatmul.msk.f32.gmra.mxu3 %vm85_vm0, %v5321_v58 }
 0x35c   :  { %4562 = vmatmul.msk.f32.gmra.mxu2 %vm85_vm0, %v864_v61 }
 0x361   :  { %v914_v16 = vpop.f32.mrf.mxu2 }
 0x362   :  { %v5327_v17 = vadd.f32 %v934_v63, %v914_v16 }
 0x364   :  { %4565 = vmatmul.msk.f32.gmra.mxu3 %vm85_vm0, %v5327_v17 }
 0x3bf   :  { %v917_v5 = vpop.f32.mrf.mxu2 }
 0x3c0   :  { %v5331_v7 = vadd.f32 %v935_v4, %v917_v5  ;;  %v5417_v5 = vld [vmem:[%s8432_s6] sm:$0xff] }
 0x3c2   :  { %4566 = vmatmul.msk.f32.gmra.mxu3 %vm85_vm0, %v5331_v7 }
 0x3c7   :  { %v920_v22 = vpop.f32.mrf.mxu2  ;;  %v5335_v2 = vpop.f32.mrf.mxu3 }
 0x3c8   :  { %v5337_v23 = vadd.f32 %v936_v6, %v920_v22  ;;  %1055 = vrot.lane.b32.xlu1 %v5335_v2, %s4802_s26  ;;  %v1023_v10 = vsel %vm151_vm1, %v5335_v2, 0.0 }
 0x3ca   :  { %4567 = vmatmul.msk.f32.gmra.mxu3 %vm85_vm0, %v5337_v23 }
 0x3cf   :  { %v923_v18 = vpop.f32.mrf.mxu2 }
 0x3d0   :  { %v5343_v28 = vadd.f32 %v937_v26, %v923_v18  ;;  %v5442_v26 = vld [vmem:[%s8432_s6 + $0x10] sm:$0xff] }
 0x3d2   :  { %4568 = vmatmul.msk.f32.gmra.mxu3 %vm85_vm0, %v5343_v28 }
 0x3d7   :  { %v926_v27 = vpop.f32.mrf.mxu2  ;;  %v5347_v32 = vpop.f32.mrf.mxu3 }
 0x3d8   :  { %v5350_v38 = vadd.f32 %v938_v31, %v926_v27  ;;  %1057 = vrot.lane.b32.xlu0 %v5347_v32, %s4802_s26  ;;  %v1026_v29 = vsel %vm151_vm1, %v5347_v32, 0.0  ;;  %v4774_v8 = vpack.i.bf16 %v5347_v32, %v5335_v2 }
 0x3d9   :  { %1027 = vadd.xlane.f32.xlu2 %v1026_v29 }
 0x3da   :  { %4569 = vmatmul.msk.f32.gmra.mxu3 %vm85_vm0, %v5350_v38 }
 0x3df   :  { %v929_v9 = vpop.f32.mrf.mxu2 }
 0x3e0   :  { %v5360_v13 = vadd.f32 %v939_v40, %v929_v9  ;;  %4775 = vrot.lane.b32.xlu0 %v4774_v8, %s4803_s0  ;;  %v5468_v8 = vld [vmem:[%s8432_s6 + $0x20] sm:$0xff] }
 0x3e2   :  { %4570 = vmatmul.msk.f32.gmra.mxu3 %vm85_vm0, %v5360_v13 }
 0x3e7   :  { %v5365_v24 = vpop.f32.mrf.mxu3 }
 0x3e8   :  { %1059 = vrot.lane.b32.xlu0 %v5365_v24, %s4802_s26  ;;  %v1029_v54 = vsel %vm151_vm1, %v5365_v24, 0.0 }
 0x3f2   :  { %1024 = vadd.xlane.f32.xlu1 %v1023_v10 }
 0x43a   :  { %v1056_v14 = vpop.permute.xlu1 %1055 }
 0x43b   :  { %v1079_v15 = vsel %vm151_vm1, %v1056_v14, 0.0 }
 0x43c   :  { %1080 = vadd.xlane.f32.xlu2 %v1079_v15 }
 0x445   :  { %v5372_v34 = vpop.f32.mrf.mxu3 }
 0x446   :  { %1061 = vrot.lane.b32.xlu1 %v5372_v34, %s4802_s26  ;;  %v4779_v43 = vpack.i.bf16 %v5372_v34, %v5365_v24  ;;  %v1032_v45 = vsel %vm151_vm1, %v5372_v34, 0.0 }
 0x44a   :  { %v1058_v12 = vpop.permute.xlu0 %1057 }
 0x44b   :  { %v1082_v41 = vsel %vm151_vm1, %v1058_v12, 0.0 }
 0x44c   :  { %1083 = vadd.xlane.f32.xlu0 %v1082_v41  ;;  %v1028_v63 = vpop.xlane.xlu2 %1027 }
 0x44d   :  { %v5377_v42 = vpop.f32.mrf.mxu3 }
 0x44e   :  { %v1035_v47 = vsel %vm151_vm1, %v5377_v42, 0.0 }
 0x452   :  { %v4776_v46 = vpop.permute.xlu0 %4775 }
 0x453   :  { %v4777_v1 = vunpack.i.l.bf16 %v4776_v46 }
 0x454   :  { %1063 = vrot.lane.b32.xlu2 %v5377_v42, %s4802_s26 }
 0x455   :  { %v5384_v44 = vpop.f32.mrf.mxu3 }
 0x456   :  { %v4784_v61 = vpack.i.bf16 %v5384_v44, %v5377_v42  ;;  %v1038_v22 = vsel %vm151_vm1, %v5384_v44, 0.0 }
 0x45a   :  { %v5392_v49 = vpop.permute.xlu0 %1059 }
 0x45b   :  { %v1085_v55 = vsel %vm151_vm1, %v5392_v49, 0.0 }
 0x45d   :  { %v5398_v60 = vpop.f32.mrf.mxu3 }
 0x45e   :  { %v1041_v25 = vsel %vm151_vm1, %v5398_v60, 0.0 }
 0x460   :  { %4780 = vrot.lane.b32.xlu0 %v4779_v43, %s4803_s0 }
 0x465   :  { %v5405_v62 = vpop.f32.mrf.mxu3  ;;  %v1025_v0 = vpop.xlane.xlu1 %1024 }
 0x468   :  { %1065 = vrot.lane.b32.xlu0 %v5384_v44, %s4802_s26 }
 0x470   :  { %1033 = vadd.xlane.f32.xlu1 %v1032_v45 }
 0x478   :  { %1036 = vadd.xlane.f32.xlu1 %v1035_v47 }
 0x47d   :  { %1030 = vadd.xlane.f32.xlu2 %v1029_v54 }
 0x480   :  { %1086 = vadd.xlane.f32.xlu1 %v1085_v55 }
 0x495   :  { %1067 = vrot.lane.b32.xlu2 %v5398_v60, %s4802_s26 }
 0x499   :  { %4785 = vrot.lane.b32.xlu1 %v4784_v61, %s4803_s0 }
 0x49d   :  { %1069 = vrot.lane.b32.xlu2 %v5405_v62, %s4802_s26 }
 0x4af   :  { %v1081_v16 = vpop.xlane.xlu2 %1080 }
 0x4b0   :  { %1156 = vmatpush.msra.mxu0 %v1081_v16 }
 0x4b2   :  { %1157 = vmatpush.msra.mxu0 %v1025_v0 }
 0x4b4   :  { %1158 = vmatpush.msra.mxu0 %v4777_v1 }
 0x4b6   :  { %1159 = vmatpush.msra.mxu0 %v1056_v14  ;;  %v5483_v14 = vld [vmem:[%s8432_s6 + $0x28] sm:$0xff] }
 0x4b7   :  { %v5421_v19 = vpop.permute.xlu2 %1063 }
 0x4b8   :  { %1160 = vmatpush.msra.mxu0 %v5335_v2  ;;  %v5410_v3 = vpop.permute.xlu1 %1061  ;;  %v4778_v2 = vunpack.i.h.bf16 %v4776_v46  ;;  %v1091_v21 = vsel %vm151_vm1, %v5421_v19, 0.0 }
 0x4b9   :  { %v1088_v4 = vsel %vm151_vm1, %v5410_v3, 0.0  ;;  %4571 = vmatmul.msk.f32.vlgmr.msra.gmra.mxu0 %vm256_vm2, %v5417_v5 }
 0x4ba   :  { %1089 = vadd.xlane.f32.xlu0 %v1088_v4 }
 0x4bf   :  { %v1084_v6 = vpop.xlane.xlu0 %1083 }
 0x4c0   :  { %1191 = vmatpush.msrb.mxu1 %v1084_v6 }
 0x4c1   :  { %4572 = vmatmul.msk.f32.gmra.mxu0 %vm256_vm2, %v5430_v20 }
 0x4c2   :  { %1192 = vmatpush.msrb.mxu1 %v1028_v63  ;;  %1039 = vadd.xlane.f32.xlu0 %v1038_v22 }
 0x4c3   :  { %1092 = vadd.xlane.f32.xlu1 %v1091_v21 }
 0x4c4   :  { %1193 = vmatpush.msrb.mxu1 %v4778_v2  ;;  %v5645_v2 = vld [vmem:[%s8433_s7 + $0x18] sm:$0xff] }
 0x4c6   :  { %1194 = vmatpush.msrb.mxu1 %v1058_v12 }
 0x4c8   :  { %1195 = vmatpush.msrb.mxu1 %v5347_v32 }
 0x4c9   :  { %4577 = vmatmul.msk.f32.vlgmr.msrb.gmra.mxu1 %vm256_vm2, %v5417_v5  ;;  %4573 = vmatmul.msk.f32.gmra.mxu0 %vm256_vm2, %v5442_v26 }
 0x4ca   :  { %1042 = vadd.xlane.f32.xlu0 %v1041_v25 }
 0x4d1   :  { %4578 = vmatmul.msk.f32.gmra.mxu1 %vm256_vm2, %v5430_v20  ;;  %4574 = vmatmul.msk.f32.gmra.mxu0 %vm256_vm2, %v5459_v35 }
 0x4d2   :  { %v4781_v18 = vpop.permute.xlu0 %4780 }
 0x4d3   :  { %v4782_v40 = vunpack.i.l.bf16 %v4781_v18  ;;  %v4783_v45 = vunpack.i.h.bf16 %v4781_v18 }
 0x4d9   :  { %4579 = vmatmul.msk.f32.gmra.mxu1 %vm256_vm2, %v5442_v26  ;;  %4575 = vmatmul.msk.f32.gmra.mxu0 %vm256_vm2, %v5468_v8 }
 0x4da   :  { %v5450_v30 = vpop.permute.xlu0 %1065 }
 0x4db   :  { %v1094_v31 = vsel %vm151_vm1, %v5450_v30, 0.0 }
 0x4dc   :  { %1115 = vrot.lane.b32.xlu1 %v5398_v60, %s4803_s0  ;;  %1095 = vadd.xlane.f32.xlu2 %v1094_v31 }
 0x4e1   :  { %4580 = vmatmul.msk.f32.gmra.mxu1 %vm256_vm2, %v5459_v35  ;;  %4576 = vmatmul.msk.f32.gmra.mxu0 %vm256_vm2, %v5483_v14 }
 0x4e3   :  { %v1034_v27 = vpop.xlane.xlu1 %1033 }
 0x4e9   :  { %4581 = vmatmul.msk.f32.gmra.mxu1 %vm256_vm2, %v5468_v8 }
 0x4eb   :  { %v1037_v32 = vpop.xlane.xlu1 %1036 }
 0x4f0   :  { %v1031_v29 = vpop.xlane.xlu2 %1030 }
 0x4f1   :  { %4582 = vmatmul.msk.f32.gmra.mxu1 %vm256_vm2, %v5483_v14 }
 0x4f3   :  { %v1087_v39 = vpop.xlane.xlu1 %1086 }
 0x4f4   :  { %1226 = vmatpush.msrb.mxu0 %v1087_v39  ;;  %v4794_v39 = vld [vmem:[%s8445_s23 + $0x38] sm:$0xff] }
 0x4f6   :  { %1227 = vmatpush.msrb.mxu0 %v1031_v29 }
 0x4f8   :  { %1228 = vmatpush.msrb.mxu0 %v4782_v40  ;;  %v5474_v9 = vpop.permute.xlu2 %1067  ;;  %v4795_v40 = vld [vmem:[%s8445_s23 + $0x30] sm:$0xff] }
 0x4f9   :  { %v1097_v10 = vsel %vm151_vm1, %v5474_v9, 0.0 }
 0x4fa   :  { %1229 = vmatpush.msrb.mxu0 %v5392_v49  ;;  %1098 = vadd.xlane.f32.xlu0 %v1097_v10 }
 0x4fc   :  { %1230 = vmatpush.msrb.mxu0 %v5365_v24  ;;  %v1044_v24 = vsel %vm151_vm1, %v5405_v62, 0.0 }
 0x4fd   :  { %4583 = vmatmul.msk.f32.vlgmr.msrb.gmra.mxu0 %vm256_vm2, %v5417_v5 }
 0x500   :  { %v5489_v15 = vpop.permute.xlu2 %1069 }
 0x501   :  { %v1100_v12 = vsel %vm151_vm1, %v5489_v15, 0.0 }
 0x502   :  { %1101 = vadd.xlane.f32.xlu0 %v1100_v12 }
 0x505   :  { %4584 = vmatmul.msk.f32.gmra.mxu0 %vm256_vm2, %v5430_v20 }
 0x506   :  { %1045 = vadd.xlane.f32.xlu1 %v1044_v24  ;;  %v4799_v24 = vld [vmem:[%s8445_s23 + $0x10] sm:$0xff] }
 0x50b   :  { %v4786_v43 = vpop.permute.xlu1 %4785 }
 0x50c   :  { %v4787_v47 = vunpack.i.l.bf16 %v4786_v43  ;;  %v4788_v54 = vunpack.i.h.bf16 %v4786_v43  ;;  %v4800_v43 = vld [vmem:[%s8445_s23 + $0x8] sm:$0xff] }
 0x50d   :  { %4585 = vmatmul.msk.f32.gmra.mxu0 %vm256_vm2, %v5442_v26 }
 0x515   :  { %4586 = vmatmul.msk.f32.gmra.mxu0 %vm256_vm2, %v5459_v35 }
 0x516   :  { %1117 = vrot.lane.b32.xlu0 %v5405_v62, %s4803_s0 }
 0x51d   :  { %4587 = vmatmul.msk.f32.gmra.mxu0 %vm256_vm2, %v5468_v8 }
 0x525   :  { %4588 = vmatmul.msk.f32.gmra.mxu0 %vm256_vm2, %v5483_v14 }
 0x52d   :  { %v1090_v41 = vpop.xlane.xlu0 %1089 }
 0x52e   :  { %1261 = vmatpush.msra.mxu1 %v1090_v41 }
 0x530   :  { %1262 = vmatpush.msra.mxu1 %v1034_v27 }
 0x532   :  { %1263 = vmatpush.msra.mxu1 %v4783_v45  ;;  %v4801_v45 = vld [vmem:[%s8445_s23] sm:$0xff] }
 0x534   :  { %1264 = vmatpush.msra.mxu1 %v5410_v3 }
 0x536   :  { %v1093_v46 = vpop.xlane.xlu1 %1092  ;;  %1265 = vmatpush.msra.mxu1 %v5372_v34  ;;  %v1162_v49 = vpop.f32.mrf.mxu0 }
 0x537   :  { %1296 = vmatpush.msra.mxu2 %v1093_v46  ;;  %4589 = vmatmul.msk.f32.vlgmr.msra.gmra.mxu1 %vm256_vm2, %v5417_v5 }
 0x539   :  { %1297 = vmatpush.msra.mxu2 %v1037_v32 }
 0x53b   :  { %1298 = vmatpush.msra.mxu2 %v4787_v47 }
 0x53d   :  { %1299 = vmatpush.msra.mxu2 %v5421_v19 }
 0x53f   :  { %1300 = vmatpush.msra.mxu2 %v5377_v42  ;;  %4590 = vmatmul.msk.f32.gmra.mxu1 %vm256_vm2, %v5430_v20  ;;  %v1040_v42 = vpop.xlane.xlu0 %1039 }
 0x540   :  { %4595 = vmatmul.msk.f32.vlgmr.msra.gmra.mxu2 %vm256_vm2, %v5417_v5 }
 0x541   :  { %1488 = vmatpush.msrb.mxu2 %v5144_v33  ;;  %v1165_v33 = vpop.f32.mrf.mxu0 }
 0x543   :  { %1894 = vmatpush.msra.mxu2 %v5331_v7 }
 0x547   :  { %4591 = vmatmul.msk.f32.gmra.mxu1 %vm256_vm2, %v5442_v26  ;;  %v1043_v7 = vpop.xlane.xlu0 %1042 }
 0x548   :  { %4596 = vmatmul.msk.f32.gmra.mxu2 %vm256_vm2, %v5430_v20 }
 0x549   :  { %v1168_v55 = vpop.f32.mrf.mxu0 }
 0x54e   :  { %v1116_v61 = vpop.permute.xlu1 %1115 }
 0x54f   :  { %v1096_v34 = vpop.xlane.xlu2 %1095  ;;  %4592 = vmatmul.msk.f32.gmra.mxu1 %vm256_vm2, %v5459_v35 }
 0x550   :  { %4597 = vmatmul.msk.f32.gmra.mxu2 %vm256_vm2, %v5442_v26  ;;  %1331 = vmatpush.msra.mxu3 %v1096_v34 }
 0x552   :  { %1332 = vmatpush.msra.mxu3 %v1040_v42 }
 0x554   :  { %1333 = vmatpush.msra.mxu3 %v4788_v54 }
 0x556   :  { %1334 = vmatpush.msra.mxu3 %v5450_v30 }
 0x557   :  { %4593 = vmatmul.msk.f32.gmra.mxu1 %vm256_vm2, %v5468_v8 }
 0x558   :  { %4598 = vmatmul.msk.f32.gmra.mxu2 %vm256_vm2, %v5459_v35  ;;  %1335 = vmatpush.msra.mxu3 %v5384_v44  ;;  %v1171_v44 = vpop.f32.mrf.mxu0 }
 0x559   :  { %4601 = vmatmul.msk.f32.vlgmr.msra.gmra.mxu3 %vm256_vm2, %v5417_v5 }
 0x55a   :  { %1601 = vmatpush.msrb.mxu3 %v5153_v36  ;;  %v1197_v36 = vpop.f32.mrf.mxu1 }
 0x55c   :  { %1923 = vmatpush.msra.mxu3 %v5337_v23 }
 0x55f   :  { %4594 = vmatmul.msk.f32.gmra.mxu1 %vm256_vm2, %v5483_v14 }
 0x560   :  { %4599 = vmatmul.msk.f32.gmra.mxu2 %vm256_vm2, %v5468_v8  ;;  %v1174_v0 = vpop.f32.mrf.mxu0 }
 0x561   :  { %4602 = vmatmul.msk.f32.gmra.mxu3 %vm256_vm2, %v5430_v20 }
 0x562   :  { %v1200_v63 = vpop.f32.mrf.mxu1 }
 0x568   :  { %4600 = vmatmul.msk.f32.gmra.mxu2 %vm256_vm2, %v5483_v14  ;;  %v1177_v3 = vpop.f32.mrf.mxu0 }
 0x569   :  { %4603 = vmatmul.msk.f32.gmra.mxu3 %vm256_vm2, %v5442_v26 }
 0x56a   :  { %v1203_v1 = vpop.f32.mrf.mxu1 }
 0x56d   :  { %v1099_v23 = vpop.xlane.xlu0 %1098 }
 0x56e   :  { %1366 = vmatpush.msra.mxu0 %v1099_v23 }
 0x570   :  { %1367 = vmatpush.msra.mxu0 %v1043_v7  ;;  %4619 = vmatmul.msk.f32.vlgmr.msrb.gmra.mxu2 %vm151_vm1, %v1168_v55 }
 0x571   :  { %1981 = vmatpush.msrb.mxu2 %v5350_v38  ;;  %4604 = vmatmul.msk.f32.gmra.mxu3 %vm256_vm2, %v5459_v35 }
 0x572   :  { %1368 = vmatpush.msra.mxu0 %v1116_v61 }
 0x574   :  { %1369 = vmatpush.msra.mxu0 %v5474_v9 }
 0x575   :  { %v1102_v16 = vpop.xlane.xlu0 %1101 }
 0x576   :  { %1370 = vmatpush.msra.mxu0 %v5398_v60  ;;  %1401 = vmatpush.msrb.mxu1 %v1102_v16 }
 0x577   :  { %4607 = vmatmul.msk.f32.vlgmr.msra.gmra.mxu0 %vm256_vm2, %v5417_v5 }
 0x578   :  { %4620 = vmatmul.msk.f32.gmra.mxu2 %vm151_vm1, %v1171_v44  ;;  %1714 = vmatpush.msrb.mxu0 %v5165_v11 }
 0x579   :  { %4605 = vmatmul.msk.f32.gmra.mxu3 %vm256_vm2, %v5468_v8  ;;  %v1046_v38 = vpop.xlane.xlu1 %1045 }
 0x57a   :  { %2080 = vmatpush.msra.mxu0 %v5232_v48  ;;  %1402 = vmatpush.msrb.mxu1 %v1046_v38  ;;  %v1232_v11 = vpop.f32.mrf.mxu0  ;;  %v1206_v48 = vpop.f32.mrf.mxu1 }
 0x57c   :  { %2081 = vmatpush.msra.mxu0 %v5239_v50 }
 0x57e   :  { %2082 = vmatpush.msra.mxu0 %v5244_v51 }
 0x57f   :  { %4608 = vmatmul.msk.f32.gmra.mxu0 %vm256_vm2, %v5430_v20 }
 0x580   :  { %4621 = vmatmul.msk.f32.gmra.mxu2 %vm151_vm1, %v1203_v1  ;;  %2083 = vmatpush.msra.mxu0 %v5251_v52 }
 0x581   :  { %4606 = vmatmul.msk.f32.gmra.mxu3 %vm256_vm2, %v5483_v14 }
 0x582   :  { %2084 = vmatpush.msra.mxu0 %v5257_v53  ;;  %v1235_v51 = vpop.f32.mrf.mxu0 }
 0x584   :  { %2085 = vmatpush.msra.mxu0 %v5264_v56  ;;  %v1209_v56 = vpop.f32.mrf.mxu1 }
 0x586   :  { %2086 = vmatpush.msra.mxu0 %v5270_v57 }
 0x587   :  { %4609 = vmatmul.msk.f32.gmra.mxu0 %vm256_vm2, %v5442_v26 }
 0x588   :  { %v1118_v50 = vpop.permute.xlu0 %1117  ;;  %4622 = vmatmul.msk.f32.gmra.mxu2 %vm151_vm1, %v1206_v48  ;;  %2087 = vmatpush.msra.mxu0 %v5277_v59 }
 0x589   :  { %1403 = vmatpush.msrb.mxu1 %v1118_v50  ;;  %4635 = vmatmul.msk.f32.vlgmr.msrb.gmra.mxu3 %vm151_vm1, %v1162_v49 }
 0x58a   :  { %2010 = vmatpush.msrb.mxu3 %v5360_v13  ;;  %v1238_v52 = vpop.f32.mrf.mxu0 }
 0x58b   :  { %1404 = vmatpush.msrb.mxu1 %v5489_v15  ;;  %v4798_v15 = vld [vmem:[%s8445_s23 + $0x18] sm:$0xff] }
 0x58c   :  { %v1212_v57 = vpop.f32.mrf.mxu1 }
 0x58d   :  { %1405 = vmatpush.msrb.mxu1 %v5405_v62  ;;  %v5625_v62 = vld [vmem:[%s8433_s7 + $0x8] sm:$0xff] }
 0x58e   :  { %4613 = vmatmul.msk.f32.vlgmr.msrb.gmra.mxu1 %vm256_vm2, %v5417_v5  ;;  %v5635_v5 = vld [vmem:[%s8433_s7 + $0x10] sm:$0xff] }
 0x58f   :  { %1807 = vmatpush.msra.mxu1 %v5315_v37  ;;  %4610 = vmatmul.msk.f32.gmra.mxu0 %vm256_vm2, %v5459_v35  ;;  %v5615_v37 = vld [vmem:[%s8433_s7] sm:$0xff] }
 0x590   :  { %4623 = vmatmul.msk.f32.gmra.mxu2 %vm151_vm1, %v1238_v52 }
 0x591   :  { %1836 = vmatpush.msrb.mxu1 %v5321_v58  ;;  %4636 = vmatmul.msk.f32.gmra.mxu3 %vm151_vm1, %v1165_v33 }
 0x592   :  { %v1241_v53 = vpop.f32.mrf.mxu0 }
 0x596   :  { %4614 = vmatmul.msk.f32.gmra.mxu1 %vm256_vm2, %v5430_v20 }
 0x597   :  { %4611 = vmatmul.msk.f32.gmra.mxu0 %vm256_vm2, %v5468_v8 }
 0x598   :  { %4624 = vmatmul.msk.f32.gmra.mxu2 %vm151_vm1, %v1241_v53 }
 0x599   :  { %4637 = vmatmul.msk.f32.gmra.mxu3 %vm151_vm1, %v1197_v36 }
 0x59a   :  { %v1244_v13 = vpop.f32.mrf.mxu0 }
 0x59e   :  { %4615 = vmatmul.msk.f32.gmra.mxu1 %vm256_vm2, %v5442_v26 }
 0x59f   :  { %4612 = vmatmul.msk.f32.gmra.mxu0 %vm256_vm2, %v5483_v14 }
 0x5a1   :  { %4638 = vmatmul.msk.f32.gmra.mxu3 %vm151_vm1, %v1200_v63 }
 0x5a2   :  { %v1247_v19 = vpop.f32.mrf.mxu0 }
 0x5a6   :  { %4616 = vmatmul.msk.f32.gmra.mxu1 %vm256_vm2, %v5459_v35 }
 0x5a7   :  { %4651 = vmatmul.msk.f32.vlgmr.msrb.gmra.mxu0 %vm151_vm1, %v1174_v0 }
 0x5a9   :  { %4639 = vmatmul.msk.f32.gmra.mxu3 %vm151_vm1, %v1232_v11 }
 0x5ae   :  { %4617 = vmatmul.msk.f32.gmra.mxu1 %vm256_vm2, %v5468_v8  ;;  %v4796_v8 = vld [vmem:[%s8445_s23 + $0x28] sm:$0xff] }
 0x5af   :  { %4652 = vmatmul.msk.f32.gmra.mxu0 %vm151_vm1, %v1177_v3 }
 0x5b1   :  { %4640 = vmatmul.msk.f32.gmra.mxu3 %vm151_vm1, %v1235_v51 }
 0x5b4   :  { %v1267_v59 = vpop.f32.mrf.mxu1 }
 0x5b6   :  { %4618 = vmatmul.msk.f32.gmra.mxu1 %vm256_vm2, %v5483_v14  ;;  %v4797_v14 = vld [vmem:[%s8445_s23 + $0x20] sm:$0xff] }
 0x5b7   :  { %4653 = vmatmul.msk.f32.gmra.mxu0 %vm151_vm1, %v1209_v56 }
 0x5b9   :  { %4641 = vmatmul.msk.f32.gmra.mxu3 %vm151_vm1, %v1267_v59 }
 0x5bc   :  { %v1270_v58 = vpop.f32.mrf.mxu1 }
 0x5be   :  { %4667 = vmatmul.msk.f32.vlgmr.msra.gmra.mxu1 %vm151_vm1, %v5615_v37 }
 0x5bf   :  { %1865 = vmatpush.msra.mxu1 %v5327_v17  ;;  %4654 = vmatmul.msk.f32.gmra.mxu0 %vm151_vm1, %v1212_v57 }
 0x5c1   :  { %4642 = vmatmul.msk.f32.gmra.mxu3 %vm151_vm1, %v1270_v58 }
 0x5c3   :  { %v1302_v60 = vpop.f32.mrf.mxu2 }
 0x5c4   :  { %v1273_v4 = vpop.f32.mrf.mxu1 }
 0x5c5   :  { %4625 = vmatmul.msk.f32.gmra.mxu2 %vm151_vm1, %v1273_v4 }
 0x5c6   :  { %4668 = vmatmul.msk.f32.gmra.mxu1 %vm151_vm1, %v5625_v62 }
 0x5c7   :  { %4655 = vmatmul.msk.f32.gmra.mxu0 %vm151_vm1, %v1244_v13 }
 0x5c9   :  { %4643 = vmatmul.msk.f32.gmra.mxu3 %vm151_vm1, %v1302_v60 }
 0x5cb   :  { %v1305_v17 = vpop.f32.mrf.mxu2 }
 0x5cc   :  { %v1276_v6 = vpop.f32.mrf.mxu1 }
 0x5cd   :  { %4626 = vmatmul.msk.f32.gmra.mxu2 %vm151_vm1, %v1276_v6 }
 0x5ce   :  { %4669 = vmatmul.msk.f32.gmra.mxu1 %vm151_vm1, %v5635_v5 }
 0x5cf   :  { %4656 = vmatmul.msk.f32.gmra.mxu0 %vm151_vm1, %v1247_v19 }
 0x5d1   :  { %4644 = vmatmul.msk.f32.gmra.mxu3 %vm151_vm1, %v1305_v17 }
 0x5d3   :  { %v1308_v22 = vpop.f32.mrf.mxu2 }
 0x5d4   :  { %v1279_v21 = vpop.f32.mrf.mxu1 }
 0x5d5   :  { %4627 = vmatmul.msk.f32.gmra.mxu2 %vm151_vm1, %v1308_v22 }
 0x5d6   :  { %4670 = vmatmul.msk.f32.gmra.mxu1 %vm151_vm1, %v5645_v2 }
 0x5d7   :  { %4657 = vmatmul.msk.f32.gmra.mxu0 %vm151_vm1, %v1279_v21 }
 0x5db   :  { %v1311_v20 = vpop.f32.mrf.mxu2 }
 0x5dc   :  { %v1337_v25 = vpop.f32.mrf.mxu3  ;;  %v1282_v26 = vpop.f32.mrf.mxu1 }
 0x5dd   :  { %4628 = vmatmul.msk.f32.gmra.mxu2 %vm151_vm1, %v1311_v20  ;;  %4645 = vmatmul.msk.f32.gmra.mxu3 %vm151_vm1, %v1337_v25 }
 0x5de   :  { %4671 = vmatmul.msk.f32.vlgmr.msrb.gmra.mxu1 %vm151_vm1, %v5615_v37 }
 0x5df   :  { %1952 = vmatpush.msrb.mxu1 %v5343_v28  ;;  %4658 = vmatmul.msk.f32.gmra.mxu0 %vm151_vm1, %v1282_v26 }
 0x5e3   :  { %v1314_v18 = vpop.f32.mrf.mxu2 }
 0x5e4   :  { %v1340_v30 = vpop.f32.mrf.mxu3 }
 0x5e5   :  { %4646 = vmatmul.msk.f32.gmra.mxu3 %vm151_vm1, %v1340_v30 }
 0x5e6   :  { %4672 = vmatmul.msk.f32.gmra.mxu1 %vm151_vm1, %v5625_v62 }
 0x5e7   :  { %4659 = vmatmul.msk.f32.gmra.mxu0 %vm151_vm1, %v1314_v18 }
 0x5eb   :  { %v1317_v27 = vpop.f32.mrf.mxu2 }
 0x5ec   :  { %v1343_v31 = vpop.f32.mrf.mxu3 }
 0x5ed   :  { %4629 = vmatmul.msk.f32.gmra.mxu2 %vm151_vm1, %v1343_v31 }
 0x5ee   :  { %4673 = vmatmul.msk.f32.gmra.mxu1 %vm151_vm1, %v5635_v5 }
 0x5ef   :  { %4660 = vmatmul.msk.f32.gmra.mxu0 %vm151_vm1, %v1317_v27 }
 0x5f3   :  { %v5709_v34 = vpop.f32.mrf.mxu2 }
 0x5f4   :  { %v1346_v28 = vpop.f32.mrf.mxu3  ;;  %v1372_v32 = vpop.f32.mrf.mxu0 }
 0x5f5   :  { %4630 = vmatmul.msk.f32.gmra.mxu2 %vm151_vm1, %v1346_v28  ;;  %4647 = vmatmul.msk.f32.gmra.mxu3 %vm151_vm1, %v1372_v32 }
 0x5f6   :  { %4674 = vmatmul.msk.f32.gmra.mxu1 %vm151_vm1, %v5645_v2 }
 0x5fb   :  { %v5719_v33 = vpop.f32.mrf.mxu2 }
 0x5fc   :  { %v1349_v35 = vpop.f32.mrf.mxu3  ;;  %v1375_v29 = vpop.f32.mrf.mxu0 }
 0x5fd   :  { %4661 = vmatmul.msk.f32.gmra.mxu0 %vm151_vm1, %v1349_v35  ;;  %4648 = vmatmul.msk.f32.gmra.mxu3 %vm151_vm1, %v1375_v29 }
 0x5fe   :  { %4675 = vmatmul.msk.f32.vlgmr.msra.gmra.mxu1 %vm151_vm1, %v5615_v37 }
 0x5ff   :  { %2225 = vmatpush.msra.mxu1 %v4794_v39 }
 0x601   :  { %2226 = vmatpush.msra.mxu1 %v4795_v40 }
 0x603   :  { %2227 = vmatpush.msra.mxu1 %v4796_v8  ;;  %v5731_v23 = vpop.f32.mrf.mxu2 }
 0x604   :  { %v1352_v9 = vpop.f32.mrf.mxu3  ;;  %v1378_v10 = vpop.f32.mrf.mxu0 }
 0x605   :  { %4631 = vmatmul.msk.f32.gmra.mxu2 %vm151_vm1, %v1378_v10  ;;  %4662 = vmatmul.msk.f32.gmra.mxu0 %vm151_vm1, %v1352_v9 }
 0x606   :  { %4676 = vmatmul.msk.f32.gmra.mxu1 %vm151_vm1, %v5625_v62 }
 0x607   :  { %2228 = vmatpush.msra.mxu1 %v4797_v14 }
 0x609   :  { %2229 = vmatpush.msra.mxu1 %v4798_v15 }
 0x60b   :  { %v1407_v12 = vpop.f32.mrf.mxu1  ;;  %2230 = vmatpush.msra.mxu1 %v4799_v24  ;;  %v5748_v16 = vpop.f32.mrf.mxu2 }
 0x60c   :  { %v1381_v41 = vpop.f32.mrf.mxu0  ;;  %4649 = vmatmul.msk.f32.gmra.mxu3 %vm151_vm1, %v1407_v12  ;;  %v5711_v42 = vpop.f32.mrf.mxu3 }
 0x60d   :  { %4632 = vmatmul.msk.f32.gmra.mxu2 %vm151_vm1, %v1381_v41  ;;  %2231 = vmatpush.msra.mxu1 %v4800_v43 }
 0x60e   :  { %4677 = vmatmul.msk.f32.gmra.mxu1 %vm151_vm1, %v5635_v5 }
 0x60f   :  { %2232 = vmatpush.msra.mxu1 %v4801_v45 }
 0x613   :  { %v1410_v46 = vpop.f32.mrf.mxu1  ;;  %v5760_v3 = vpop.f32.mrf.mxu2 }
 0x614   :  { %v1384_v47 = vpop.f32.mrf.mxu0  ;;  %4650 = vmatmul.msk.f32.gmra.mxu3 %vm151_vm1, %v1410_v46  ;;  %v5721_v55 = vpop.f32.mrf.mxu3 }
 0x615   :  { %4663 = vmatmul.msk.f32.gmra.mxu0 %vm151_vm1, %v1384_v47 }
 0x616   :  { %4678 = vmatmul.msk.f32.gmra.mxu1 %vm151_vm1, %v5645_v2 }
 0x61b   :  { %v1413_v49 = vpop.f32.mrf.mxu1  ;;  %v5772_v51 = vpop.f32.mrf.mxu2 }
 0x61c   :  { %v1387_v54 = vpop.f32.mrf.mxu0  ;;  %4633 = vmatmul.msk.f32.gmra.mxu2 %vm151_vm1, %v1413_v49  ;;  %4683 = vmatmul.msk.f32.vlgmr.msra.gmra.mxu3 %vm151_vm1, %v5615_v37  ;;  %v5735_v44 = vpop.f32.mrf.mxu3 }
 0x61d   :  { %4664 = vmatmul.msk.f32.gmra.mxu0 %vm151_vm1, %v1387_v54 }
 0x61e   :  { %4687 = vmatmul.msk.f32.vlgmr.msrb.gmra.mxu1 %vm151_vm1, %v5615_v37 }
 0x623   :  { %v1416_v7 = vpop.f32.mrf.mxu1 }
 0x624   :  { %4634 = vmatmul.msk.f32.gmra.mxu2 %vm151_vm1, %v1416_v7  ;;  %4684 = vmatmul.msk.f32.gmra.mxu3 %vm151_vm1, %v5625_v62  ;;  %v5739_v61 = vpop.f32.mrf.mxu0  ;;  %v5750_v0 = vpop.f32.mrf.mxu3 }
 0x626   :  { %4688 = vmatmul.msk.f32.gmra.mxu1 %vm151_vm1, %v5625_v62 }
 0x62b   :  { %v1419_v36 = vpop.f32.mrf.mxu1 }
 0x62c   :  { %4665 = vmatmul.msk.f32.gmra.mxu0 %vm151_vm1, %v1419_v36  ;;  %4679 = vmatmul.msk.f32.vlgmr.msra.gmra.mxu2 %vm151_vm1, %v5615_v37  ;;  %v5752_v38 = vpop.f32.mrf.mxu0  ;;  %v5762_v11 = vpop.f32.mrf.mxu3 }
 0x62d   :  { %4685 = vmatmul.msk.f32.gmra.mxu3 %vm151_vm1, %v5635_v5 }
 0x62e   :  { %4689 = vmatmul.msk.f32.gmra.mxu1 %vm151_vm1, %v5635_v5 }
 0x633   :  { %v1422_v63 = vpop.f32.mrf.mxu1 }
 0x634   :  { %4666 = vmatmul.msk.f32.gmra.mxu0 %vm151_vm1, %v1422_v63  ;;  %4680 = vmatmul.msk.f32.gmra.mxu2 %vm151_vm1, %v5625_v62  ;;  %v5768_v50 = vpop.f32.mrf.mxu0  ;;  %v5774_v52 = vpop.f32.mrf.mxu3 }
 0x635   :  { %4686 = vmatmul.msk.f32.gmra.mxu3 %vm151_vm1, %v5645_v2 }
 0x636   :  { %4690 = vmatmul.msk.f32.gmra.mxu1 %vm151_vm1, %v5645_v2 }
 0x63b   :  { %v5754_v1 = vpop.f32.mrf.mxu1 }
 0x63c   :  { %4681 = vmatmul.msk.f32.gmra.mxu2 %vm151_vm1, %v5635_v5  ;;  %v5781_v56 = vpop.f32.mrf.mxu0  ;;  %v5785_v58 = vpop.f32.mrf.mxu3 }
 0x63d   :  { %4695 = vmatmul.msk.f32.vlgmr.msrb.gmra.mxu3 %vm151_vm1, %v5615_v37 }
 0x643   :  { %v5764_v48 = vpop.f32.mrf.mxu1 }
 0x644   :  { %4682 = vmatmul.msk.f32.gmra.mxu2 %vm151_vm1, %v5645_v2  ;;  %v5800_v4 = vpop.f32.mrf.mxu3 }
 0x645   :  { %4696 = vmatmul.msk.f32.gmra.mxu3 %vm151_vm1, %v5625_v62 }
 0x648   :  { %v5783_v57 = vpop.f32.mrf.mxu2 }
 0x64b   :  { %v1815_v53 = vpop.f32.mrf.mxu1 }
 0x64c   :  { %4691 = vmatmul.msk.f32.vlgmr.msrb.gmra.mxu2 %vm151_vm1, %v5615_v37  ;;  %4699 = vmatmul.msk.f32.vlgmr.msra.gmra.mxu0 %vm85_vm0, %v1815_v53  ;;  %v5792_v37 = vpop.f32.mrf.mxu0  ;;  %v5810_v6 = vpop.f32.mrf.mxu3 }
 0x64d   :  { %4697 = vmatmul.msk.f32.gmra.mxu3 %vm151_vm1, %v5635_v5 }
 0x650   :  { %v5798_v60 = vpop.f32.mrf.mxu2 }
 0x653   :  { %v1818_v59 = vpop.f32.mrf.mxu1 }
 0x654   :  { %4692 = vmatmul.msk.f32.gmra.mxu2 %vm151_vm1, %v5625_v62  ;;  %4700 = vmatmul.msk.f32.gmra.mxu0 %vm85_vm0, %v1818_v59  ;;  %v5802_v17 = vpop.f32.mrf.mxu0  ;;  %v5817_v20 = vpop.f32.mrf.mxu3  ;;  %v1604_v59 = vadd.f32 %v5711_v42, %v5709_v34 }
 0x655   :  { %4698 = vmatmul.msk.f32.gmra.mxu3 %vm151_vm1, %v5645_v2 }
 0x658   :  { %v5808_v62 = vpop.f32.mrf.mxu2 }
 0x65b   :  { %v5794_v13 = vpop.f32.mrf.mxu1 }
 0x65c   :  { %4693 = vmatmul.msk.f32.gmra.mxu2 %vm151_vm1, %v5635_v5  ;;  %v5813_v21 = vpop.f32.mrf.mxu0 }
 0x660   :  { %v5815_v5 = vpop.f32.mrf.mxu2  ;;  %v5826_v30 = vpop.f32.mrf.mxu3 }
 0x663   :  { %v5804_v19 = vpop.f32.mrf.mxu1 }
 0x664   :  { %4694 = vmatmul.msk.f32.gmra.mxu2 %vm151_vm1, %v5645_v2  ;;  %v5820_v26 = vpop.f32.mrf.mxu0 }
 0x668   :  { %v5834_v32 = vpop.f32.mrf.mxu3 }
 0x66b   :  { %v1844_v22 = vpop.f32.mrf.mxu1 }
 0x66c   :  { %4701 = vmatmul.msk.f32.gmra.mxu0 %vm85_vm0, %v1844_v22  ;;  %v5828_v31 = vpop.f32.mrf.mxu0  ;;  %v1764_v22 = vadd.f32 %v5739_v61, %v1604_v59 }
 0x670   :  { %v5822_v18 = vpop.f32.mrf.mxu2 }
 0x673   :  { %v1847_v25 = vpop.f32.mrf.mxu1 }
 0x674   :  { %4702 = vmatmul.msk.f32.gmra.mxu0 %vm85_vm0, %v1847_v25  ;;  %v5836_v35 = vpop.f32.mrf.mxu0 }
 0x678   :  { %v5832_v28 = vpop.f32.mrf.mxu2  ;;  %v5841_v40 = vpop.f32.mrf.mxu3 }
 0x67b   :  { %v5824_v2 = vpop.f32.mrf.mxu1 }
 0x67c   :  { %v5843_v8 = vpop.f32.mrf.mxu0 }
 0x680   :  { %v5848_v14 = vpop.f32.mrf.mxu3 }
 0x683   :  { %v5830_v27 = vpop.f32.mrf.mxu1 }
 0x684   :  { %v5850_v15 = vpop.f32.mrf.mxu0 }
 0x688   :  { %v5839_v39 = vpop.f32.mrf.mxu2 }
 0x68b   :  { %v1873_v29 = vpop.f32.mrf.mxu1 }
 0x68c   :  { %4703 = vmatmul.msk.f32.gmra.mxu0 %vm85_vm0, %v1873_v29  ;;  %v2137_v29 = vadd.f32 %v5754_v1, %v1764_v22 }
 0x68f   :  { %v5854_v24 = vpop.f32.mrf.mxu3 }
 0x690   :  { %v5846_v10 = vpop.f32.mrf.mxu2 }
 0x692   :  { %v5856_v41 = vpop.f32.mrf.mxu0 }
 0x693   :  { %v1876_v9 = vpop.f32.mrf.mxu1 }
 0x694   :  { %4704 = vmatmul.msk.f32.gmra.mxu0 %vm85_vm0, %v1876_v9 }
 0x697   :  { %v5860_v45 = vpop.f32.mrf.mxu3 }
 0x698   :  { %8447 = vst [vmem:[#allocation3_spill] sm:$0xff] %v5860_v45 }
 0x69a   :  { %v5862_v46 = vpop.f32.mrf.mxu0 }
 0x69b   :  { %v5882_v9 = vpop.f32.mrf.mxu1 }
 0x69f   :  { %v5852_v12 = vpop.f32.mrf.mxu2  ;;  %v5870_v7 = vpop.f32.mrf.mxu3 }
 0x6a3   :  { %v5890_v1 = vpop.f32.mrf.mxu1 }
 0x6a7   :  { %v5858_v43 = vpop.f32.mrf.mxu2  ;;  %v5875_v53 = vpop.f32.mrf.mxu3 }
 0x6a8   :  { %8446 = vst [vmem:[#allocation2_spill] sm:$0xff] %v5858_v43 }
 0x6a9   :  { %v5866_v49 = vpop.f32.mrf.mxu0 }
 0x6aa   :  { %8448 = vst [vmem:[#allocation4_spill] sm:$0xff] %v5866_v49 }
 0x6af   :  { %v5864_v47 = vpop.f32.mrf.mxu2 }
 0x6b1   :  { %v5873_v63 = vpop.f32.mrf.mxu0 }
 0x6b2   :  { %8449 = vst [vmem:[#allocation5_spill] sm:$0xff] %v5873_v63  ;;  %v1931_v63 = vpop.f32.mrf.mxu3 }
 0x6b7   :  { %v5868_v54 = vpop.f32.mrf.mxu2 }
 0x6ba   :  { %v1934_v59 = vpop.f32.mrf.mxu3 }
 0x6bf   :  { %v1902_v36 = vpop.f32.mrf.mxu2 }
 0x6c0   :  { %4705 = vmatmul.msk.f32.gmra.mxu0 %vm85_vm0, %v1902_v36  ;;  %v1607_v36 = vadd.f32 %v5721_v55, %v5719_v33  ;;  %v1960_v33 = vpop.f32.mrf.mxu1 }
 0x6c2   :  { %v1765_v49 = vadd.f32 %v5752_v38, %v1607_v36  ;;  %v1610_v38 = vadd.f32 %v5735_v44, %v5731_v23  ;;  %v1613_v36 = vadd.f32 %v5750_v0, %v5748_v16  ;;  %v1616_v16 = vadd.f32 %v5762_v11, %v5760_v3 }
 0x6c3   :  { %v1622_v11 = vadd.f32 %v5785_v58, %v5783_v57  ;;  %v1628_v57 = vadd.f32 %v5810_v6, %v5808_v62 }
 0x6c4   :  { %v2138_v34 = vadd.f32 %v5764_v48, %v1765_v49 }
 0x6c7   :  { %v1905_v25 = vpop.f32.mrf.mxu2 }
 0x6c8   :  { %4706 = vmatmul.msk.f32.gmra.mxu0 %vm85_vm0, %v1905_v25  ;;  %v1963_v48 = vpop.f32.mrf.mxu1 }
 0x6c9   :  { %v2089_v45 = vpop.f32.mrf.mxu0 }
 0x6ca   :  { %v2153_v43 = vadd.f32 %v2137_v29, %v2089_v45 }
 0x6cc   :  { %4715 = vmatmul.msk.f32.vlgmr.msra.gmra.mxu1 %vm85_vm0, %v2153_v43  ;;  %v1766_v43 = vadd.f32 %v5768_v50, %v1610_v38  ;;  %v1619_v38 = vadd.f32 %v5774_v52, %v5772_v51  ;;  %v1625_v51 = vadd.f32 %v5800_v4, %v5798_v60 }
 0x6ce   :  { %v2139_v49 = vadd.f32 %v5794_v13, %v1766_v43  ;;  %v1771_v52 = vadd.f32 %v5820_v26, %v1625_v51 }
 0x6cf   :  { %v5894_v45 = vpop.f32.mrf.mxu2 }
 0x6d0   :  { %4707 = vmatmul.msk.f32.gmra.mxu0 %vm85_vm0, %v1931_v63  ;;  %v5904_v63 = vpop.f32.mrf.mxu3 }
 0x6d1   :  { %v2092_v42 = vpop.f32.mrf.mxu0 }
 0x6d2   :  { %v2154_v61 = vadd.f32 %v2138_v34, %v2092_v42  ;;  %v1767_v34 = vadd.f32 %v5781_v56, %v1613_v36  ;;  %v1768_v56 = vadd.f32 %v5792_v37, %v1616_v16  ;;  %v1770_v37 = vadd.f32 %v5813_v21, %v1622_v11  ;;  %v8450_v16 = vld [vmem:[#allocation4_spill] sm:$0xff] }
 0x6d3   :  { %v1772_v21 = vadd.f32 %v5828_v31, %v1628_v57 }
 0x6d4   :  { %4716 = vmatmul.msk.f32.gmra.mxu1 %vm85_vm0, %v2154_v61  ;;  %v2140_v23 = vadd.f32 %v5804_v19, %v1767_v34  ;;  %v2141_v19 = vadd.f32 %v5824_v2, %v1768_v56  ;;  %v2143_v2 = vadd.f32 %v5864_v47, %v1770_v37  ;;  %v1631_v47 = vadd.f32 %v5817_v20, %v5815_v5 }
 0x6d5   :  { %v2145_v60 = vadd.f32 %v5870_v7, %v1772_v21  ;;  %v1634_v7 = vadd.f32 %v5826_v30, %v5822_v18  ;;  %v1640_v18 = vadd.f32 %v5841_v40, %v5839_v39 }
 0x6d6   :  { %v1773_v62 = vadd.f32 %v5836_v35, %v1631_v47  ;;  %v1637_v35 = vadd.f32 %v5834_v32, %v5832_v28 }
 0x6d7   :  { %v5897_v55 = vpop.f32.mrf.mxu2  ;;  %v1774_v5 = vadd.f32 %v5843_v8, %v1634_v7  ;;  %v1776_v8 = vadd.f32 %v5856_v41, %v1640_v18 }
 0x6d8   :  { %4708 = vmatmul.msk.f32.gmra.mxu0 %vm85_vm0, %v1934_v59  ;;  %v5912_v13 = vpop.f32.mrf.mxu3  ;;  %v2146_v6 = vadd.f32 %v5875_v53, %v1773_v62  ;;  %v1775_v53 = vadd.f32 %v5850_v15, %v1637_v35 }
 0x6d9   :  { %v2147_v20 = vadd.f32 %v5882_v9, %v1774_v5  ;;  %v2149_v28 = vadd.f32 %v5894_v45, %v1776_v8  ;;  %v1643_v9 = vadd.f32 %v5848_v14, %v5846_v10  ;;  %v1646_v45 = vadd.f32 %v5854_v24, %v5852_v12 }
 0x6db   :  { %v1777_v39 = vadd.f32 %v5862_v46, %v1643_v9  ;;  %v1778_v10 = vadd.f32 %v8450_v16, %v1646_v45  ;;  %v8452_v46 = vld [vmem:[#allocation3_spill] sm:$0xff] }
 0x6dd   :  { %v2150_v40 = vadd.f32 %v5897_v55, %v1777_v39  ;;  %v2151_v14 = vadd.f32 %v5904_v63, %v1778_v10 }
 0x6df   :  { %v1989_v29 = vpop.f32.mrf.mxu2 }
 0x6e0   :  { %4709 = vmatmul.msk.f32.gmra.mxu0 %vm85_vm0, %v1960_v33  ;;  %v2018_v61 = vpop.f32.mrf.mxu3 }
 0x6e7   :  { %v1992_v42 = vpop.f32.mrf.mxu2 }
 0x6e8   :  { %4710 = vmatmul.msk.f32.gmra.mxu0 %vm85_vm0, %v1963_v48  ;;  %v2021_v0 = vpop.f32.mrf.mxu3  ;;  %v1769_v48 = vadd.f32 %v5802_v17, %v1619_v38  ;;  %v2144_v17 = vadd.f32 %v5868_v54, %v1771_v52 }
 0x6e9   :  { %v2095_v22 = vpop.f32.mrf.mxu0 }
 0x6ea   :  { %v2155_v25 = vadd.f32 %v2139_v49, %v2095_v22  ;;  %v2142_v43 = vadd.f32 %v5830_v27, %v1769_v48 }
 0x6ec   :  { %4717 = vmatmul.msk.f32.gmra.mxu1 %vm85_vm0, %v2155_v25 }
 0x6f0   :  { %4711 = vmatmul.msk.f32.gmra.mxu0 %vm85_vm0, %v1989_v29 }
 0x6f1   :  { %v2098_v44 = vpop.f32.mrf.mxu0 }
 0x6f2   :  { %v2156_v50 = vadd.f32 %v2140_v23, %v2098_v44  ;;  %v2148_v44 = vadd.f32 %v5890_v1, %v1775_v53 }
 0x6f4   :  { %4718 = vmatmul.msk.f32.gmra.mxu1 %vm85_vm0, %v2156_v50 }
 0x6f8   :  { %4712 = vmatmul.msk.f32.gmra.mxu0 %vm85_vm0, %v1992_v42 }
 0x700   :  { %4713 = vmatmul.msk.f32.gmra.mxu0 %vm85_vm0, %v2018_v61 }
 0x708   :  { %4714 = vmatmul.msk.f32.gmra.mxu0 %vm85_vm0, %v2021_v0 }
 0x709   :  { %v2101_v59 = vpop.f32.mrf.mxu0 }
 0x70a   :  { %v2157_v33 = vadd.f32 %v2141_v19, %v2101_v59  ;;  %v8451_v19 = vld [vmem:[#allocation2_spill] sm:$0xff] }
 0x70b   :  { %v1649_v59 = vadd.f32 %v8452_v46, %v8451_v19 }
 0x70c   :  { %4719 = vmatmul.msk.f32.gmra.mxu1 %vm85_vm0, %v2157_v33  ;;  %v8453_v33 = vld [vmem:[#allocation5_spill] sm:$0xff] }
 0x70d   :  { %v1779_v55 = vadd.f32 %v8453_v33, %v1649_v59 }
 0x70f   :  { %v2152_v38 = vadd.f32 %v5912_v13, %v1779_v55 }
 0x711   :  { %v2104_v49 = vpop.f32.mrf.mxu0 }
 0x712   :  { %v2158_v3 = vadd.f32 %v2142_v43, %v2104_v49 }
 0x714   :  { %4720 = vmatmul.msk.f32.gmra.mxu1 %vm85_vm0, %v2158_v3 }
 0x73d   :  { %v2107_v22 = vpop.f32.mrf.mxu0 }
 0x73e   :  { %v2159_v25 = vadd.f32 %v2143_v2, %v2107_v22 }
 0x740   :  { %4721 = vmatmul.msk.f32.gmra.mxu1 %vm85_vm0, %v2159_v25 }
 0x745   :  { %v2110_v27 = vpop.f32.mrf.mxu0 }
 0x746   :  { %v2160_v29 = vadd.f32 %v2144_v17, %v2110_v27 }
 0x748   :  { %4722 = vmatmul.msk.f32.gmra.mxu1 %vm85_vm0, %v2160_v29 }
 0x749   :  { %v5940_v58 = vpop.f32.mrf.mxu1 }
 0x74a   :  { %2346 = vrot.lane.b32.xlu2 %v5940_v58, %s4802_s26  ;;  %v2282_v18 = vsel %vm151_vm1, %v5940_v58, 0.0 }
 0x74d   :  { %v2113_v4 = vpop.f32.mrf.mxu0 }
 0x74e   :  { %v2161_v26 = vadd.f32 %v2145_v60, %v2113_v4 }
 0x750   :  { %4723 = vmatmul.msk.f32.gmra.mxu1 %vm85_vm0, %v2161_v26 }
 0x751   :  { %v5949_v54 = vpop.f32.mrf.mxu1 }
 0x752   :  { %2348 = vrot.lane.b32.xlu0 %v5949_v54, %s4802_s26 }
 0x755   :  { %v2116_v31 = vpop.f32.mrf.mxu0 }
 0x756   :  { %v2162_v36 = vadd.f32 %v2146_v6, %v2116_v31  ;;  %v2490_v6 = vlaneseq }
 0x758   :  { %4724 = vmatmul.msk.f32.gmra.mxu1 %vm85_vm0, %v2162_v36  ;;  %v6047_v31 = vand.u32 127, %v2490_v6 }
 0x75a   :  { %v6050_v36 = vadd.s32 4294967288, %v6047_v31 }
 0x75d   :  { %v2119_v34 = vpop.f32.mrf.mxu0 }
 0x75e   :  { %v2163_v23 = vadd.f32 %v2147_v20, %v2119_v34 }
 0x760   :  { %4725 = vmatmul.msk.f32.gmra.mxu1 %vm85_vm0, %v2163_v23 }
 0x765   :  { %v2122_v50 = vpop.f32.mrf.mxu0 }
 0x766   :  { %v2164_v42 = vadd.f32 %v2148_v44, %v2122_v50 }
 0x768   :  { %4726 = vmatmul.msk.f32.gmra.mxu1 %vm85_vm0, %v2164_v42 }
 0x769   :  { %v5968_v30 = vpop.f32.mrf.mxu1 }
 0x76a   :  { %2350 = vrot.lane.b32.xlu0 %v5968_v30, %s4802_s26 }
 0x76d   :  { %v2125_v32 = vpop.f32.mrf.mxu0 }
 0x76e   :  { %v2165_v15 = vadd.f32 %v2149_v28, %v2125_v32 }
 0x770   :  { %4727 = vmatmul.msk.f32.gmra.mxu1 %vm85_vm0, %v2165_v15 }
 0x771   :  { %v5977_v1 = vpop.f32.mrf.mxu1 }
 0x772   :  { %2352 = vrot.lane.b32.xlu2 %v5977_v1, %s4802_s26  ;;  %v2291_v59 = vsel %vm151_vm1, %v5977_v1, 0.0 }
 0x775   :  { %v2128_v41 = vpop.f32.mrf.mxu0 }
 0x776   :  { %v2166_v61 = vadd.f32 %v2150_v40, %v2128_v41 }
 0x778   :  { %4728 = vmatmul.msk.f32.gmra.mxu1 %vm85_vm0, %v2166_v61 }
 0x77d   :  { %v2131_v0 = vpop.f32.mrf.mxu0 }
 0x77e   :  { %v2167_v56 = vadd.f32 %v2151_v14, %v2131_v0 }
 0x780   :  { %4729 = vmatmul.msk.f32.gmra.mxu1 %vm85_vm0, %v2167_v56 }
 0x785   :  { %v2134_v48 = vpop.f32.mrf.mxu0 }
 0x786   :  { %v2168_v43 = vadd.f32 %v2152_v38, %v2134_v48  ;;  %v2288_v48 = vsel %vm151_vm1, %v5968_v30, 0.0 }
 0x788   :  { %4730 = vmatmul.msk.f32.gmra.mxu1 %vm85_vm0, %v2168_v43 }
 0x789   :  { %v5994_v12 = vpop.f32.mrf.mxu1 }
 0x78a   :  { %2354 = vrot.lane.b32.xlu1 %v5994_v12, %s4802_s26 }
 0x791   :  { %v5998_v24 = vpop.f32.mrf.mxu1 }
 0x792   :  { %2356 = vrot.lane.b32.xlu0 %v5998_v24, %s4802_s26  ;;  %v2297_v1 = vsel %vm151_vm1, %v5998_v24, 0.0  ;;  %v2285_v24 = vsel %vm151_vm1, %v5949_v54, 0.0 }
 0x7a4   :  { %v2347_v63 = vpop.permute.xlu2 %2346 }
 0x7a5   :  { %v2394_v49 = vsel %vm151_vm1, %v2347_v63, 0.0 }
 0x7a6   :  { %2395 = vadd.xlane.f32.xlu2 %v2394_v49 }
 0x7bd   :  { %v6003_v3 = vpop.f32.mrf.mxu1 }
 0x7be   :  { %2358 = vrot.lane.b32.xlu2 %v6003_v3, %s4802_s26  ;;  %v2300_v38 = vsel %vm151_vm1, %v6003_v3, 0.0 }
 0x7c4   :  { %v2349_v13 = vpop.permute.xlu0 %2348 }
 0x7c5   :  { %v6007_v11 = vpop.f32.mrf.mxu1  ;;  %v2397_v37 = vsel %vm151_vm1, %v2349_v13, 0.0 }
 0x7c6   :  { %2398 = vadd.xlane.f32.xlu1 %v2397_v37  ;;  %2360 = vrot.lane.b32.xlu0 %v6007_v11, %s4802_s26 }
 0x7cc   :  { %v2353_v27 = vpop.permute.xlu2 %2352 }
 0x7cd   :  { %v6012_v2 = vpop.f32.mrf.mxu1  ;;  %v2403_v57 = vsel %vm151_vm1, %v2353_v27, 0.0 }
 0x7ce   :  { %2362 = vrot.lane.b32.xlu2 %v6012_v2, %s4802_s26  ;;  %v2306_v30 = vsel %vm151_vm1, %v6012_v2, 0.0 }
 0x7d5   :  { %v6016_v22 = vpop.f32.mrf.mxu1 }
 0x7d6   :  { %v2309_v63 = vsel %vm151_vm1, %v6016_v22, 0.0 }
 0x7dc   :  { %v2351_v52 = vpop.permute.xlu0 %2350 }
 0x7dd   :  { %v6018_v25 = vpop.f32.mrf.mxu1  ;;  %v2400_v17 = vsel %vm151_vm1, %v2351_v52, 0.0  ;;  %v2294_v52 = vsel %vm151_vm1, %v5994_v12, 0.0 }
 0x7de   :  { %v2312_v12 = vsel %vm151_vm1, %v6018_v25, 0.0 }
 0x7e5   :  { %v6020_v51 = vpop.f32.mrf.mxu1 }
 0x7e6   :  { %2368 = vrot.lane.b32.xlu1 %v6020_v51, %s4802_s26 }
 0x7ed   :  { %v6025_v29 = vpop.f32.mrf.mxu1 }
 0x7ee   :  { %v2318_v13 = vsel %vm151_vm1, %v6025_v29, 0.0 }
 0x7f0   :  { %2401 = vadd.xlane.f32.xlu0 %v2400_v17 }
 0x7f5   :  { %v6028_v21 = vpop.f32.mrf.mxu1 }
 0x7f7   :  { %2404 = vadd.xlane.f32.xlu2 %v2403_v57 }
 0x7fc   :  { %v2355_v4 = vpop.permute.xlu1 %2354 }
 0x7fd   :  { %v6032_v60 = vpop.f32.mrf.mxu1  ;;  %v2406_v26 = vsel %vm151_vm1, %v2355_v4, 0.0 }
 0x7fe   :  { %v2324_v2 = vsel %vm151_vm1, %v6032_v60, 0.0 }
 0x804   :  { %2364 = vrot.lane.b32.xlu0 %v6016_v22, %s4802_s26  ;;  %v2357_v20 = vpop.permute.xlu0 %2356  ;;  %v2315_v22 = vsel %vm151_vm1, %v6020_v51, 0.0  ;;  %v2303_v51 = vsel %vm151_vm1, %v6007_v11, 0.0  ;;  %v2468_v11 = vld [vmem:[%s8434_s8 + $0xd0] sm:$0xff] }
 0x805   :  { %v6039_v47 = vpop.f32.mrf.mxu1  ;;  %v2409_v53 = vsel %vm151_vm1, %v2357_v20, 0.0  ;;  %2589 = vmatpush.msra.mxu3 %v2468_v11  ;;  %v2470_v20 = vld [vmem:[%s8434_s8 + $0xe0] sm:$0xff] }
 0x806   :  { %v2327_v37 = vsel %vm151_vm1, %v6039_v47, 0.0 }
 0x80c   :  { %2370 = vrot.lane.b32.xlu0 %v6025_v29, %s4802_s26 }
 0x80f   :  { %2366 = vrot.lane.b32.xlu2 %v6018_v25, %s4802_s26  ;;  %v2458_v25 = vld [vmem:[%s8434_s8 + $0x80] sm:$0xff] }
 0x810   :  { %2407 = vadd.xlane.f32.xlu1 %v2406_v26 }
 0x814   :  { %2376 = vrot.lane.b32.xlu0 %v6039_v47, %s4802_s26 }
 0x817   :  { %2372 = vrot.lane.b32.xlu2 %v6028_v21, %s4802_s26 }
 0x819   :  { %v2396_v62 = vpop.xlane.xlu2 %2395 }
 0x81a   :  { %v2492_v34 = vperm.slane %v2396_v62, %v6047_v31  ;;  %v2466_v62 = vld [vmem:[%s8434_s8 + $0xc0] sm:$0xff] }
 0x81b   :  { %2549 = vmatpush.msra.mxu2 %v2466_v62 }
 0x81d   :  { %2550 = vmatpush.msra.mxu2 %v2458_v25 }
 0x821   :  { %v2359_v7 = vpop.permute.xlu2 %2358 }
 0x822   :  { %v2412_v44 = vsel %vm151_vm1, %v2359_v7, 0.0 }
 0x829   :  { %2374 = vrot.lane.b32.xlu1 %v6032_v60, %s4802_s26  ;;  %v2363_v50 = vpop.permute.xlu2 %2362  ;;  %v2321_v60 = vsel %vm151_vm1, %v6028_v21, 0.0  ;;  %v2460_v21 = vld [vmem:[%s8434_s8 + $0x90] sm:$0xff] }
 0x82a   :  { %v2418_v42 = vsel %vm151_vm1, %v2363_v50, 0.0  ;;  %2590 = vmatpush.msra.mxu3 %v2460_v21 }
 0x82c   :  { %2629 = vmatpush.msrb.mxu3 %v2470_v20 }
 0x838   :  { %v2361_v8 = vpop.permute.xlu0 %2360 }
 0x839   :  { %v2399_v5 = vpop.xlane.xlu1 %2398  ;;  %v2415_v15 = vsel %vm151_vm1, %v2361_v8, 0.0 }
 0x83a   :  { %v2494_v23 = vperm.slane %v2399_v5, %v6050_v36  ;;  %v2467_v5 = vld [vmem:[%s8434_s8 + $0xc8] sm:$0xff] }
 0x83b   :  { %2569 = vmatpush.msrb.mxu2 %v2467_v5 }
 0x83c   :  { %v2496_v35 = vsel %vm2495_vm3, %v2494_v23, %v2492_v34  ;;  %v2459_v23 = vld [vmem:[%s8434_s8 + $0x88] sm:$0xff] }
 0x83d   :  { %2570 = vmatpush.msrb.mxu2 %v2459_v23 }
 0x83e   :  { %2410 = vadd.xlane.f32.xlu0 %v2409_v53 }
 0x840   :  { %2413 = vadd.xlane.f32.xlu2 %v2412_v44 }
 0x846   :  { %2419 = vadd.xlane.f32.xlu0 %v2418_v42 }
 0x853   :  { %2283 = vadd.xlane.f32.xlu1 %v2282_v18 }
 0x858   :  { %v2369_v28 = vpop.permute.xlu1 %2368 }
 0x859   :  { %v2427_v32 = vsel %vm151_vm1, %v2369_v28, 0.0 }
 0x85a   :  { %2428 = vadd.xlane.f32.xlu0 %v2427_v32 }
 0x85b   :  { %2416 = vadd.xlane.f32.xlu1 %v2415_v15 }
 0x863   :  { %v2402_v9 = vpop.xlane.xlu0 %2401 }
 0x864   :  { %v2497_v40 = vperm.slane %v2402_v9, %v6047_v31 }
 0x86a   :  { %v2405_v39 = vpop.xlane.xlu2 %2404 }
 0x86b   :  { %v2498_v41 = vperm.slane %v2405_v39, %v6050_v36 }
 0x86d   :  { %v2499_v61 = vsel %vm2495_vm3, %v2498_v41, %v2497_v40 }
 0x86e   :  { %v2519_v58 = vsel %vm2518_vm4, %v2499_v61, %v2496_v35  ;;  %v2462_v35 = vld [vmem:[%s8434_s8 + $0xa0] sm:$0xff] }
 0x86f   :  { %2630 = vmatpush.msrb.mxu3 %v2462_v35 }
 0x872   :  { %v2367_v45 = vpop.permute.xlu2 %2366 }
 0x873   :  { %v2424_v16 = vsel %vm151_vm1, %v2367_v45, 0.0 }
 0x874   :  { %2425 = vadd.xlane.f32.xlu1 %v2424_v16 }
 0x876   :  { %v2365_v10 = vpop.permute.xlu0 %2364 }
 0x877   :  { %v2421_v14 = vsel %vm151_vm1, %v2365_v10, 0.0 }
 0x878   :  { %2422 = vadd.xlane.f32.xlu2 %v2421_v14 }
 0x87a   :  { %v2373_v0 = vpop.permute.xlu2 %2372 }
 0x87b   :  { %v2433_v56 = vsel %vm151_vm1, %v2373_v0, 0.0 }
 0x87c   :  { %2434 = vadd.xlane.f32.xlu1 %v2433_v56 }
 0x87e   :  { %v2371_v19 = vpop.permute.xlu0 %2370 }
 0x87f   :  { %v2430_v46 = vsel %vm151_vm1, %v2371_v19, 0.0 }
 0x880   :  { %2431 = vadd.xlane.f32.xlu2 %v2430_v46 }
 0x883   :  { %v2408_v43 = vpop.xlane.xlu1 %2407 }
 0x884   :  { %2292 = vadd.xlane.f32.xlu1 %v2291_v59  ;;  %v2500_v27 = vperm.slane %v2408_v43, %v6047_v31 }
 0x886   :  { %v2377_v33 = vpop.permute.xlu0 %2376 }
 0x887   :  { %v2439_v55 = vsel %vm151_vm1, %v2377_v33, 0.0 }
 0x888   :  { %2440 = vadd.xlane.f32.xlu2 %v2439_v55 }
 0x88c   :  { %2301 = vadd.xlane.f32.xlu1 %v2300_v38  ;;  %v2469_v38 = vld [vmem:[%s8434_s8 + $0xd8] sm:$0xff] }
 0x890   :  { %2289 = vadd.xlane.f32.xlu2 %v2288_v48  ;;  %v2472_v48 = vld [vmem:[%s8434_s8 + $0xf0] sm:$0xff] }
 0x894   :  { %2310 = vadd.xlane.f32.xlu1 %v2309_v63  ;;  %v2461_v63 = vld [vmem:[%s8434_s8 + $0x98] sm:$0xff] }
 0x898   :  { %2298 = vadd.xlane.f32.xlu2 %v2297_v1  ;;  %v2464_v1 = vld [vmem:[%s8434_s8 + $0xb0] sm:$0xff] }
 0x89b   :  { %v2375_v49 = vpop.permute.xlu1 %2374 }
 0x89c   :  { %2319 = vadd.xlane.f32.xlu1 %v2318_v13  ;;  %v2436_v3 = vsel %vm151_vm1, %v2375_v49, 0.0 }
 0x89d   :  { %2437 = vadd.xlane.f32.xlu0 %v2436_v3 }
 0x8a0   :  { %2307 = vadd.xlane.f32.xlu2 %v2306_v30  ;;  %v2471_v30 = vld [vmem:[%s8434_s8 + $0xe8] sm:$0xff] }
 0x8a4   :  { %2328 = vadd.xlane.f32.xlu1 %v2327_v37  ;;  %v2450_v37 = vld [vmem:[%s8434_s8 + $0x40] sm:$0xff] }
 0x8a5   :  { %2286 = vadd.xlane.f32.xlu0 %v2285_v24  ;;  %v2463_v24 = vld [vmem:[%s8434_s8 + $0xa8] sm:$0xff] }
 0x8a8   :  { %2316 = vadd.xlane.f32.xlu2 %v2315_v22  ;;  %v2442_v22 = vld [vmem:[%s8434_s8] sm:$0xff] }
 0x8ad   :  { %2295 = vadd.xlane.f32.xlu0 %v2294_v52 }
 0x8b0   :  { %2325 = vadd.xlane.f32.xlu2 %v2324_v2 }
 0x8b1   :  { %v2411_v17 = vpop.xlane.xlu0 %2410 }
 0x8b2   :  { %v2501_v29 = vperm.slane %v2411_v17, %v6050_v36 }
 0x8b3   :  { %v2414_v4 = vpop.xlane.xlu2 %2413 }
 0x8b4   :  { %v2502_v54 = vsel %vm2495_vm3, %v2501_v29, %v2500_v27  ;;  %v2503_v28 = vperm.slane %v2414_v4, %v6047_v31  ;;  %v2473_v27 = vld [vmem:[%s8434_s8 + $0xf8] sm:$0xff]  ;;  %v2452_v29 = vld [vmem:[%s8434_s8 + $0x50] sm:$0xff] }
 0x8b5   :  { %v2521_v57 = vsel %vm2520_vm5, %v2502_v54, %v2519_v58  ;;  %2304 = vadd.xlane.f32.xlu0 %v2303_v51  ;;  %v2465_v54 = vld [vmem:[%s8434_s8 + $0xb8] sm:$0xff]  ;;  %v2444_v51 = vld [vmem:[%s8434_s8 + $0x10] sm:$0xff] }
 0x8b9   :  { %v2420_v53 = vpop.xlane.xlu0 %2419 }
 0x8ba   :  { %v2506_v32 = vperm.slane %v2420_v53, %v6047_v31 }
 0x8bd   :  { %2313 = vadd.xlane.f32.xlu0 %v2312_v12 }
 0x8c5   :  { %2322 = vadd.xlane.f32.xlu0 %v2321_v60  ;;  %v2451_v60 = vld [vmem:[%s8434_s8 + $0x48] sm:$0xff] }
 0x8c6   :  { %v6106_v26 = vpop.xlane.xlu1 %2283 }
 0x8cd   :  { %v2429_v18 = vpop.xlane.xlu0 %2428 }
 0x8ce   :  { %v2417_v6 = vpop.xlane.xlu1 %2416  ;;  %v2510_v45 = vperm.slane %v2429_v18, %v6050_v36 }
 0x8cf   :  { %v2504_v42 = vperm.slane %v2417_v6, %v6050_v36  ;;  %v2711_v6 = vperm.slane %v6106_v26, %v6047_v31  ;;  %v2453_v26 = vld [vmem:[%s8434_s8 + $0x58] sm:$0xff] }
 0x8d1   :  { %v2505_v15 = vsel %vm2495_vm3, %v2504_v42, %v2503_v28  ;;  %v2445_v28 = vld [vmem:[%s8434_s8 + $0x18] sm:$0xff] }
 0x8d2   :  { %v2523_v61 = vsel %vm2522_vm6, %v2505_v15, %v2521_v57 }
 0x8e7   :  { %v2426_v34 = vpop.xlane.xlu1 %2425 }
 0x8e8   :  { %v2509_v40 = vperm.slane %v2426_v34, %v6047_v31 }
 0x8ea   :  { %v2511_v56 = vsel %vm2495_vm3, %v2510_v45, %v2509_v40 }
 0x8eb   :  { %v2423_v47 = vpop.xlane.xlu2 %2422 }
 0x8ec   :  { %v2507_v8 = vperm.slane %v2423_v47, %v6050_v36  ;;  %v2443_v47 = vld [vmem:[%s8434_s8 + $0x8] sm:$0xff] }
 0x8ee   :  { %v2508_v9 = vsel %vm2495_vm3, %v2507_v8, %v2506_v32 }
 0x8ef   :  { %v2435_v50 = vpop.xlane.xlu1 %2434  ;;  %v2525_v16 = vsel %vm2524_vm7, %v2508_v9, %v2523_v61 }
 0x8f0   :  { %v2513_v58 = vperm.slane %v2435_v50, %v6050_v36  ;;  %v2527_v59 = vsel %vm2526_vm8, %v2511_v56, %v2525_v16 }
 0x8f3   :  { %v2432_v7 = vpop.xlane.xlu2 %2431 }
 0x8f4   :  { %v2512_v39 = vperm.slane %v2432_v7, %v6047_v31 }
 0x8f6   :  { %v2514_v14 = vsel %vm2495_vm3, %v2513_v58, %v2512_v39 }
 0x8f7   :  { %v6146_v10 = vpop.xlane.xlu1 %2292  ;;  %v2529_v33 = vsel %vm2528_vm9, %v2514_v14, %v2527_v59  ;;  %v3118_v14 = vld [vmem:[%s8435_s10 + $0x5e0] sm:$0xff] }
 0x8f8   :  { %v2715_v20 = vperm.slane %v6146_v10, %v6050_v36  ;;  %3492 = vmatpush.msrb.mxu0 %v3118_v14  ;;  %v2998_v14 = vld [vmem:[%s8435_s10 + $0x220] sm:$0xff] }
 0x8fb   :  { %v2441_v44 = vpop.xlane.xlu2 %2440 }
 0x8fc   :  { %v2516_v19 = vperm.slane %v2441_v44, %v6050_v36 }
 0x8ff   :  { %v2302_v3 = vpop.xlane.xlu1 %2301 }
 0x900   :  { %v2720_v34 = vperm.slane %v2302_v3, %v6047_v31  ;;  %v3106_v3 = vld [vmem:[%s8435_s10 + $0x580] sm:$0xff] }
 0x903   :  { %v6140_v41 = vpop.xlane.xlu2 %2289 }
 0x904   :  { %v2714_v25 = vperm.slane %v6140_v41, %v6047_v31 }
 0x906   :  { %v2716_v53 = vsel %vm2495_vm3, %v2715_v20, %v2714_v25  ;;  %v2962_v25 = vld [vmem:[%s8435_s10 + $0x100] sm:$0xff] }
 0x907   :  { %v2311_v17 = vpop.xlane.xlu1 %2310  ;;  %v3102_v20 = vld [vmem:[%s8435_s10 + $0x560] sm:$0xff] }
 0x908   :  { %v2724_v9 = vperm.slane %v2311_v17, %v6050_v36  ;;  %v3054_v17 = vld [vmem:[%s8435_s10 + $0x3e0] sm:$0xff] }
 0x90b   :  { %v2299_v49 = vpop.xlane.xlu2 %2298 }
 0x90c   :  { %v2718_v5 = vperm.slane %v2299_v49, %v6050_v36  ;;  %v2446_v49 = vld [vmem:[%s8434_s8 + $0x20] sm:$0xff] }
 0x90f   :  { %v2320_v4 = vpop.xlane.xlu1 %2319 }
 0x910   :  { %v2438_v0 = vpop.xlane.xlu0 %2437  ;;  %v2729_v45 = vperm.slane %v2320_v4, %v6047_v31  ;;  %v3038_v4 = vld [vmem:[%s8435_s10 + $0x360] sm:$0xff] }
 0x911   :  { %v2515_v46 = vperm.slane %v2438_v0, %v6047_v31  ;;  %v3182_v0 = vld [vmem:[%s8435_s10 + $0x7e0] sm:$0xff] }
 0x912   :  { %3512 = vmatpush.msrb.mxu1 %v3182_v0  ;;  %v3078_v0 = vld [vmem:[%s8435_s10 + $0x4a0] sm:$0xff] }
 0x913   :  { %v2517_v55 = vsel %vm2495_vm3, %v2516_v19, %v2515_v46  ;;  %v2308_v2 = vpop.xlane.xlu2 %2307 }
 0x914   :  { %v2531_v43 = vsel %vm2530_vm10, %v2517_v55, %v2529_v33  ;;  %v2723_v42 = vperm.slane %v2308_v2, %v6047_v31  ;;  %v3178_v33 = vld [vmem:[%s8435_s10 + $0x7c0] sm:$0xff] }
 0x915   :  { %4731 = vmatmul.msk.f32.vlgmr.msra.gmra.mxu2 %vm2532_vm11, %v2531_v43  ;;  %4733 = vmatmul.msk.f32.vlgmr.msra.gmra.mxu3 %vm2532_vm11, %v2531_v43  ;;  %v2990_v2 = vld [vmem:[%s8435_s10 + $0x1e0] sm:$0xff] }
 0x916   :  { %2609 = vmatpush.msra.mxu2 %v2469_v38  ;;  %2669 = vmatpush.msra.mxu3 %v2472_v48  ;;  %v2725_v16 = vsel %vm2495_vm3, %v2724_v9, %v2723_v42  ;;  %v2454_v38 = vld [vmem:[%s8434_s8 + $0x60] sm:$0xff]  ;;  %v2455_v48 = vld [vmem:[%s8434_s8 + $0x68] sm:$0xff] }
 0x917   :  { %v2329_v39 = vpop.xlane.xlu1 %2328  ;;  %3513 = vmatpush.msrb.mxu1 %v3178_v33  ;;  %v3094_v42 = vld [vmem:[%s8435_s10 + $0x520] sm:$0xff] }
 0x918   :  { %v2287_v13 = vpop.xlane.xlu0 %2286  ;;  %2610 = vmatpush.msra.mxu2 %v2461_v63  ;;  %2670 = vmatpush.msra.mxu3 %v2464_v1  ;;  %v2733_v56 = vperm.slane %v2329_v39, %v6050_v36  ;;  %v3110_v63 = vld [vmem:[%s8435_s10 + $0x5a0] sm:$0xff] }
 0x919   :  { %v2712_v62 = vperm.slane %v2287_v13, %v6050_v36  ;;  %v3174_v1 = vld [vmem:[%s8435_s10 + $0x7a0] sm:$0xff]  ;;  %v2447_v13 = vld [vmem:[%s8434_s8 + $0x28] sm:$0xff] }
 0x91a   :  { %3514 = vmatpush.msrb.mxu1 %v3174_v1  ;;  %v2942_v9 = vld [vmem:[%s8435_s10 + $0x60] sm:$0xff] }
 0x91b   :  { %v2317_v12 = vpop.xlane.xlu2 %2316  ;;  %v2713_v23 = vsel %vm2495_vm3, %v2712_v62, %v2711_v6  ;;  %v3034_v62 = vld [vmem:[%s8435_s10 + $0x340] sm:$0xff] }
 0x91c   :  { %v2735_v18 = vsel %vm2518_vm4, %v2716_v53, %v2713_v23  ;;  %v2727_v32 = vperm.slane %v2317_v12, %v6050_v36  ;;  %v3042_v12 = vld [vmem:[%s8435_s10 + $0x380] sm:$0xff] }
 0x91d   :  { %4732 = vmatmul.msk.f32.vlgmr.msrb.gmra.mxu2 %vm2532_vm11, %v2531_v43  ;;  %4735 = vmatmul.msk.f32.vlgmr.msrb.gmra.mxu3 %vm2532_vm11, %v2531_v43  ;;  %v3030_v6 = vld [vmem:[%s8435_s10 + $0x320] sm:$0xff] }
 0x91e   :  { %2649 = vmatpush.msrb.mxu2 %v2471_v30  ;;  %2758 = vmatpush.msrb.mxu3 %v2450_v37  ;;  %v3170_v30 = vld [vmem:[%s8435_s10 + $0x780] sm:$0xff]  ;;  %v2456_v37 = vld [vmem:[%s8434_s8 + $0x70] sm:$0xff] }
 0x91f   :  { %3515 = vmatpush.msrb.mxu1 %v3170_v30  ;;  %v2954_v23 = vld [vmem:[%s8435_s10 + $0xc0] sm:$0xff] }
 0x920   :  { %v2296_v52 = vpop.xlane.xlu0 %2295  ;;  %2650 = vmatpush.msrb.mxu2 %v2463_v24  ;;  %2759 = vmatpush.msrb.mxu3 %v2442_v22  ;;  %v2457_v24 = vld [vmem:[%s8434_s8 + $0x78] sm:$0xff]  ;;  %v2448_v22 = vld [vmem:[%s8434_s8 + $0x30] sm:$0xff]  ;;  %v3162_v53 = vld [vmem:[%s8435_s10 + $0x740] sm:$0xff] }
 0x921   :  { %v2717_v11 = vperm.slane %v2296_v52, %v6047_v31  ;;  %v2449_v52 = vld [vmem:[%s8434_s8 + $0x38] sm:$0xff]  ;;  %v3006_v39 = vld [vmem:[%s8435_s10 + $0x260] sm:$0xff] }
 0x922   :  { %v3246_v33 = vld [vmem:[%s8435_s10 + $0x9e0] sm:$0xff] }
 0x923   :  { %v2719_v35 = vsel %vm2495_vm3, %v2718_v5, %v2717_v11  ;;  %v2326_v8 = vpop.xlane.xlu2 %2325  ;;  %v2966_v11 = vld [vmem:[%s8435_s10 + $0x120] sm:$0xff] }
 0x924   :  { %v2736_v15 = vsel %vm2520_vm5, %v2719_v35, %v2735_v18  ;;  %v2732_v41 = vperm.slane %v2326_v8, %v6047_v31  ;;  %v3022_v5 = vld [vmem:[%s8435_s10 + $0x2e0] sm:$0xff] }
 0x925   :  { %4734 = vmatmul.msk.f32.vlgmr.msra.gmra.mxu2 %vm2532_vm11, %v2531_v43  ;;  %4737 = vmatmul.msk.f32.vlgmr.msra.gmra.mxu3 %vm2532_vm11, %v2531_v43  ;;  %v3018_v35 = vld [vmem:[%s8435_s10 + $0x2c0] sm:$0xff] }
 0x926   :  { %2689 = vmatpush.msra.mxu2 %v2473_v27  ;;  %2798 = vmatpush.msra.mxu3 %v2452_v29  ;;  %v2734_v55 = vsel %vm2495_vm3, %v2733_v56, %v2732_v41  ;;  %v2986_v27 = vld [vmem:[%s8435_s10 + $0x1c0] sm:$0xff] }
 0x927   :  { %v3050_v29 = vld [vmem:[%s8435_s10 + $0x3c0] sm:$0xff] }
 0x928   :  { %v2305_v57 = vpop.xlane.xlu0 %2304  ;;  %2690 = vmatpush.msra.mxu2 %v2465_v54  ;;  %2799 = vmatpush.msra.mxu3 %v2444_v51  ;;  %v2982_v54 = vld [vmem:[%s8435_s10 + $0x1a0] sm:$0xff] }
 0x929   :  { %v2721_v21 = vperm.slane %v2305_v57, %v6050_v36  ;;  %v3046_v51 = vld [vmem:[%s8435_s10 + $0x3a0] sm:$0xff] }
 0x92a   :  { %v2978_v57 = vld [vmem:[%s8435_s10 + $0x180] sm:$0xff] }
 0x92b   :  { %v2722_v44 = vsel %vm2495_vm3, %v2721_v21, %v2720_v34  ;;  %v3026_v21 = vld [vmem:[%s8435_s10 + $0x300] sm:$0xff] }
 0x92c   :  { %v2737_v40 = vsel %vm2522_vm6, %v2722_v44, %v2736_v15  ;;  %v3166_v34 = vld [vmem:[%s8435_s10 + $0x760] sm:$0xff] }
 0x92d   :  { %4736 = vmatmul.msk.f32.vlgmr.msrb.gmra.mxu2 %vm2532_vm11, %v2531_v43  ;;  %v2738_v19 = vsel %vm2524_vm7, %v2725_v16, %v2737_v40  ;;  %3516 = vmatpush.msrb.mxu1 %v3166_v34  ;;  %v2950_v44 = vld [vmem:[%s8435_s10 + $0xa0] sm:$0xff] }
 0x92e   :  { %2778 = vmatpush.msrb.mxu2 %v2451_v60  ;;  %v2974_v60 = vld [vmem:[%s8435_s10 + $0x160] sm:$0xff] }
 0x92f   :  { %v3158_v18 = vld [vmem:[%s8435_s10 + $0x720] sm:$0xff]  ;;  %3517 = vmatpush.msrb.mxu1 %v3162_v53 }
 0x930   :  { %v2314_v7 = vpop.xlane.xlu0 %2313  ;;  %2779 = vmatpush.msrb.mxu2 %v2443_v47  ;;  %v2970_v47 = vld [vmem:[%s8435_s10 + $0x140] sm:$0xff] }
 0x931   :  { %v2726_v50 = vperm.slane %v2314_v7, %v6047_v31  ;;  %v3114_v31 = vld [vmem:[%s8435_s10 + $0x5c0] sm:$0xff]  ;;  %3518 = vmatpush.msrb.mxu1 %v3158_v18 }
 0x932   :  { %3493 = vmatpush.msrb.mxu0 %v3114_v31  ;;  %v2958_v7 = vld [vmem:[%s8435_s10 + $0xe0] sm:$0xff] }
 0x933   :  { %v2728_v61 = vsel %vm2495_vm3, %v2727_v32, %v2726_v50  ;;  %v3014_v50 = vld [vmem:[%s8435_s10 + $0x2a0] sm:$0xff] }
 0x934   :  { %v2739_v46 = vsel %vm2526_vm8, %v2728_v61, %v2738_v19  ;;  %3494 = vmatpush.msrb.mxu0 %v3110_v63  ;;  %v2946_v8 = vld [vmem:[%s8435_s10 + $0x80] sm:$0xff] }
 0x935   :  { %4738 = vmatmul.msk.f32.vlgmr.msra.gmra.mxu2 %vm2532_vm11, %v2531_v43  ;;  %v3090_v32 = vld [vmem:[%s8435_s10 + $0x500] sm:$0xff] }
 0x936   :  { %2818 = vmatpush.msra.mxu2 %v2453_v26  ;;  %3495 = vmatpush.msrb.mxu0 %v3106_v3  ;;  %v3098_v26 = vld [vmem:[%s8435_s10 + $0x540] sm:$0xff] }
 0x937   :  { %v3154_v15 = vld [vmem:[%s8435_s10 + $0x700] sm:$0xff] }
 0x938   :  { %v2323_v58 = vpop.xlane.xlu0 %2322  ;;  %2819 = vmatpush.msra.mxu2 %v2445_v28  ;;  %3496 = vmatpush.msrb.mxu0 %v3102_v20  ;;  %v3010_v28 = vld [vmem:[%s8435_s10 + $0x280] sm:$0xff] }
 0x939   :  { %v2730_v10 = vperm.slane %v2323_v58, %v6050_v36  ;;  %3519 = vmatpush.msrb.mxu1 %v3154_v15  ;;  %v3086_v40 = vld [vmem:[%s8435_s10 + $0x4e0] sm:$0xff] }
 0x93a   :  { %3497 = vmatpush.msrb.mxu0 %v3098_v26  ;;  %v3150_v41 = vld [vmem:[%s8435_s10 + $0x6e0] sm:$0xff] }
 0x93b   :  { %v2731_v59 = vsel %vm2495_vm3, %v2730_v10, %v2729_v45  ;;  %v2938_v61 = vld [vmem:[%s8435_s10 + $0x40] sm:$0xff]  ;;  %3520 = vmatpush.msrb.mxu1 %v3150_v41 }
 0x93c   :  { %v2740_v36 = vsel %vm2528_vm9, %v2731_v59, %v2739_v46  ;;  %3498 = vmatpush.msrb.mxu0 %v3094_v42  ;;  %v3002_v58 = vld [vmem:[%s8435_s10 + $0x240] sm:$0xff] }
 0x93d   :  { %v2741_v43 = vsel %vm2530_vm10, %v2734_v55, %v2740_v36  ;;  %v3082_v45 = vld [vmem:[%s8435_s10 + $0x4c0] sm:$0xff] }
 0x93e   :  { %4739 = vmatmul.msk.f32.vlgmr.msrb.gmra.mxu3 %vm2532_vm11, %v2741_v43  ;;  %4740 = vmatmul.msk.f32.vlgmr.msrb.gmra.mxu2 %vm2532_vm11, %v2741_v43  ;;  %v3146_v16 = vld [vmem:[%s8435_s10 + $0x6c0] sm:$0xff] }
 0x93f   :  { %2838 = vmatpush.msrb.mxu3 %v2454_v38  ;;  %2858 = vmatpush.msrb.mxu2 %v2455_v48  ;;  %v2934_v10 = vld [vmem:[%s8435_s10 + $0x20] sm:$0xff] }
 0x940   :  { %3499 = vmatpush.msrb.mxu0 %v3090_v32  ;;  %v3142_v56 = vld [vmem:[%s8435_s10 + $0x6a0] sm:$0xff]  ;;  %3521 = vmatpush.msrb.mxu1 %v3146_v16 }
 0x941   :  { %2839 = vmatpush.msrb.mxu3 %v2446_v49  ;;  %2859 = vmatpush.msrb.mxu2 %v2447_v13  ;;  %v2930_v19 = vld [vmem:[%s8435_s10] sm:$0xff] }
 0x942   :  { %3500 = vmatpush.msrb.mxu0 %v3086_v40  ;;  %v2994_v31 = vld [vmem:[%s8435_s10 + $0x200] sm:$0xff]  ;;  %3522 = vmatpush.msrb.mxu1 %v3142_v56 }
 0x943   :  { %v3074_v46 = vld [vmem:[%s8435_s10 + $0x480] sm:$0xff] }
 0x944   :  { %3501 = vmatpush.msrb.mxu0 %v3082_v45  ;;  %v3138_v59 = vld [vmem:[%s8435_s10 + $0x680] sm:$0xff] }
 0x945   :  { %v3310_v55 = vld [vmem:[%s8435_s10 + $0xbe0] sm:$0xff]  ;;  %3523 = vmatpush.msrb.mxu1 %v3138_v59 }
 0x946   :  { %4741 = vmatmul.msk.f32.vlgmr.msra.gmra.mxu3 %vm2532_vm11, %v2741_v43  ;;  %4742 = vmatmul.msk.f32.vlgmr.msra.gmra.mxu2 %vm2532_vm11, %v2741_v43  ;;  %v3070_v36 = vld [vmem:[%s8435_s10 + $0x460] sm:$0xff] }
 0x947   :  { %2878 = vmatpush.msra.mxu3 %v2456_v37  ;;  %2898 = vmatpush.msra.mxu2 %v2457_v24  ;;  %v3134_v38 = vld [vmem:[%s8435_s10 + $0x660] sm:$0xff] }
 0x948   :  { %3502 = vmatpush.msrb.mxu0 %v3078_v0  ;;  %v3242_v48 = vld [vmem:[%s8435_s10 + $0x9c0] sm:$0xff]  ;;  %3524 = vmatpush.msrb.mxu1 %v3134_v38 }
 0x949   :  { %2879 = vmatpush.msra.mxu3 %v2448_v22  ;;  %2899 = vmatpush.msra.mxu2 %v2449_v52  ;;  %v3066_v63 = vld [vmem:[%s8435_s10 + $0x440] sm:$0xff] }
 0x94a   :  { %3503 = vmatpush.msrb.mxu0 %v3074_v46  ;;  %v3130_v1 = vld [vmem:[%s8435_s10 + $0x640] sm:$0xff] }
 0x94b   :  { %v3238_v49 = vld [vmem:[%s8435_s10 + $0x9a0] sm:$0xff]  ;;  %3525 = vmatpush.msrb.mxu1 %v3130_v1 }
 0x94c   :  { %3504 = vmatpush.msrb.mxu0 %v3070_v36  ;;  %v3302_v13 = vld [vmem:[%s8435_s10 + $0xba0] sm:$0xff] }
 0x94d   :  { %v3062_v3 = vld [vmem:[%s8435_s10 + $0x420] sm:$0xff] }
 0x94e   :  { %4743 = vmatmul.msk.f32.vlgmr.msrb.gmra.mxu3 %vm2532_vm11, %v2741_v43  ;;  %4744 = vmatmul.msk.f32.vlgmr.msrb.gmra.mxu2 %vm2532_vm11, %v2741_v43  ;;  %v3126_v30 = vld [vmem:[%s8435_s10 + $0x620] sm:$0xff] }
 0x94f   :  { %3452 = vmatpush.msrb.mxu3 %v2990_v2  ;;  %3472 = vmatpush.msrb.mxu2 %v3054_v17  ;;  %v3234_v37 = vld [vmem:[%s8435_s10 + $0x980] sm:$0xff] }
 0x950   :  { %3505 = vmatpush.msrb.mxu0 %v3066_v63  ;;  %v3298_v24 = vld [vmem:[%s8435_s10 + $0xb80] sm:$0xff]  ;;  %3526 = vmatpush.msrb.mxu1 %v3126_v30 }
 0x951   :  { %3453 = vmatpush.msrb.mxu3 %v2986_v27  ;;  %3473 = vmatpush.msrb.mxu2 %v3050_v29  ;;  %v3058_v22 = vld [vmem:[%s8435_s10 + $0x400] sm:$0xff] }
 0x952   :  { %v3122_v52 = vld [vmem:[%s8435_s10 + $0x600] sm:$0xff]  ;;  %3506 = vmatpush.msrb.mxu0 %v3062_v3 }
 0x953   :  { %3454 = vmatpush.msrb.mxu3 %v2982_v54  ;;  %3474 = vmatpush.msrb.mxu2 %v3046_v51  ;;  %v3230_v2 = vld [vmem:[%s8435_s10 + $0x960] sm:$0xff] }
 0x954   :  { %v3294_v17 = vld [vmem:[%s8435_s10 + $0xb60] sm:$0xff]  ;;  %3507 = vmatpush.msrb.mxu0 %v3058_v22  ;;  %3527 = vmatpush.msrb.mxu1 %v3122_v52 }
 0x955   :  { %3455 = vmatpush.msrb.mxu3 %v2978_v57  ;;  %3475 = vmatpush.msrb.mxu2 %v3042_v12  ;;  %v3374_v27 = vld [vmem:[%s8435_s10 + $0xde0] sm:$0xff] }
 0x956   :  { %4745 = vmatmul.msk.f32.vlgmr.msra.gmra.mxu3 %vm2532_vm11, %v2741_v43  ;;  %4746 = vmatmul.msk.f32.vlgmr.msra.gmra.mxu2 %vm2532_vm11, %v2741_v43  ;;  %v3306_v43 = vld [vmem:[%s8435_s10 + $0xbc0] sm:$0xff] }
 0x957   :  { %3456 = vmatpush.msrb.mxu3 %v2974_v60  ;;  %3476 = vmatpush.msrb.mxu2 %v3038_v4  ;;  %v3438_v29 = vld [vmem:[%s8435_s10 + $0xfe0] sm:$0xff] }
 0x958   :  { %v3226_v54 = vld [vmem:[%s8435_s10 + $0x940] sm:$0xff]  ;;  %3572 = vmatpush.msra.mxu0 %v3374_v27  ;;  %3592 = vmatpush.msra.mxu1 %v3438_v29 }
 0x959   :  { %3457 = vmatpush.msrb.mxu3 %v2970_v47  ;;  %3477 = vmatpush.msrb.mxu2 %v3034_v62  ;;  %v3290_v51 = vld [vmem:[%s8435_s10 + $0xb40] sm:$0xff] }
 0x95a   :  { %v3370_v57 = vld [vmem:[%s8435_s10 + $0xdc0] sm:$0xff] }
 0x95b   :  { %3458 = vmatpush.msrb.mxu3 %v2966_v11  ;;  %3478 = vmatpush.msrb.mxu2 %v3030_v6  ;;  %v3434_v12 = vld [vmem:[%s8435_s10 + $0xfc0] sm:$0xff] }
 0x95c   :  { %v3222_v60 = vld [vmem:[%s8435_s10 + $0x920] sm:$0xff]  ;;  %3573 = vmatpush.msra.mxu0 %v3370_v57  ;;  %3593 = vmatpush.msra.mxu1 %v3434_v12 }
 0x95d   :  { %3459 = vmatpush.msrb.mxu3 %v2962_v25  ;;  %3479 = vmatpush.msrb.mxu2 %v3026_v21  ;;  %v3286_v4 = vld [vmem:[%s8435_s10 + $0xb20] sm:$0xff] }
 0x95e   :  { %v3366_v47 = vld [vmem:[%s8435_s10 + $0xda0] sm:$0xff] }
 0x95f   :  { %3460 = vmatpush.msrb.mxu3 %v2958_v7  ;;  %3480 = vmatpush.msrb.mxu2 %v3022_v5  ;;  %v3430_v62 = vld [vmem:[%s8435_s10 + $0xfa0] sm:$0xff] }
 0x960   :  { %v3218_v11 = vld [vmem:[%s8435_s10 + $0x900] sm:$0xff]  ;;  %3574 = vmatpush.msra.mxu0 %v3366_v47  ;;  %3594 = vmatpush.msra.mxu1 %v3430_v62  ;;  %v3055_v47 = vld [vmem:[%s8435_s10 + $0x3e8] sm:$0xff] }
 0x961   :  { %3461 = vmatpush.msrb.mxu3 %v2954_v23  ;;  %3481 = vmatpush.msrb.mxu2 %v3018_v35  ;;  %v3282_v6 = vld [vmem:[%s8435_s10 + $0xb00] sm:$0xff]  ;;  %v2987_v62 = vld [vmem:[%s8435_s10 + $0x1c8] sm:$0xff] }
 0x962   :  { %v3362_v25 = vld [vmem:[%s8435_s10 + $0xd80] sm:$0xff] }
 0x963   :  { %3462 = vmatpush.msrb.mxu3 %v2950_v44  ;;  %3482 = vmatpush.msrb.mxu2 %v3014_v50  ;;  %v3426_v21 = vld [vmem:[%s8435_s10 + $0xf80] sm:$0xff] }
 0x964   :  { %v3214_v7 = vld [vmem:[%s8435_s10 + $0x8e0] sm:$0xff]  ;;  %3575 = vmatpush.msra.mxu0 %v3362_v25  ;;  %3595 = vmatpush.msra.mxu1 %v3426_v21  ;;  %v2983_v21 = vld [vmem:[%s8435_s10 + $0x1a8] sm:$0xff] }
 0x965   :  { %3463 = vmatpush.msrb.mxu3 %v2946_v8  ;;  %3483 = vmatpush.msrb.mxu2 %v3010_v28  ;;  %v3278_v5 = vld [vmem:[%s8435_s10 + $0xae0] sm:$0xff] }
 0x966   :  { %v3358_v20 = vld [vmem:[%s8435_s10 + $0xd60] sm:$0xff] }
 0x967   :  { %3464 = vmatpush.msrb.mxu3 %v2942_v9  ;;  %3484 = vmatpush.msrb.mxu2 %v3006_v39  ;;  %v3422_v34 = vld [vmem:[%s8435_s10 + $0xf60] sm:$0xff] }
 0x968   :  { %v3210_v35 = vld [vmem:[%s8435_s10 + $0x8c0] sm:$0xff]  ;;  %3576 = vmatpush.msra.mxu0 %v3358_v20  ;;  %3596 = vmatpush.msra.mxu1 %v3422_v34 }
 0x969   :  { %3465 = vmatpush.msrb.mxu3 %v2938_v61  ;;  %3485 = vmatpush.msrb.mxu2 %v3002_v58  ;;  %v3274_v26 = vld [vmem:[%s8435_s10 + $0xac0] sm:$0xff] }
 0x96a   :  { %v3354_v53 = vld [vmem:[%s8435_s10 + $0xd40] sm:$0xff] }
 0x96b   :  { %3466 = vmatpush.msrb.mxu3 %v2934_v10  ;;  %3486 = vmatpush.msrb.mxu2 %v2998_v14  ;;  %v3418_v44 = vld [vmem:[%s8435_s10 + $0xf40] sm:$0xff] }
 0x96c   :  { %v3206_v50 = vld [vmem:[%s8435_s10 + $0x8a0] sm:$0xff]  ;;  %3577 = vmatpush.msra.mxu0 %v3354_v53  ;;  %3597 = vmatpush.msra.mxu1 %v3418_v44 }
 0x96d   :  { %3467 = vmatpush.msrb.mxu3 %v2930_v19  ;;  %3487 = vmatpush.msrb.mxu2 %v2994_v31  ;;  %v3270_v42 = vld [vmem:[%s8435_s10 + $0xaa0] sm:$0xff] }
 0x96e   :  { %v3350_v18 = vld [vmem:[%s8435_s10 + $0xd20] sm:$0xff] }
 0x96f   :  { %3532 = vmatpush.msra.mxu3 %v3246_v33  ;;  %3552 = vmatpush.msra.mxu2 %v3310_v55  ;;  %v3414_v8 = vld [vmem:[%s8435_s10 + $0xf20] sm:$0xff] }
 0x970   :  { %v3202_v28 = vld [vmem:[%s8435_s10 + $0x880] sm:$0xff]  ;;  %3578 = vmatpush.msra.mxu0 %v3350_v18  ;;  %3598 = vmatpush.msra.mxu1 %v3414_v8  ;;  %v3119_v18 = vld [vmem:[%s8435_s10 + $0x5e8] sm:$0xff] }
 0x971   :  { %3533 = vmatpush.msra.mxu3 %v3242_v48  ;;  %3553 = vmatpush.msra.mxu2 %v3306_v43  ;;  %v3266_v32 = vld [vmem:[%s8435_s10 + $0xa80] sm:$0xff]  ;;  %v3183_v8 = vld [vmem:[%s8435_s10 + $0x7e8] sm:$0xff] }
 0x972   :  { %v3346_v15 = vld [vmem:[%s8435_s10 + $0xd00] sm:$0xff] }
 0x973   :  { %3534 = vmatpush.msra.mxu3 %v3238_v49  ;;  %3554 = vmatpush.msra.mxu2 %v3302_v13  ;;  %v3410_v9 = vld [vmem:[%s8435_s10 + $0xf00] sm:$0xff] }
 0x974   :  { %v3198_v39 = vld [vmem:[%s8435_s10 + $0x860] sm:$0xff]  ;;  %3579 = vmatpush.msra.mxu0 %v3346_v15  ;;  %3599 = vmatpush.msra.mxu1 %v3410_v9  ;;  %v3115_v15 = vld [vmem:[%s8435_s10 + $0x5c8] sm:$0xff] }
 0x975   :  { %3535 = vmatpush.msra.mxu3 %v3234_v37  ;;  %3555 = vmatpush.msra.mxu2 %v3298_v24  ;;  %v3262_v40 = vld [vmem:[%s8435_s10 + $0xa60] sm:$0xff]  ;;  %v3179_v9 = vld [vmem:[%s8435_s10 + $0x7c8] sm:$0xff] }
 0x976   :  { %v3342_v41 = vld [vmem:[%s8435_s10 + $0xce0] sm:$0xff] }
 0x977   :  { %3536 = vmatpush.msra.mxu3 %v3230_v2  ;;  %3556 = vmatpush.msra.mxu2 %v3294_v17  ;;  %v3406_v61 = vld [vmem:[%s8435_s10 + $0xee0] sm:$0xff] }
 0x978   :  { %v3194_v45 = vld [vmem:[%s8435_s10 + $0x840] sm:$0xff]  ;;  %3580 = vmatpush.msra.mxu0 %v3342_v41  ;;  %3600 = vmatpush.msra.mxu1 %v3406_v61  ;;  %v2967_v41 = vld [vmem:[%s8435_s10 + $0x128] sm:$0xff] }
 0x979   :  { %3537 = vmatpush.msra.mxu3 %v3226_v54  ;;  %3557 = vmatpush.msra.mxu2 %v3290_v51  ;;  %v3258_v16 = vld [vmem:[%s8435_s10 + $0xa40] sm:$0xff]  ;;  %v3031_v61 = vld [vmem:[%s8435_s10 + $0x328] sm:$0xff] }
 0x97a   :  { %v3338_v10 = vld [vmem:[%s8435_s10 + $0xcc0] sm:$0xff] }
 0x97b   :  { %3538 = vmatpush.msra.mxu3 %v3222_v60  ;;  %3558 = vmatpush.msra.mxu2 %v3286_v4  ;;  %v3402_v14 = vld [vmem:[%s8435_s10 + $0xec0] sm:$0xff]  ;;  %v2991_v4 = vld [vmem:[%s8435_s10 + $0x1e8] sm:$0xff] }
 0x97c   :  { %v3190_v0 = vld [vmem:[%s8435_s10 + $0x820] sm:$0xff]  ;;  %3581 = vmatpush.msra.mxu0 %v3338_v10  ;;  %3601 = vmatpush.msra.mxu1 %v3402_v14  ;;  %v3175_v10 = vld [vmem:[%s8435_s10 + $0x7a8] sm:$0xff] }
 0x97d   :  { %3539 = vmatpush.msra.mxu3 %v3218_v11  ;;  %3559 = vmatpush.msra.mxu2 %v3282_v6  ;;  %v3254_v56 = vld [vmem:[%s8435_s10 + $0xa20] sm:$0xff]  ;;  %v3051_v11 = vld [vmem:[%s8435_s10 + $0x3c8] sm:$0xff] }
 0x97e   :  { %v3334_v19 = vld [vmem:[%s8435_s10 + $0xca0] sm:$0xff] }
 0x97f   :  { %3540 = vmatpush.msra.mxu3 %v3214_v7  ;;  %3560 = vmatpush.msra.mxu2 %v3278_v5  ;;  %v3398_v31 = vld [vmem:[%s8435_s10 + $0xea0] sm:$0xff]  ;;  %v3047_v7 = vld [vmem:[%s8435_s10 + $0x3a8] sm:$0xff] }
 0x980   :  { %v3186_v46 = vld [vmem:[%s8435_s10 + $0x800] sm:$0xff]  ;;  %3582 = vmatpush.msra.mxu0 %v3334_v19  ;;  %3602 = vmatpush.msra.mxu1 %v3398_v31  ;;  %v3027_v19 = vld [vmem:[%s8435_s10 + $0x308] sm:$0xff] }
 0x981   :  { %3541 = vmatpush.msra.mxu3 %v3210_v35  ;;  %3561 = vmatpush.msra.mxu2 %v3274_v26  ;;  %v3250_v59 = vld [vmem:[%s8435_s10 + $0xa00] sm:$0xff]  ;;  %v2979_v35 = vld [vmem:[%s8435_s10 + $0x188] sm:$0xff] }
 0x982   :  { %v3330_v55 = vld [vmem:[%s8435_s10 + $0xc80] sm:$0xff]  ;;  %v3043_v26 = vld [vmem:[%s8435_s10 + $0x388] sm:$0xff] }
 0x983   :  { %3542 = vmatpush.msra.mxu3 %v3206_v50  ;;  %3562 = vmatpush.msra.mxu2 %v3270_v42  ;;  %v3394_v36 = vld [vmem:[%s8435_s10 + $0xe80] sm:$0xff]  ;;  %v2975_v50 = vld [vmem:[%s8435_s10 + $0x168] sm:$0xff] }
 0x984   :  { %v3326_v38 = vld [vmem:[%s8435_s10 + $0xc60] sm:$0xff]  ;;  %3583 = vmatpush.msra.mxu0 %v3330_v55  ;;  %3603 = vmatpush.msra.mxu1 %v3394_v36  ;;  %v3039_v42 = vld [vmem:[%s8435_s10 + $0x368] sm:$0xff] }
 0x985   :  { %3543 = vmatpush.msra.mxu3 %v3202_v28  ;;  %3563 = vmatpush.msra.mxu2 %v3266_v32  ;;  %v3390_v48 = vld [vmem:[%s8435_s10 + $0xe60] sm:$0xff]  ;;  %v2971_v28 = vld [vmem:[%s8435_s10 + $0x148] sm:$0xff] }
 0x986   :  { %v3322_v63 = vld [vmem:[%s8435_s10 + $0xc40] sm:$0xff]  ;;  %3584 = vmatpush.msra.mxu0 %v3326_v38  ;;  %3604 = vmatpush.msra.mxu1 %v3390_v48  ;;  %v3035_v32 = vld [vmem:[%s8435_s10 + $0x348] sm:$0xff] }
 0x987   :  { %3544 = vmatpush.msra.mxu3 %v3198_v39  ;;  %3564 = vmatpush.msra.mxu2 %v3262_v40  ;;  %v3386_v1 = vld [vmem:[%s8435_s10 + $0xe40] sm:$0xff]  ;;  %v3107_v31 = vld [vmem:[%s8435_s10 + $0x588] sm:$0xff] }
 0x988   :  { %v3318_v49 = vld [vmem:[%s8435_s10 + $0xc20] sm:$0xff]  ;;  %3585 = vmatpush.msra.mxu0 %v3322_v63  ;;  %3605 = vmatpush.msra.mxu1 %v3386_v1  ;;  %v2959_v55 = vld [vmem:[%s8435_s10 + $0xe8] sm:$0xff] }
 0x989   :  { %3545 = vmatpush.msra.mxu3 %v3194_v45  ;;  %3565 = vmatpush.msra.mxu2 %v3258_v16  ;;  %v3382_v13 = vld [vmem:[%s8435_s10 + $0xe20] sm:$0xff]  ;;  %v3111_v16 = vld [vmem:[%s8435_s10 + $0x5a8] sm:$0xff] }
 0x98a   :  { %v3314_v3 = vld [vmem:[%s8435_s10 + $0xc00] sm:$0xff]  ;;  %3586 = vmatpush.msra.mxu0 %v3318_v49  ;;  %3606 = vmatpush.msra.mxu1 %v3382_v13  ;;  %v3023_v36 = vld [vmem:[%s8435_s10 + $0x2e8] sm:$0xff] }
 0x98b   :  { %3546 = vmatpush.msra.mxu3 %v3190_v0  ;;  %3566 = vmatpush.msra.mxu2 %v3254_v56  ;;  %v3378_v30 = vld [vmem:[%s8435_s10 + $0xe00] sm:$0xff]  ;;  %v2963_v56 = vld [vmem:[%s8435_s10 + $0x108] sm:$0xff] }
 0x98c   :  { %3587 = vmatpush.msra.mxu0 %v3314_v3  ;;  %3607 = vmatpush.msra.mxu1 %v3378_v30  ;;  %v6675_v2 = vld [vmem:[%s8436_s9] sm:$0xff]  ;;  %v3103_v38 = vld [vmem:[%s8435_s10 + $0x568] sm:$0xff] }
 0x98d   :  { %3547 = vmatpush.msra.mxu3 %v3186_v46  ;;  %3567 = vmatpush.msra.mxu2 %v3250_v59  ;;  %v2906_v17 = vperm.slane %v6675_v2, 0  ;;  %v2907_v27 = vperm.slane %v6675_v2, 1  ;;  %v2908_v6 = vperm.slane %v6675_v2, 2  ;;  %v2909_v25 = vperm.slane %v6675_v2, 3  ;;  %v3171_v46 = vld [vmem:[%s8435_s10 + $0x788] sm:$0xff] }
 0x98e   :  { %v2910_v39 = vperm.slane %v6675_v2, 4  ;;  %v2911_v40 = vperm.slane %v6675_v2, 5  ;;  %v3167_v48 = vld [vmem:[%s8435_s10 + $0x768] sm:$0xff]  ;;  %v2912_v13 = vperm.slane %v6675_v2, 6  ;;  %v2913_v3 = vperm.slane %v6675_v2, 7 }
 0x98f   :  { %v3019_v63 = vld [vmem:[%s8435_s10 + $0x2c8] sm:$0xff] }
 0x990   :  { %v3099_v1 = vld [vmem:[%s8435_s10 + $0x548] sm:$0xff] }
 0x991   :  { %v3163_v49 = vld [vmem:[%s8435_s10 + $0x748] sm:$0xff] }
 0x992   :  { %v3095_v2 = vld [vmem:[%s8435_s10 + $0x528] sm:$0xff] }
 0x998   :  { %v6554_v23 = vpop.f32.mrf.mxu2  ;;  %v2592_v33 = vpop.f32.mrf.mxu3 }
 0x9a0   :  { %v2572_v58 = vpop.f32.mrf.mxu2  ;;  %v6664_v37 = vpop.f32.mrf.mxu3 }
 0x9a8   :  { %v2612_v43 = vpop.f32.mrf.mxu2  ;;  %v6670_v52 = vpop.f32.mrf.mxu3 }
 0x9b0   :  { %v6666_v24 = vpop.f32.mrf.mxu2 }
 0x9b8   :  { %v6668_v22 = vpop.f32.mrf.mxu2 }
 0x9c1   :  { %v2761_v29 = vpop.f32.mrf.mxu3  ;;  %v2781_v54 = vpop.f32.mrf.mxu2 }
 0x9c2   :  { %v2762_v51 = vadd.f32 %v2761_v29, %v6554_v23  ;;  %v2782_v57 = vadd.f32 %v2781_v54, %v2572_v58  ;;  %v3159_v54 = vld [vmem:[%s8435_s10 + $0x728] sm:$0xff] }
 0x9c4   :  { %v6680_v12 = vadd.f32 %v2906_v17, %v2762_v51  ;;  %v6682_v60 = vadd.f32 %v2907_v27, %v2782_v57  ;;  %v3015_v17 = vld [vmem:[%s8435_s10 + $0x2a8] sm:$0xff] }
 0x9c5   :  { %v2947_v51 = vld [vmem:[%s8435_s10 + $0x88] sm:$0xff] }
 0x9c6   :  { %3468 = vmatmul.f32.vlgmr.msrb.gmra.mxu3 %v6680_v12  ;;  %3488 = vmatmul.f32.vlgmr.msrb.gmra.mxu2 %v6682_v60 }
 0x9c7   :  { %3612 = vmatpush.msrb.mxu3 %v2991_v4  ;;  %3632 = vmatpush.msrb.mxu2 %v3055_v47  ;;  %v3091_v4 = vld [vmem:[%s8435_s10 + $0x508] sm:$0xff] }
 0x9c8   :  { %v3155_v47 = vld [vmem:[%s8435_s10 + $0x708] sm:$0xff] }
 0x9c9   :  { %3613 = vmatpush.msrb.mxu3 %v2987_v62  ;;  %3633 = vmatpush.msrb.mxu2 %v3051_v11  ;;  %v2801_v5 = vpop.f32.mrf.mxu3  ;;  %v2821_v20 = vpop.f32.mrf.mxu2  ;;  %v2943_v62 = vld [vmem:[%s8435_s10 + $0x68] sm:$0xff] }
 0x9ca   :  { %v2802_v34 = vadd.f32 %v2801_v5, %v2592_v33  ;;  %v2822_v23 = vadd.f32 %v2821_v20, %v2612_v43  ;;  %v2955_v43 = vld [vmem:[%s8435_s10 + $0xc8] sm:$0xff] }
 0x9cb   :  { %3614 = vmatpush.msrb.mxu3 %v2983_v21  ;;  %3634 = vmatpush.msrb.mxu2 %v3047_v7  ;;  %v3007_v11 = vld [vmem:[%s8435_s10 + $0x268] sm:$0xff] }
 0x9cc   :  { %v6712_v53 = vadd.f32 %v2908_v6, %v2802_v34  ;;  %v6714_v44 = vadd.f32 %v2909_v25, %v2822_v23  ;;  %v3087_v6 = vld [vmem:[%s8435_s10 + $0x4e8] sm:$0xff] }
 0x9cd   :  { %3615 = vmatpush.msrb.mxu3 %v2979_v35  ;;  %3635 = vmatpush.msrb.mxu2 %v3043_v26  ;;  %v3151_v25 = vld [vmem:[%s8435_s10 + $0x6e8] sm:$0xff] }
 0x9ce   :  { %3508 = vmatmul.f32.vlgmr.msrb.gmra.mxu0 %v6712_v53  ;;  %3528 = vmatmul.f32.vlgmr.msrb.gmra.mxu1 %v6714_v44  ;;  %v2939_v21 = vld [vmem:[%s8435_s10 + $0x48] sm:$0xff] }
 0x9cf   :  { %3616 = vmatpush.msrb.mxu3 %v2975_v50  ;;  %3636 = vmatpush.msrb.mxu2 %v3039_v42  ;;  %v3003_v7 = vld [vmem:[%s8435_s10 + $0x248] sm:$0xff] }
 0x9d0   :  { %3652 = vmatpush.msrb.mxu0 %v3119_v18  ;;  %3672 = vmatpush.msrb.mxu1 %v3183_v8  ;;  %v3083_v5 = vld [vmem:[%s8435_s10 + $0x4c8] sm:$0xff] }
 0x9d1   :  { %3617 = vmatpush.msrb.mxu3 %v2971_v28  ;;  %3637 = vmatpush.msrb.mxu2 %v3035_v32  ;;  %v2841_v58 = vpop.f32.mrf.mxu3  ;;  %v2861_v45 = vpop.f32.mrf.mxu2  ;;  %v3147_v20 = vld [vmem:[%s8435_s10 + $0x6c8] sm:$0xff] }
 0x9d2   :  { %3653 = vmatpush.msrb.mxu0 %v3115_v15  ;;  %3673 = vmatpush.msrb.mxu1 %v3179_v9  ;;  %v2842_v14 = vadd.f32 %v2841_v58, %v6664_v37  ;;  %v2862_v0 = vadd.f32 %v2861_v45, %v6666_v24  ;;  %v2951_v24 = vld [vmem:[%s8435_s10 + $0xa8] sm:$0xff] }
 0x9d3   :  { %3618 = vmatpush.msrb.mxu3 %v2967_v41  ;;  %3638 = vmatpush.msrb.mxu2 %v3031_v61  ;;  %v2935_v34 = vld [vmem:[%s8435_s10 + $0x28] sm:$0xff] }
 0x9d4   :  { %v6770_v59 = vadd.f32 %v2910_v39, %v2842_v14  ;;  %v6772_v33 = vadd.f32 %v2911_v40, %v2862_v0  ;;  %3654 = vmatpush.msrb.mxu0 %v3111_v16  ;;  %3674 = vmatpush.msrb.mxu1 %v3175_v10  ;;  %v2999_v23 = vld [vmem:[%s8435_s10 + $0x228] sm:$0xff] }
 0x9d5   :  { %3619 = vmatpush.msrb.mxu3 %v2963_v56  ;;  %3639 = vmatpush.msrb.mxu2 %v3027_v19  ;;  %v3079_v35 = vld [vmem:[%s8435_s10 + $0x4a8] sm:$0xff] }
 0x9d6   :  { %3655 = vmatpush.msrb.mxu0 %v3107_v31  ;;  %3675 = vmatpush.msrb.mxu1 %v3171_v46  ;;  %v3143_v26 = vld [vmem:[%s8435_s10 + $0x6a8] sm:$0xff] }
 0x9d7   :  { %3548 = vmatmul.f32.vlgmr.msra.gmra.mxu3 %v6770_v59  ;;  %3568 = vmatmul.f32.vlgmr.msra.gmra.mxu2 %v6772_v33  ;;  %v2931_v50 = vld [vmem:[%s8435_s10 + $0x8] sm:$0xff] }
 0x9d8   :  { %3620 = vmatpush.msrb.mxu3 %v2959_v55  ;;  %3640 = vmatpush.msrb.mxu2 %v3023_v36  ;;  %v2995_v42 = vld [vmem:[%s8435_s10 + $0x208] sm:$0xff] }
 0x9d9   :  { %3656 = vmatpush.msrb.mxu0 %v3103_v38  ;;  %3676 = vmatpush.msrb.mxu1 %v3167_v48  ;;  %v2881_v30 = vpop.f32.mrf.mxu3  ;;  %v2901_v37 = vpop.f32.mrf.mxu2  ;;  %v3075_v18 = vld [vmem:[%s8435_s10 + $0x488] sm:$0xff] }
 0x9da   :  { %3621 = vmatpush.msrb.mxu3 %v2955_v43  ;;  %3641 = vmatpush.msrb.mxu2 %v3019_v63  ;;  %v2882_v27 = vadd.f32 %v2881_v30, %v6670_v52  ;;  %v2902_v29 = vadd.f32 %v2901_v37, %v6668_v22  ;;  %v3011_v52 = vld [vmem:[%s8435_s10 + $0x288] sm:$0xff] }
 0x9db   :  { %3657 = vmatpush.msrb.mxu0 %v3099_v1  ;;  %3677 = vmatpush.msrb.mxu1 %v3163_v49  ;;  %v3139_v8 = vld [vmem:[%s8435_s10 + $0x688] sm:$0xff] }
 0x9dc   :  { %v6822_v57 = vadd.f32 %v2912_v13, %v2882_v27  ;;  %v6824_v22 = vadd.f32 %v2913_v3, %v2902_v29  ;;  %3622 = vmatpush.msrb.mxu3 %v2951_v24  ;;  %3642 = vmatpush.msrb.mxu2 %v3015_v17  ;;  %v3247_v28 = vld [vmem:[%s8435_s10 + $0x9e8] sm:$0xff] }
 0x9dd   :  { %3658 = vmatpush.msrb.mxu0 %v3095_v2  ;;  %3678 = vmatpush.msrb.mxu1 %v3159_v54  ;;  %v3311_v32 = vld [vmem:[%s8435_s10 + $0xbe8] sm:$0xff] }
 0x9de   :  { %3623 = vmatpush.msrb.mxu3 %v2947_v51  ;;  %3643 = vmatpush.msrb.mxu2 %v3011_v52  ;;  %v3071_v15 = vld [vmem:[%s8435_s10 + $0x468] sm:$0xff] }
 0x9df   :  { %3659 = vmatpush.msrb.mxu0 %v3091_v4  ;;  %3679 = vmatpush.msrb.mxu1 %v3155_v47  ;;  %v3135_v9 = vld [vmem:[%s8435_s10 + $0x668] sm:$0xff] }
 0x9e0   :  { %3588 = vmatmul.f32.vlgmr.msra.gmra.mxu0 %v6822_v57  ;;  %3608 = vmatmul.f32.vlgmr.msra.gmra.mxu1 %v6824_v22  ;;  %v3243_v39 = vld [vmem:[%s8435_s10 + $0x9c8] sm:$0xff] }
 0x9e1   :  { %3624 = vmatpush.msrb.mxu3 %v2943_v62  ;;  %3644 = vmatpush.msrb.mxu2 %v3007_v11  ;;  %v3307_v40 = vld [vmem:[%s8435_s10 + $0xbc8] sm:$0xff] }
 0x9e2   :  { %3660 = vmatpush.msrb.mxu0 %v3087_v6  ;;  %3680 = vmatpush.msrb.mxu1 %v3151_v25  ;;  %v3067_v41 = vld [vmem:[%s8435_s10 + $0x448] sm:$0xff] }
 0x9e3   :  { %3625 = vmatpush.msrb.mxu3 %v2939_v21  ;;  %3645 = vmatpush.msrb.mxu2 %v3003_v7  ;;  %v3131_v61 = vld [vmem:[%s8435_s10 + $0x648] sm:$0xff] }
 0x9e4   :  { %3661 = vmatpush.msrb.mxu0 %v3083_v5  ;;  %3681 = vmatpush.msrb.mxu1 %v3147_v20  ;;  %v3239_v58 = vld [vmem:[%s8435_s10 + $0x9a8] sm:$0xff] }
 0x9e5   :  { %3626 = vmatpush.msrb.mxu3 %v2935_v34  ;;  %3646 = vmatpush.msrb.mxu2 %v2999_v23  ;;  %v3303_v45 = vld [vmem:[%s8435_s10 + $0xba8] sm:$0xff] }
 0x9e6   :  { %3662 = vmatpush.msrb.mxu0 %v3079_v35  ;;  %3682 = vmatpush.msrb.mxu1 %v3143_v26  ;;  %v3063_v16 = vld [vmem:[%s8435_s10 + $0x428] sm:$0xff] }
 0x9e7   :  { %3627 = vmatpush.msrb.mxu3 %v2931_v50  ;;  %3647 = vmatpush.msrb.mxu2 %v2995_v42  ;;  %v3127_v10 = vld [vmem:[%s8435_s10 + $0x628] sm:$0xff] }
 0x9e8   :  { %3663 = vmatpush.msrb.mxu0 %v3075_v18  ;;  %3683 = vmatpush.msrb.mxu1 %v3139_v8  ;;  %v3235_v14 = vld [vmem:[%s8435_s10 + $0x988] sm:$0xff] }
 0x9e9   :  { %3628 = vmatmul.f32.vlgmr.msrb.gmra.mxu3 %v6680_v12  ;;  %3648 = vmatmul.f32.vlgmr.msrb.gmra.mxu2 %v6682_v60  ;;  %v3299_v0 = vld [vmem:[%s8435_s10 + $0xb88] sm:$0xff] }
 0x9ea   :  { %3692 = vmatpush.msra.mxu3 %v3247_v28  ;;  %3712 = vmatpush.msra.mxu2 %v3311_v32  ;;  %v3059_v56 = vld [vmem:[%s8435_s10 + $0x408] sm:$0xff] }
 0x9eb   :  { %3664 = vmatpush.msrb.mxu0 %v3071_v15  ;;  %3684 = vmatpush.msrb.mxu1 %v3135_v9  ;;  %v3123_v19 = vld [vmem:[%s8435_s10 + $0x608] sm:$0xff] }
 0x9ec   :  { %3693 = vmatpush.msra.mxu3 %v3243_v39  ;;  %3713 = vmatpush.msra.mxu2 %v3307_v40  ;;  %v3231_v31 = vld [vmem:[%s8435_s10 + $0x968] sm:$0xff] }
 0x9ed   :  { %3665 = vmatpush.msrb.mxu0 %v3067_v41  ;;  %3685 = vmatpush.msrb.mxu1 %v3131_v61  ;;  %v3295_v46 = vld [vmem:[%s8435_s10 + $0xb68] sm:$0xff] }
 0x9ee   :  { %3694 = vmatpush.msra.mxu3 %v3239_v58  ;;  %3714 = vmatpush.msra.mxu2 %v3303_v45  ;;  %v3375_v55 = vld [vmem:[%s8435_s10 + $0xde8] sm:$0xff]  ;;  %v2992_v58 = vld [vmem:[%s8435_s10 + $0x1f0] sm:$0xff] }
 0x9ef   :  { %3666 = vmatpush.msrb.mxu0 %v3063_v16  ;;  %3686 = vmatpush.msrb.mxu1 %v3127_v10  ;;  %v3439_v36 = vld [vmem:[%s8435_s10 + $0xfe8] sm:$0xff]  ;;  %v3056_v45 = vld [vmem:[%s8435_s10 + $0x3f0] sm:$0xff] }
 0x9f0   :  { %3695 = vmatpush.msra.mxu3 %v3235_v14  ;;  %3715 = vmatpush.msra.mxu2 %v3299_v0  ;;  %v3227_v38 = vld [vmem:[%s8435_s10 + $0x948] sm:$0xff]  ;;  %v2988_v14 = vld [vmem:[%s8435_s10 + $0x1d0] sm:$0xff] }
 0x9f1   :  { %3667 = vmatpush.msrb.mxu0 %v3059_v56  ;;  %3687 = vmatpush.msrb.mxu1 %v3123_v19  ;;  %v3291_v48 = vld [vmem:[%s8435_s10 + $0xb48] sm:$0xff]  ;;  %v3052_v0 = vld [vmem:[%s8435_s10 + $0x3d0] sm:$0xff] }
 0x9f2   :  { %3668 = vmatmul.f32.vlgmr.msrb.gmra.mxu0 %v6712_v53  ;;  %3688 = vmatmul.f32.vlgmr.msrb.gmra.mxu1 %v6714_v44  ;;  %v3371_v43 = vld [vmem:[%s8435_s10 + $0xdc8] sm:$0xff] }
 0x9f3   :  { %3696 = vmatpush.msra.mxu3 %v3231_v31  ;;  %3716 = vmatpush.msra.mxu2 %v3295_v46  ;;  %v3435_v63 = vld [vmem:[%s8435_s10 + $0xfc8] sm:$0xff]  ;;  %v2984_v31 = vld [vmem:[%s8435_s10 + $0x1b0] sm:$0xff] }
 0x9f4   :  { %3732 = vmatpush.msra.mxu0 %v3375_v55  ;;  %3752 = vmatpush.msra.mxu1 %v3439_v36  ;;  %v3223_v1 = vld [vmem:[%s8435_s10 + $0x928] sm:$0xff]  ;;  %v3048_v46 = vld [vmem:[%s8435_s10 + $0x3b0] sm:$0xff] }
 0x9f5   :  { %v3287_v49 = vld [vmem:[%s8435_s10 + $0xb28] sm:$0xff]  ;;  %3697 = vmatpush.msra.mxu3 %v3227_v38  ;;  %3717 = vmatpush.msra.mxu2 %v3291_v48  ;;  %v2980_v38 = vld [vmem:[%s8435_s10 + $0x190] sm:$0xff] }
 0x9f6   :  { %v3367_v13 = vld [vmem:[%s8435_s10 + $0xda8] sm:$0xff]  ;;  %3733 = vmatpush.msra.mxu0 %v3371_v43  ;;  %3753 = vmatpush.msra.mxu1 %v3435_v63  ;;  %v3044_v48 = vld [vmem:[%s8435_s10 + $0x390] sm:$0xff] }
 0x9f7   :  { %v3431_v3 = vld [vmem:[%s8435_s10 + $0xfa8] sm:$0xff]  ;;  %3698 = vmatpush.msra.mxu3 %v3223_v1  ;;  %3718 = vmatpush.msra.mxu2 %v3287_v49  ;;  %v2976_v1 = vld [vmem:[%s8435_s10 + $0x170] sm:$0xff] }
 0x9f8   :  { %v3219_v30 = vld [vmem:[%s8435_s10 + $0x908] sm:$0xff]  ;;  %3734 = vmatpush.msra.mxu0 %v3367_v13  ;;  %3754 = vmatpush.msra.mxu1 %v3431_v3  ;;  %v3040_v49 = vld [vmem:[%s8435_s10 + $0x370] sm:$0xff] }
 0x9f9   :  { %v3283_v37 = vld [vmem:[%s8435_s10 + $0xb08] sm:$0xff]  ;;  %3699 = vmatpush.msra.mxu3 %v3219_v30  ;;  %v3120_v13 = vld [vmem:[%s8435_s10 + $0x5f0] sm:$0xff] }
 0x9fa   :  { %v3363_v24 = vld [vmem:[%s8435_s10 + $0xd88] sm:$0xff]  ;;  %3719 = vmatpush.msra.mxu2 %v3283_v37  ;;  %v3184_v3 = vld [vmem:[%s8435_s10 + $0x7f0] sm:$0xff] }
 0x9fb   :  { %v3427_v17 = vld [vmem:[%s8435_s10 + $0xf88] sm:$0xff]  ;;  %3735 = vmatpush.msra.mxu0 %v3363_v24  ;;  %v2972_v30 = vld [vmem:[%s8435_s10 + $0x150] sm:$0xff] }
 0x9fc   :  { %v3215_v27 = vld [vmem:[%s8435_s10 + $0x8e8] sm:$0xff]  ;;  %3755 = vmatpush.msra.mxu1 %v3427_v17  ;;  %v3036_v37 = vld [vmem:[%s8435_s10 + $0x350] sm:$0xff] }
 0x9fd   :  { %v3279_v29 = vld [vmem:[%s8435_s10 + $0xae8] sm:$0xff]  ;;  %3700 = vmatpush.msra.mxu3 %v3215_v27  ;;  %v3116_v24 = vld [vmem:[%s8435_s10 + $0x5d0] sm:$0xff] }
 0x9fe   :  { %v3359_v2 = vld [vmem:[%s8435_s10 + $0xd68] sm:$0xff]  ;;  %3720 = vmatpush.msra.mxu2 %v3279_v29  ;;  %v3180_v17 = vld [vmem:[%s8435_s10 + $0x7d0] sm:$0xff] }
 0x9ff   :  { %v3423_v54 = vld [vmem:[%s8435_s10 + $0xf68] sm:$0xff]  ;;  %3736 = vmatpush.msra.mxu0 %v3359_v2  ;;  %v2968_v27 = vld [vmem:[%s8435_s10 + $0x130] sm:$0xff] }
 0xa00   :  { %v3211_v51 = vld [vmem:[%s8435_s10 + $0x8c8] sm:$0xff]  ;;  %3756 = vmatpush.msra.mxu1 %v3423_v54  ;;  %v3032_v29 = vld [vmem:[%s8435_s10 + $0x330] sm:$0xff] }
 0xa01   :  { %v3275_v52 = vld [vmem:[%s8435_s10 + $0xac8] sm:$0xff]  ;;  %3701 = vmatpush.msra.mxu3 %v3211_v51  ;;  %v3112_v2 = vld [vmem:[%s8435_s10 + $0x5b0] sm:$0xff] }
 0xa02   :  { %v3355_v4 = vld [vmem:[%s8435_s10 + $0xd48] sm:$0xff]  ;;  %3721 = vmatpush.msra.mxu2 %v3275_v52  ;;  %v3176_v54 = vld [vmem:[%s8435_s10 + $0x7b0] sm:$0xff] }
 0xa03   :  { %v3419_v47 = vld [vmem:[%s8435_s10 + $0xf48] sm:$0xff]  ;;  %3737 = vmatpush.msra.mxu0 %v3355_v4  ;;  %v2964_v51 = vld [vmem:[%s8435_s10 + $0x110] sm:$0xff] }
 0xa04   :  { %v3207_v62 = vld [vmem:[%s8435_s10 + $0x8a8] sm:$0xff]  ;;  %3757 = vmatpush.msra.mxu1 %v3419_v47  ;;  %v3028_v52 = vld [vmem:[%s8435_s10 + $0x310] sm:$0xff] }
 0xa05   :  { %v3271_v11 = vld [vmem:[%s8435_s10 + $0xaa8] sm:$0xff]  ;;  %3702 = vmatpush.msra.mxu3 %v3207_v62  ;;  %v3108_v4 = vld [vmem:[%s8435_s10 + $0x590] sm:$0xff] }
 0xa06   :  { %v3351_v6 = vld [vmem:[%s8435_s10 + $0xd28] sm:$0xff]  ;;  %3722 = vmatpush.msra.mxu2 %v3271_v11  ;;  %v3172_v47 = vld [vmem:[%s8435_s10 + $0x790] sm:$0xff] }
 0xa07   :  { %v3415_v25 = vld [vmem:[%s8435_s10 + $0xf28] sm:$0xff]  ;;  %3738 = vmatpush.msra.mxu0 %v3351_v6  ;;  %v2960_v62 = vld [vmem:[%s8435_s10 + $0xf0] sm:$0xff] }
 0xa08   :  { %v3203_v21 = vld [vmem:[%s8435_s10 + $0x888] sm:$0xff]  ;;  %3758 = vmatpush.msra.mxu1 %v3415_v25  ;;  %v3024_v11 = vld [vmem:[%s8435_s10 + $0x2f0] sm:$0xff] }
 0xa09   :  { %v3267_v7 = vld [vmem:[%s8435_s10 + $0xa88] sm:$0xff]  ;;  %3703 = vmatpush.msra.mxu3 %v3203_v21  ;;  %v3104_v6 = vld [vmem:[%s8435_s10 + $0x570] sm:$0xff] }
 0xa0a   :  { %v3347_v5 = vld [vmem:[%s8435_s10 + $0xd08] sm:$0xff]  ;;  %3723 = vmatpush.msra.mxu2 %v3267_v7  ;;  %v3168_v25 = vld [vmem:[%s8435_s10 + $0x770] sm:$0xff] }
 0xa0b   :  { %v3411_v20 = vld [vmem:[%s8435_s10 + $0xf08] sm:$0xff]  ;;  %3739 = vmatpush.msra.mxu0 %v3347_v5  ;;  %v2956_v21 = vld [vmem:[%s8435_s10 + $0xd0] sm:$0xff] }
 0xa0c   :  { %v3199_v34 = vld [vmem:[%s8435_s10 + $0x868] sm:$0xff]  ;;  %3759 = vmatpush.msra.mxu1 %v3411_v20  ;;  %v3020_v7 = vld [vmem:[%s8435_s10 + $0x2d0] sm:$0xff] }
 0xa0d   :  { %v3263_v23 = vld [vmem:[%s8435_s10 + $0xa68] sm:$0xff]  ;;  %3704 = vmatpush.msra.mxu3 %v3199_v34  ;;  %v3100_v5 = vld [vmem:[%s8435_s10 + $0x550] sm:$0xff] }
 0xa0e   :  { %v3343_v35 = vld [vmem:[%s8435_s10 + $0xce8] sm:$0xff]  ;;  %3724 = vmatpush.msra.mxu2 %v3263_v23  ;;  %v3164_v20 = vld [vmem:[%s8435_s10 + $0x750] sm:$0xff] }
 0xa0f   :  { %v3407_v26 = vld [vmem:[%s8435_s10 + $0xee8] sm:$0xff]  ;;  %3740 = vmatpush.msra.mxu0 %v3343_v35  ;;  %v2952_v34 = vld [vmem:[%s8435_s10 + $0xb0] sm:$0xff] }
 0xa10   :  { %v3195_v50 = vld [vmem:[%s8435_s10 + $0x848] sm:$0xff]  ;;  %3760 = vmatpush.msra.mxu1 %v3407_v26  ;;  %v3016_v23 = vld [vmem:[%s8435_s10 + $0x2b0] sm:$0xff] }
 0xa11   :  { %v3259_v42 = vld [vmem:[%s8435_s10 + $0xa48] sm:$0xff]  ;;  %3705 = vmatpush.msra.mxu3 %v3195_v50  ;;  %v3096_v35 = vld [vmem:[%s8435_s10 + $0x530] sm:$0xff] }
 0xa12   :  { %v3339_v18 = vld [vmem:[%s8435_s10 + $0xcc8] sm:$0xff]  ;;  %3725 = vmatpush.msra.mxu2 %v3259_v42  ;;  %v3160_v26 = vld [vmem:[%s8435_s10 + $0x730] sm:$0xff] }
 0xa13   :  { %v3403_v8 = vld [vmem:[%s8435_s10 + $0xec8] sm:$0xff]  ;;  %3741 = vmatpush.msra.mxu0 %v3339_v18  ;;  %v2948_v50 = vld [vmem:[%s8435_s10 + $0x90] sm:$0xff] }
 0xa14   :  { %v3191_v28 = vld [vmem:[%s8435_s10 + $0x828] sm:$0xff]  ;;  %3761 = vmatpush.msra.mxu1 %v3403_v8  ;;  %v3012_v42 = vld [vmem:[%s8435_s10 + $0x290] sm:$0xff] }
 0xa15   :  { %v3255_v32 = vld [vmem:[%s8435_s10 + $0xa28] sm:$0xff]  ;;  %3706 = vmatpush.msra.mxu3 %v3191_v28  ;;  %v3092_v18 = vld [vmem:[%s8435_s10 + $0x510] sm:$0xff] }
 0xa16   :  { %v3335_v15 = vld [vmem:[%s8435_s10 + $0xca8] sm:$0xff]  ;;  %3726 = vmatpush.msra.mxu2 %v3255_v32  ;;  %v3156_v8 = vld [vmem:[%s8435_s10 + $0x710] sm:$0xff] }
 0xa17   :  { %v3399_v9 = vld [vmem:[%s8435_s10 + $0xea8] sm:$0xff]  ;;  %3742 = vmatpush.msra.mxu0 %v3335_v15  ;;  %v2944_v28 = vld [vmem:[%s8435_s10 + $0x70] sm:$0xff] }
 0xa18   :  { %v3187_v39 = vld [vmem:[%s8435_s10 + $0x808] sm:$0xff]  ;;  %3762 = vmatpush.msra.mxu1 %v3399_v9  ;;  %v3008_v32 = vld [vmem:[%s8435_s10 + $0x270] sm:$0xff] }
 0xa19   :  { %v3251_v40 = vld [vmem:[%s8435_s10 + $0xa08] sm:$0xff]  ;;  %3707 = vmatpush.msra.mxu3 %v3187_v39  ;;  %v3088_v15 = vld [vmem:[%s8435_s10 + $0x4f0] sm:$0xff] }
 0xa1a   :  { %v3331_v41 = vld [vmem:[%s8435_s10 + $0xc88] sm:$0xff]  ;;  %3727 = vmatpush.msra.mxu2 %v3251_v40  ;;  %3708 = vmatmul.f32.vlgmr.msra.gmra.mxu3 %v6770_v59  ;;  %v3152_v9 = vld [vmem:[%s8435_s10 + $0x6f0] sm:$0xff] }
 0xa1b   :  { %v3395_v61 = vld [vmem:[%s8435_s10 + $0xe88] sm:$0xff]  ;;  %3743 = vmatpush.msra.mxu0 %v3331_v41  ;;  %3728 = vmatmul.f32.vlgmr.msra.gmra.mxu2 %v6772_v33  ;;  %v2940_v39 = vld [vmem:[%s8435_s10 + $0x50] sm:$0xff] }
 0xa1c   :  { %3763 = vmatpush.msra.mxu1 %v3395_v61  ;;  %v3327_v16 = vld [vmem:[%s8435_s10 + $0xc68] sm:$0xff]  ;;  %3772 = vmatpush.msrb.mxu3 %v2992_v58  ;;  %v3004_v40 = vld [vmem:[%s8435_s10 + $0x250] sm:$0xff] }
 0xa1d   :  { %v3391_v10 = vld [vmem:[%s8435_s10 + $0xe68] sm:$0xff]  ;;  %3792 = vmatpush.msrb.mxu2 %v3056_v45  ;;  %3744 = vmatpush.msra.mxu0 %v3327_v16  ;;  %v3084_v41 = vld [vmem:[%s8435_s10 + $0x4d0] sm:$0xff] }
 0xa1e   :  { %v3323_v56 = vld [vmem:[%s8435_s10 + $0xc48] sm:$0xff]  ;;  %3764 = vmatpush.msra.mxu1 %v3391_v10  ;;  %3773 = vmatpush.msrb.mxu3 %v2988_v14  ;;  %v3148_v61 = vld [vmem:[%s8435_s10 + $0x6d0] sm:$0xff] }
 0xa1f   :  { %v3387_v19 = vld [vmem:[%s8435_s10 + $0xe48] sm:$0xff]  ;;  %3793 = vmatpush.msrb.mxu2 %v3052_v0  ;;  %3745 = vmatpush.msra.mxu0 %v3323_v56  ;;  %v2936_v58 = vld [vmem:[%s8435_s10 + $0x30] sm:$0xff] }
 0xa20   :  { %v3319_v55 = vld [vmem:[%s8435_s10 + $0xc28] sm:$0xff]  ;;  %3765 = vmatpush.msra.mxu1 %v3387_v19  ;;  %3774 = vmatpush.msrb.mxu3 %v2984_v31  ;;  %v3000_v45 = vld [vmem:[%s8435_s10 + $0x230] sm:$0xff] }
 0xa21   :  { %v3383_v36 = vld [vmem:[%s8435_s10 + $0xe28] sm:$0xff]  ;;  %3794 = vmatpush.msrb.mxu2 %v3048_v46  ;;  %3746 = vmatpush.msra.mxu0 %v3319_v55  ;;  %v3080_v16 = vld [vmem:[%s8435_s10 + $0x4b0] sm:$0xff] }
 0xa22   :  { %v3315_v43 = vld [vmem:[%s8435_s10 + $0xc08] sm:$0xff]  ;;  %3766 = vmatpush.msra.mxu1 %v3383_v36  ;;  %3775 = vmatpush.msrb.mxu3 %v2980_v38  ;;  %v3144_v10 = vld [vmem:[%s8435_s10 + $0x6b0] sm:$0xff] }
 0xa23   :  { %v3379_v63 = vld [vmem:[%s8435_s10 + $0xe08] sm:$0xff]  ;;  %3795 = vmatpush.msrb.mxu2 %v3044_v48  ;;  %3747 = vmatpush.msra.mxu0 %v3315_v43  ;;  %v2932_v14 = vld [vmem:[%s8435_s10 + $0x10] sm:$0xff] }
 0xa24   :  { %3767 = vmatpush.msra.mxu1 %v3379_v63  ;;  %3748 = vmatmul.f32.vlgmr.msra.gmra.mxu0 %v6822_v57  ;;  %v2996_v0 = vld [vmem:[%s8435_s10 + $0x210] sm:$0xff] }
 0xa25   :  { %3768 = vmatmul.f32.vlgmr.msra.gmra.mxu1 %v6824_v22  ;;  %3776 = vmatpush.msrb.mxu3 %v2976_v1  ;;  %v3076_v56 = vld [vmem:[%s8435_s10 + $0x490] sm:$0xff] }
 0xa26   :  { %3796 = vmatpush.msrb.mxu2 %v3040_v49  ;;  %3812 = vmatpush.msrb.mxu0 %v3120_v13  ;;  %v3140_v19 = vld [vmem:[%s8435_s10 + $0x690] sm:$0xff] }
 0xa27   :  { %3832 = vmatpush.msrb.mxu1 %v3184_v3  ;;  %3777 = vmatpush.msrb.mxu3 %v2972_v30  ;;  %v3248_v31 = vld [vmem:[%s8435_s10 + $0x9f0] sm:$0xff] }
 0xa28   :  { %3797 = vmatpush.msrb.mxu2 %v3036_v37  ;;  %3813 = vmatpush.msrb.mxu0 %v3116_v24  ;;  %v3312_v46 = vld [vmem:[%s8435_s10 + $0xbf0] sm:$0xff] }
 0xa29   :  { %3833 = vmatpush.msrb.mxu1 %v3180_v17  ;;  %3778 = vmatpush.msrb.mxu3 %v2968_v27  ;;  %v3072_v55 = vld [vmem:[%s8435_s10 + $0x470] sm:$0xff] }
 0xa2a   :  { %3798 = vmatpush.msrb.mxu2 %v3032_v29  ;;  %3814 = vmatpush.msrb.mxu0 %v3112_v2  ;;  %v3136_v36 = vld [vmem:[%s8435_s10 + $0x670] sm:$0xff] }
 0xa2b   :  { %3834 = vmatpush.msrb.mxu1 %v3176_v54  ;;  %3779 = vmatpush.msrb.mxu3 %v2964_v51  ;;  %v3244_v38 = vld [vmem:[%s8435_s10 + $0x9d0] sm:$0xff] }
 0xa2c   :  { %3799 = vmatpush.msrb.mxu2 %v3028_v52  ;;  %3815 = vmatpush.msrb.mxu0 %v3108_v4  ;;  %v3308_v48 = vld [vmem:[%s8435_s10 + $0xbd0] sm:$0xff] }
 0xa2d   :  { %3835 = vmatpush.msrb.mxu1 %v3172_v47  ;;  %3780 = vmatpush.msrb.mxu3 %v2960_v62  ;;  %v3068_v43 = vld [vmem:[%s8435_s10 + $0x450] sm:$0xff] }
 0xa2e   :  { %3800 = vmatpush.msrb.mxu2 %v3024_v11  ;;  %3816 = vmatpush.msrb.mxu0 %v3104_v6  ;;  %v3132_v63 = vld [vmem:[%s8435_s10 + $0x650] sm:$0xff] }
 0xa2f   :  { %3836 = vmatpush.msrb.mxu1 %v3168_v25  ;;  %3781 = vmatpush.msrb.mxu3 %v2956_v21  ;;  %v3240_v1 = vld [vmem:[%s8435_s10 + $0x9b0] sm:$0xff] }
 0xa30   :  { %3801 = vmatpush.msrb.mxu2 %v3020_v7  ;;  %3817 = vmatpush.msrb.mxu0 %v3100_v5  ;;  %v3304_v49 = vld [vmem:[%s8435_s10 + $0xbb0] sm:$0xff] }
 0xa31   :  { %3837 = vmatpush.msrb.mxu1 %v3164_v20  ;;  %3782 = vmatpush.msrb.mxu3 %v2952_v34  ;;  %v3064_v13 = vld [vmem:[%s8435_s10 + $0x430] sm:$0xff] }
 0xa32   :  { %3802 = vmatpush.msrb.mxu2 %v3016_v23  ;;  %3818 = vmatpush.msrb.mxu0 %v3096_v35  ;;  %v3128_v3 = vld [vmem:[%s8435_s10 + $0x630] sm:$0xff] }
 0xa33   :  { %3838 = vmatpush.msrb.mxu1 %v3160_v26  ;;  %3783 = vmatpush.msrb.mxu3 %v2948_v50  ;;  %v3236_v30 = vld [vmem:[%s8435_s10 + $0x990] sm:$0xff] }
 0xa34   :  { %3803 = vmatpush.msrb.mxu2 %v3012_v42  ;;  %3819 = vmatpush.msrb.mxu0 %v3092_v18  ;;  %v3300_v37 = vld [vmem:[%s8435_s10 + $0xb90] sm:$0xff] }
 0xa35   :  { %3839 = vmatpush.msrb.mxu1 %v3156_v8  ;;  %3784 = vmatpush.msrb.mxu3 %v2944_v28  ;;  %v3060_v24 = vld [vmem:[%s8435_s10 + $0x410] sm:$0xff] }
 0xa36   :  { %3804 = vmatpush.msrb.mxu2 %v3008_v32  ;;  %3820 = vmatpush.msrb.mxu0 %v3088_v15  ;;  %v3124_v17 = vld [vmem:[%s8435_s10 + $0x610] sm:$0xff] }
 0xa37   :  { %3840 = vmatpush.msrb.mxu1 %v3152_v9  ;;  %3785 = vmatpush.msrb.mxu3 %v2940_v39  ;;  %v3232_v27 = vld [vmem:[%s8435_s10 + $0x970] sm:$0xff] }
 0xa38   :  { %3805 = vmatpush.msrb.mxu2 %v3004_v40  ;;  %3821 = vmatpush.msrb.mxu0 %v3084_v41  ;;  %v3296_v29 = vld [vmem:[%s8435_s10 + $0xb70] sm:$0xff] }
 0xa39   :  { %3841 = vmatpush.msrb.mxu1 %v3148_v61  ;;  %3786 = vmatpush.msrb.mxu3 %v2936_v58  ;;  %v3376_v2 = vld [vmem:[%s8435_s10 + $0xdf0] sm:$0xff] }
 0xa3a   :  { %3806 = vmatpush.msrb.mxu2 %v3000_v45  ;;  %3822 = vmatpush.msrb.mxu0 %v3080_v16  ;;  %v3440_v54 = vld [vmem:[%s8435_s10 + $0xff0] sm:$0xff] }
 0xa3b   :  { %3842 = vmatpush.msrb.mxu1 %v3144_v10  ;;  %3787 = vmatpush.msrb.mxu3 %v2932_v14  ;;  %v3228_v51 = vld [vmem:[%s8435_s10 + $0x950] sm:$0xff] }
 0xa3c   :  { %3807 = vmatpush.msrb.mxu2 %v2996_v0  ;;  %3823 = vmatpush.msrb.mxu0 %v3076_v56  ;;  %v3292_v52 = vld [vmem:[%s8435_s10 + $0xb50] sm:$0xff] }
 0xa3d   :  { %3843 = vmatpush.msrb.mxu1 %v3140_v19  ;;  %3788 = vmatmul.f32.vlgmr.msrb.gmra.mxu3 %v6680_v12  ;;  %v3372_v4 = vld [vmem:[%s8435_s10 + $0xdd0] sm:$0xff] }
 0xa3e   :  { %3808 = vmatmul.f32.vlgmr.msrb.gmra.mxu2 %v6682_v60  ;;  %3852 = vmatpush.msra.mxu3 %v3248_v31  ;;  %v3436_v47 = vld [vmem:[%s8435_s10 + $0xfd0] sm:$0xff] }
 0xa3f   :  { %3872 = vmatpush.msra.mxu2 %v3312_v46  ;;  %3824 = vmatpush.msrb.mxu0 %v3072_v55  ;;  %v3224_v62 = vld [vmem:[%s8435_s10 + $0x930] sm:$0xff] }
 0xa40   :  { %3844 = vmatpush.msrb.mxu1 %v3136_v36  ;;  %3853 = vmatpush.msra.mxu3 %v3244_v38  ;;  %v3288_v11 = vld [vmem:[%s8435_s10 + $0xb30] sm:$0xff] }
 0xa41   :  { %3873 = vmatpush.msra.mxu2 %v3308_v48  ;;  %3825 = vmatpush.msrb.mxu0 %v3068_v43  ;;  %v3368_v6 = vld [vmem:[%s8435_s10 + $0xdb0] sm:$0xff] }
 0xa42   :  { %3845 = vmatpush.msrb.mxu1 %v3132_v63  ;;  %3854 = vmatpush.msra.mxu3 %v3240_v1  ;;  %v3432_v25 = vld [vmem:[%s8435_s10 + $0xfb0] sm:$0xff]  ;;  %v2993_v1 = vld [vmem:[%s8435_s10 + $0x1f8] sm:$0xff] }
 0xa43   :  { %3874 = vmatpush.msra.mxu2 %v3304_v49  ;;  %3826 = vmatpush.msrb.mxu0 %v3064_v13  ;;  %v3220_v21 = vld [vmem:[%s8435_s10 + $0x910] sm:$0xff]  ;;  %v3057_v49 = vld [vmem:[%s8435_s10 + $0x3f8] sm:$0xff] }
 0xa44   :  { %3846 = vmatpush.msrb.mxu1 %v3128_v3  ;;  %3855 = vmatpush.msra.mxu3 %v3236_v30  ;;  %v3284_v7 = vld [vmem:[%s8435_s10 + $0xb10] sm:$0xff]  ;;  %v2989_v30 = vld [vmem:[%s8435_s10 + $0x1d8] sm:$0xff] }
 0xa45   :  { %3875 = vmatpush.msra.mxu2 %v3300_v37  ;;  %3827 = vmatpush.msrb.mxu0 %v3060_v24  ;;  %v3364_v5 = vld [vmem:[%s8435_s10 + $0xd90] sm:$0xff]  ;;  %v3053_v37 = vld [vmem:[%s8435_s10 + $0x3d8] sm:$0xff] }
 0xa46   :  { %3847 = vmatpush.msrb.mxu1 %v3124_v17  ;;  %3828 = vmatmul.f32.vlgmr.msrb.gmra.mxu0 %v6712_v53  ;;  %v3428_v20 = vld [vmem:[%s8435_s10 + $0xf90] sm:$0xff] }
 0xa47   :  { %3848 = vmatmul.f32.vlgmr.msrb.gmra.mxu1 %v6714_v44  ;;  %3856 = vmatpush.msra.mxu3 %v3232_v27  ;;  %v3216_v34 = vld [vmem:[%s8435_s10 + $0x8f0] sm:$0xff]  ;;  %v2985_v27 = vld [vmem:[%s8435_s10 + $0x1b8] sm:$0xff] }
 0xa48   :  { %3876 = vmatpush.msra.mxu2 %v3296_v29  ;;  %3892 = vmatpush.msra.mxu0 %v3376_v2  ;;  %v3280_v23 = vld [vmem:[%s8435_s10 + $0xaf0] sm:$0xff]  ;;  %v3049_v29 = vld [vmem:[%s8435_s10 + $0x3b8] sm:$0xff] }
 0xa49   :  { %3912 = vmatpush.msra.mxu1 %v3440_v54  ;;  %3857 = vmatpush.msra.mxu3 %v3228_v51  ;;  %v3360_v35 = vld [vmem:[%s8435_s10 + $0xd70] sm:$0xff]  ;;  %v2981_v51 = vld [vmem:[%s8435_s10 + $0x198] sm:$0xff] }
 0xa4a   :  { %3877 = vmatpush.msra.mxu2 %v3292_v52  ;;  %3893 = vmatpush.msra.mxu0 %v3372_v4  ;;  %v3424_v26 = vld [vmem:[%s8435_s10 + $0xf70] sm:$0xff]  ;;  %v3045_v52 = vld [vmem:[%s8435_s10 + $0x398] sm:$0xff] }
 0xa4b   :  { %3913 = vmatpush.msra.mxu1 %v3436_v47  ;;  %3858 = vmatpush.msra.mxu3 %v3224_v62  ;;  %v3212_v50 = vld [vmem:[%s8435_s10 + $0x8d0] sm:$0xff]  ;;  %v2977_v62 = vld [vmem:[%s8435_s10 + $0x178] sm:$0xff] }
 0xa4c   :  { %3878 = vmatpush.msra.mxu2 %v3288_v11  ;;  %3894 = vmatpush.msra.mxu0 %v3368_v6  ;;  %v3276_v42 = vld [vmem:[%s8435_s10 + $0xad0] sm:$0xff]  ;;  %v3041_v11 = vld [vmem:[%s8435_s10 + $0x378] sm:$0xff] }
 0xa4d   :  { %3914 = vmatpush.msra.mxu1 %v3432_v25  ;;  %3859 = vmatpush.msra.mxu3 %v3220_v21  ;;  %v3356_v18 = vld [vmem:[%s8435_s10 + $0xd50] sm:$0xff]  ;;  %v3121_v6 = vld [vmem:[%s8435_s10 + $0x5f8] sm:$0xff] }
 0xa4e   :  { %3879 = vmatpush.msra.mxu2 %v3284_v7  ;;  %3895 = vmatpush.msra.mxu0 %v3364_v5  ;;  %v3420_v8 = vld [vmem:[%s8435_s10 + $0xf50] sm:$0xff]  ;;  %v3185_v25 = vld [vmem:[%s8435_s10 + $0x7f8] sm:$0xff] }
 0xa4f   :  { %3915 = vmatpush.msra.mxu1 %v3428_v20  ;;  %3860 = vmatpush.msra.mxu3 %v3216_v34  ;;  %v3208_v28 = vld [vmem:[%s8435_s10 + $0x8b0] sm:$0xff]  ;;  %v2973_v21 = vld [vmem:[%s8435_s10 + $0x158] sm:$0xff] }
 0xa50   :  { %3880 = vmatpush.msra.mxu2 %v3280_v23  ;;  %3896 = vmatpush.msra.mxu0 %v3360_v35  ;;  %v3272_v32 = vld [vmem:[%s8435_s10 + $0xab0] sm:$0xff]  ;;  %v3037_v7 = vld [vmem:[%s8435_s10 + $0x358] sm:$0xff] }
 0xa51   :  { %3916 = vmatpush.msra.mxu1 %v3424_v26  ;;  %3861 = vmatpush.msra.mxu3 %v3212_v50  ;;  %v3352_v15 = vld [vmem:[%s8435_s10 + $0xd30] sm:$0xff]  ;;  %v3117_v5 = vld [vmem:[%s8435_s10 + $0x5d8] sm:$0xff] }
 0xa52   :  { %3881 = vmatpush.msra.mxu2 %v3276_v42  ;;  %v3416_v9 = vld [vmem:[%s8435_s10 + $0xf30] sm:$0xff]  ;;  %3897 = vmatpush.msra.mxu0 %v3356_v18  ;;  %v3181_v20 = vld [vmem:[%s8435_s10 + $0x7d8] sm:$0xff] }
 0xa53   :  { %3917 = vmatpush.msra.mxu1 %v3420_v8  ;;  %v3204_v39 = vld [vmem:[%s8435_s10 + $0x890] sm:$0xff]  ;;  %3862 = vmatpush.msra.mxu3 %v3208_v28  ;;  %v2969_v34 = vld [vmem:[%s8435_s10 + $0x138] sm:$0xff] }
 0xa54   :  { %v3268_v40 = vld [vmem:[%s8435_s10 + $0xa90] sm:$0xff]  ;;  %3882 = vmatpush.msra.mxu2 %v3272_v32  ;;  %3898 = vmatpush.msra.mxu0 %v3352_v15  ;;  %v3033_v23 = vld [vmem:[%s8435_s10 + $0x338] sm:$0xff] }
 0xa55   :  { %v3348_v41 = vld [vmem:[%s8435_s10 + $0xd10] sm:$0xff]  ;;  %3918 = vmatpush.msra.mxu1 %v3416_v9  ;;  %3863 = vmatpush.msra.mxu3 %v3204_v39  ;;  %v3113_v35 = vld [vmem:[%s8435_s10 + $0x5b8] sm:$0xff] }
 0xa56   :  { %v3412_v61 = vld [vmem:[%s8435_s10 + $0xf10] sm:$0xff]  ;;  %3883 = vmatpush.msra.mxu2 %v3268_v40  ;;  %3899 = vmatpush.msra.mxu0 %v3348_v41  ;;  %v3177_v26 = vld [vmem:[%s8435_s10 + $0x7b8] sm:$0xff] }
 0xa57   :  { %v3200_v58 = vld [vmem:[%s8435_s10 + $0x870] sm:$0xff]  ;;  %3919 = vmatpush.msra.mxu1 %v3412_v61  ;;  %v2965_v50 = vld [vmem:[%s8435_s10 + $0x118] sm:$0xff] }
 0xa58   :  { %v3264_v45 = vld [vmem:[%s8435_s10 + $0xa70] sm:$0xff]  ;;  %3864 = vmatpush.msra.mxu3 %v3200_v58  ;;  %v3029_v42 = vld [vmem:[%s8435_s10 + $0x318] sm:$0xff] }
 0xa59   :  { %v3344_v16 = vld [vmem:[%s8435_s10 + $0xcf0] sm:$0xff]  ;;  %3884 = vmatpush.msra.mxu2 %v3264_v45  ;;  %v3109_v18 = vld [vmem:[%s8435_s10 + $0x598] sm:$0xff] }
 0xa5a   :  { %v3408_v10 = vld [vmem:[%s8435_s10 + $0xef0] sm:$0xff]  ;;  %3900 = vmatpush.msra.mxu0 %v3344_v16  ;;  %v3173_v8 = vld [vmem:[%s8435_s10 + $0x798] sm:$0xff] }
 0xa5b   :  { %v3196_v14 = vld [vmem:[%s8435_s10 + $0x850] sm:$0xff]  ;;  %3920 = vmatpush.msra.mxu1 %v3408_v10  ;;  %v2961_v28 = vld [vmem:[%s8435_s10 + $0xf8] sm:$0xff] }
 0xa5c   :  { %v3260_v0 = vld [vmem:[%s8435_s10 + $0xa50] sm:$0xff]  ;;  %3865 = vmatpush.msra.mxu3 %v3196_v14  ;;  %v3025_v32 = vld [vmem:[%s8435_s10 + $0x2f8] sm:$0xff] }
 0xa5d   :  { %v3340_v56 = vld [vmem:[%s8435_s10 + $0xcd0] sm:$0xff]  ;;  %3885 = vmatpush.msra.mxu2 %v3260_v0  ;;  %v3105_v15 = vld [vmem:[%s8435_s10 + $0x578] sm:$0xff] }
 0xa5e   :  { %v3404_v19 = vld [vmem:[%s8435_s10 + $0xed0] sm:$0xff]  ;;  %3901 = vmatpush.msra.mxu0 %v3340_v56  ;;  %v3169_v9 = vld [vmem:[%s8435_s10 + $0x778] sm:$0xff] }
 0xa5f   :  { %v3192_v31 = vld [vmem:[%s8435_s10 + $0x830] sm:$0xff]  ;;  %3921 = vmatpush.msra.mxu1 %v3404_v19  ;;  %v2957_v39 = vld [vmem:[%s8435_s10 + $0xd8] sm:$0xff] }
 0xa60   :  { %v3256_v46 = vld [vmem:[%s8435_s10 + $0xa30] sm:$0xff]  ;;  %3866 = vmatpush.msra.mxu3 %v3192_v31  ;;  %v3021_v40 = vld [vmem:[%s8435_s10 + $0x2d8] sm:$0xff] }
 0xa61   :  { %v3336_v55 = vld [vmem:[%s8435_s10 + $0xcb0] sm:$0xff]  ;;  %3886 = vmatpush.msra.mxu2 %v3256_v46  ;;  %v3101_v41 = vld [vmem:[%s8435_s10 + $0x558] sm:$0xff] }
 0xa62   :  { %v3400_v36 = vld [vmem:[%s8435_s10 + $0xeb0] sm:$0xff]  ;;  %3902 = vmatpush.msra.mxu0 %v3336_v55  ;;  %v3165_v61 = vld [vmem:[%s8435_s10 + $0x758] sm:$0xff] }
 0xa63   :  { %v3188_v38 = vld [vmem:[%s8435_s10 + $0x810] sm:$0xff]  ;;  %3922 = vmatpush.msra.mxu1 %v3400_v36  ;;  %v2953_v58 = vld [vmem:[%s8435_s10 + $0xb8] sm:$0xff] }
 0xa64   :  { %v3252_v48 = vld [vmem:[%s8435_s10 + $0xa10] sm:$0xff]  ;;  %3867 = vmatpush.msra.mxu3 %v3188_v38  ;;  %v3017_v45 = vld [vmem:[%s8435_s10 + $0x2b8] sm:$0xff] }
 0xa65   :  { %v3332_v43 = vld [vmem:[%s8435_s10 + $0xc90] sm:$0xff]  ;;  %3887 = vmatpush.msra.mxu2 %v3252_v48  ;;  %3868 = vmatmul.f32.vlgmr.msra.gmra.mxu3 %v6770_v59  ;;  %v3097_v16 = vld [vmem:[%s8435_s10 + $0x538] sm:$0xff] }
 0xa66   :  { %v3396_v63 = vld [vmem:[%s8435_s10 + $0xe90] sm:$0xff]  ;;  %3903 = vmatpush.msra.mxu0 %v3332_v43  ;;  %3888 = vmatmul.f32.vlgmr.msra.gmra.mxu2 %v6772_v33  ;;  %v3161_v10 = vld [vmem:[%s8435_s10 + $0x738] sm:$0xff] }
 0xa67   :  { %3923 = vmatpush.msra.mxu1 %v3396_v63  ;;  %v3328_v13 = vld [vmem:[%s8435_s10 + $0xc70] sm:$0xff]  ;;  %3932 = vmatpush.msrb.mxu3 %v2993_v1  ;;  %v2949_v14 = vld [vmem:[%s8435_s10 + $0x98] sm:$0xff] }
 0xa68   :  { %v3392_v3 = vld [vmem:[%s8435_s10 + $0xe70] sm:$0xff]  ;;  %3952 = vmatpush.msrb.mxu2 %v3057_v49  ;;  %3904 = vmatpush.msra.mxu0 %v3328_v13  ;;  %v3013_v0 = vld [vmem:[%s8435_s10 + $0x298] sm:$0xff] }
 0xa69   :  { %v3324_v24 = vld [vmem:[%s8435_s10 + $0xc50] sm:$0xff]  ;;  %3924 = vmatpush.msra.mxu1 %v3392_v3  ;;  %3933 = vmatpush.msrb.mxu3 %v2989_v30  ;;  %v3093_v56 = vld [vmem:[%s8435_s10 + $0x518] sm:$0xff] }
 0xa6a   :  { %v3388_v17 = vld [vmem:[%s8435_s10 + $0xe50] sm:$0xff]  ;;  %3953 = vmatpush.msrb.mxu2 %v3053_v37  ;;  %3905 = vmatpush.msra.mxu0 %v3324_v24  ;;  %v3157_v19 = vld [vmem:[%s8435_s10 + $0x718] sm:$0xff] }
 0xa6b   :  { %v3320_v2 = vld [vmem:[%s8435_s10 + $0xc30] sm:$0xff]  ;;  %3925 = vmatpush.msra.mxu1 %v3388_v17  ;;  %3934 = vmatpush.msrb.mxu3 %v2985_v27  ;;  %v2945_v31 = vld [vmem:[%s8435_s10 + $0x78] sm:$0xff] }
 0xa6c   :  { %v3384_v54 = vld [vmem:[%s8435_s10 + $0xe30] sm:$0xff]  ;;  %3954 = vmatpush.msrb.mxu2 %v3049_v29  ;;  %3906 = vmatpush.msra.mxu0 %v3320_v2  ;;  %v3009_v46 = vld [vmem:[%s8435_s10 + $0x278] sm:$0xff] }
 0xa6d   :  { %v3316_v4 = vld [vmem:[%s8435_s10 + $0xc10] sm:$0xff]  ;;  %3926 = vmatpush.msra.mxu1 %v3384_v54  ;;  %3935 = vmatpush.msrb.mxu3 %v2981_v51  ;;  %v3089_v55 = vld [vmem:[%s8435_s10 + $0x4f8] sm:$0xff] }
 0xa6e   :  { %v3380_v47 = vld [vmem:[%s8435_s10 + $0xe10] sm:$0xff]  ;;  %3955 = vmatpush.msrb.mxu2 %v3045_v52  ;;  %3907 = vmatpush.msra.mxu0 %v3316_v4  ;;  %v3153_v36 = vld [vmem:[%s8435_s10 + $0x6f8] sm:$0xff] }
 0xa6f   :  { %3927 = vmatpush.msra.mxu1 %v3380_v47  ;;  %3908 = vmatmul.f32.vlgmr.msra.gmra.mxu0 %v6822_v57  ;;  %v2941_v38 = vld [vmem:[%s8435_s10 + $0x58] sm:$0xff] }
 0xa70   :  { %3928 = vmatmul.f32.vlgmr.msra.gmra.mxu1 %v6824_v22  ;;  %3936 = vmatpush.msrb.mxu3 %v2977_v62  ;;  %v3005_v48 = vld [vmem:[%s8435_s10 + $0x258] sm:$0xff] }
 0xa71   :  { %3956 = vmatpush.msrb.mxu2 %v3041_v11  ;;  %3972 = vmatpush.msrb.mxu0 %v3121_v6  ;;  %v3085_v43 = vld [vmem:[%s8435_s10 + $0x4d8] sm:$0xff] }
 0xa72   :  { %3992 = vmatpush.msrb.mxu1 %v3185_v25  ;;  %3937 = vmatpush.msrb.mxu3 %v2973_v21  ;;  %v3149_v63 = vld [vmem:[%s8435_s10 + $0x6d8] sm:$0xff] }
 0xa73   :  { %3957 = vmatpush.msrb.mxu2 %v3037_v7  ;;  %3973 = vmatpush.msrb.mxu0 %v3117_v5  ;;  %v2937_v1 = vld [vmem:[%s8435_s10 + $0x38] sm:$0xff] }
 0xa74   :  { %3993 = vmatpush.msrb.mxu1 %v3181_v20  ;;  %3938 = vmatpush.msrb.mxu3 %v2969_v34  ;;  %v3001_v49 = vld [vmem:[%s8435_s10 + $0x238] sm:$0xff] }
 0xa75   :  { %3958 = vmatpush.msrb.mxu2 %v3033_v23  ;;  %3974 = vmatpush.msrb.mxu0 %v3113_v35  ;;  %v3081_v13 = vld [vmem:[%s8435_s10 + $0x4b8] sm:$0xff] }
 0xa76   :  { %3994 = vmatpush.msrb.mxu1 %v3177_v26  ;;  %3939 = vmatpush.msrb.mxu3 %v2965_v50  ;;  %v3145_v3 = vld [vmem:[%s8435_s10 + $0x6b8] sm:$0xff] }
 0xa77   :  { %3959 = vmatpush.msrb.mxu2 %v3029_v42  ;;  %3975 = vmatpush.msrb.mxu0 %v3109_v18  ;;  %v2933_v30 = vld [vmem:[%s8435_s10 + $0x18] sm:$0xff] }
 0xa78   :  { %3995 = vmatpush.msrb.mxu1 %v3173_v8  ;;  %3940 = vmatpush.msrb.mxu3 %v2961_v28  ;;  %v2997_v37 = vld [vmem:[%s8435_s10 + $0x218] sm:$0xff] }
 0xa79   :  { %3960 = vmatpush.msrb.mxu2 %v3025_v32  ;;  %3976 = vmatpush.msrb.mxu0 %v3105_v15  ;;  %v3077_v24 = vld [vmem:[%s8435_s10 + $0x498] sm:$0xff] }
 0xa7a   :  { %3996 = vmatpush.msrb.mxu1 %v3169_v9  ;;  %3941 = vmatpush.msrb.mxu3 %v2957_v39  ;;  %v3141_v17 = vld [vmem:[%s8435_s10 + $0x698] sm:$0xff] }
 0xa7b   :  { %3961 = vmatpush.msrb.mxu2 %v3021_v40  ;;  %3977 = vmatpush.msrb.mxu0 %v3101_v41  ;;  %v3249_v27 = vld [vmem:[%s8435_s10 + $0x9f8] sm:$0xff]  ;;  %v7772_v41 = vpop.f32.mrf.mxu3 }
 0xa7c   :  { %3997 = vmatpush.msrb.mxu1 %v3165_v61  ;;  %3942 = vmatpush.msrb.mxu3 %v2953_v58  ;;  %v3313_v29 = vld [vmem:[%s8435_s10 + $0xbf8] sm:$0xff] }
 0xa7d   :  { %3962 = vmatpush.msrb.mxu2 %v3017_v45  ;;  %3978 = vmatpush.msrb.mxu0 %v3097_v16  ;;  %v3073_v2 = vld [vmem:[%s8435_s10 + $0x478] sm:$0xff] }
 0xa7e   :  { %3998 = vmatpush.msrb.mxu1 %v3161_v10  ;;  %3943 = vmatpush.msrb.mxu3 %v2949_v14  ;;  %v3137_v54 = vld [vmem:[%s8435_s10 + $0x678] sm:$0xff] }
 0xa7f   :  { %3963 = vmatpush.msrb.mxu2 %v3013_v0  ;;  %3979 = vmatpush.msrb.mxu0 %v3093_v56  ;;  %v3245_v51 = vld [vmem:[%s8435_s10 + $0x9d8] sm:$0xff] }
 0xa80   :  { %3999 = vmatpush.msrb.mxu1 %v3157_v19  ;;  %3944 = vmatpush.msrb.mxu3 %v2945_v31  ;;  %v3309_v52 = vld [vmem:[%s8435_s10 + $0xbd8] sm:$0xff] }
 0xa81   :  { %3964 = vmatpush.msrb.mxu2 %v3009_v46  ;;  %3980 = vmatpush.msrb.mxu0 %v3089_v55  ;;  %v3069_v4 = vld [vmem:[%s8435_s10 + $0x458] sm:$0xff] }
 0xa82   :  { %4000 = vmatpush.msrb.mxu1 %v3153_v36  ;;  %3945 = vmatpush.msrb.mxu3 %v2941_v38  ;;  %v3305_v47 = vld [vmem:[%s8435_s10 + $0xbb8] sm:$0xff]  ;;  %v7810_v36 = vpop.f32.mrf.mxu2 }
 0xa83   :  { %3965 = vmatpush.msrb.mxu2 %v3005_v48  ;;  %3981 = vmatpush.msrb.mxu0 %v3085_v43  ;;  %v3065_v62 = vld [vmem:[%s8435_s10 + $0x438] sm:$0xff] }
 0xa84   :  { %4001 = vmatpush.msrb.mxu1 %v3149_v63  ;;  %3946 = vmatpush.msrb.mxu3 %v2937_v1  ;;  %v3129_v11 = vld [vmem:[%s8435_s10 + $0x638] sm:$0xff]  ;;  %v7824_v1 = vpop.f32.mrf.mxu3 }
 0xa85   :  { %3966 = vmatpush.msrb.mxu2 %v3001_v49  ;;  %3982 = vmatpush.msrb.mxu0 %v3081_v13  ;;  %v3237_v6 = vld [vmem:[%s8435_s10 + $0x998] sm:$0xff] }
 0xa86   :  { %4002 = vmatpush.msrb.mxu1 %v3145_v3  ;;  %3947 = vmatpush.msrb.mxu3 %v2933_v30  ;;  %v3301_v25 = vld [vmem:[%s8435_s10 + $0xb98] sm:$0xff] }
 0xa87   :  { %3967 = vmatpush.msrb.mxu2 %v2997_v37  ;;  %3983 = vmatpush.msrb.mxu0 %v3077_v24  ;;  %v3061_v21 = vld [vmem:[%s8435_s10 + $0x418] sm:$0xff]  ;;  %v7838_v37 = vpop.f32.mrf.mxu0 }
 0xa88   :  { %4003 = vmatpush.msrb.mxu1 %v3141_v17  ;;  %3948 = vmatmul.f32.vlgmr.msrb.gmra.mxu3 %v6680_v12  ;;  %v3133_v12 = vld [vmem:[%s8435_s10 + $0x658] sm:$0xff] }
 0xa89   :  { %3968 = vmatmul.f32.vlgmr.msrb.gmra.mxu2 %v6682_v60  ;;  %4012 = vmatpush.msra.mxu3 %v3249_v27  ;;  %v3241_v60 = vld [vmem:[%s8435_s10 + $0x9b8] sm:$0xff] }
 0xa8a   :  { %4032 = vmatpush.msra.mxu2 %v3313_v29  ;;  %3984 = vmatpush.msrb.mxu0 %v3073_v2  ;;  %v3125_v7 = vld [vmem:[%s8435_s10 + $0x618] sm:$0xff]  ;;  %v7855_v2 = vld [vmem:[%s8437_s11] sm:$0xf] }
 0xa8b   :  { %4004 = vmatpush.msrb.mxu1 %v3137_v54  ;;  %4013 = vmatpush.msra.mxu3 %v3245_v51  ;;  %v3233_v5 = vld [vmem:[%s8435_s10 + $0x978] sm:$0xff] }
 0xa8c   :  { %4033 = vmatpush.msra.mxu2 %v3309_v52  ;;  %3985 = vmatpush.msrb.mxu0 %v3069_v4  ;;  %v3297_v20 = vld [vmem:[%s8435_s10 + $0xb78] sm:$0xff] }
 0xa8d   :  { %4005 = vmatpush.msrb.mxu1 %v3133_v12  ;;  %4014 = vmatpush.msra.mxu3 %v3241_v60  ;;  %v3377_v34 = vld [vmem:[%s8435_s10 + $0xdf8] sm:$0xff]  ;;  %v7869_v12 = vpop.f32.mrf.mxu1  ;;  %v7871_v60 = vpop.f32.mrf.mxu2 }
 0xa8e   :  { %4034 = vmatpush.msra.mxu2 %v3305_v47  ;;  %3986 = vmatpush.msrb.mxu0 %v3065_v62  ;;  %v3441_v23 = vld [vmem:[%s8435_s10 + $0xff8] sm:$0xff] }
 0xa8f   :  { %4006 = vmatpush.msrb.mxu1 %v3129_v11  ;;  %4015 = vmatpush.msra.mxu3 %v3237_v6  ;;  %v3229_v35 = vld [vmem:[%s8435_s10 + $0x958] sm:$0xff]  ;;  %v3444_v11 = vperm.slane %v7855_v2, 0  ;;  %v3445_v6 = vperm.slane %v7855_v2, 1 }
 0xa90   :  { %4035 = vmatpush.msra.mxu2 %v3301_v25  ;;  %3987 = vmatpush.msrb.mxu0 %v3061_v21  ;;  %v3293_v26 = vld [vmem:[%s8435_s10 + $0xb58] sm:$0xff]  ;;  %v3629_v25 = vpop.f32.mrf.mxu3  ;;  %v4126_v21 = vld [vmem:[%s8438_s12 + $0xf0] sm:$0xff] }
 0xa91   :  { %4007 = vmatpush.msrb.mxu1 %v3125_v7  ;;  %3988 = vmatmul.f32.vlgmr.msrb.gmra.mxu0 %v6712_v53  ;;  %v3373_v50 = vld [vmem:[%s8435_s10 + $0xdd8] sm:$0xff]  ;;  %v4158_v7 = vld [vmem:[%s8438_s12 + $0x1f0] sm:$0xff] }
 0xa92   :  { %4008 = vmatmul.f32.vlgmr.msrb.gmra.mxu1 %v6714_v44  ;;  %4016 = vmatpush.msra.mxu3 %v3233_v5  ;;  %v3437_v53 = vld [vmem:[%s8435_s10 + $0xfd8] sm:$0xff] }
 0xa93   :  { %4036 = vmatpush.msra.mxu2 %v3297_v20  ;;  %4052 = vmatpush.msra.mxu0 %v3377_v34  ;;  %v3225_v44 = vld [vmem:[%s8435_s10 + $0x938] sm:$0xff]  ;;  %v7893_v34 = vpop.f32.mrf.mxu0 }
 0xa94   :  { %4072 = vmatpush.msra.mxu1 %v3441_v23  ;;  %v3289_v42 = vld [vmem:[%s8435_s10 + $0xb38] sm:$0xff]  ;;  %4017 = vmatpush.msra.mxu3 %v3229_v35  ;;  %v4124_v23 = vld [vmem:[%s8438_s12 + $0xe0] sm:$0xff] }
 0xa95   :  { %4037 = vmatpush.msra.mxu2 %v3293_v26  ;;  %v3369_v18 = vld [vmem:[%s8435_s10 + $0xdb8] sm:$0xff]  ;;  %4053 = vmatpush.msra.mxu0 %v3373_v50  ;;  %v4156_v35 = vld [vmem:[%s8438_s12 + $0x1e0] sm:$0xff]  ;;  %v3470_v26 = vadd.f32 %v7772_v41, %v3444_v11  ;;  %v3630_v50 = vadd.f32 %v3629_v25, %v3445_v6  ;;  %v4102_v25 = vld [vmem:[%s8438_s12 + $0x30] sm:$0xff] }
 0xa96   :  { %v3433_v8 = vld [vmem:[%s8435_s10 + $0xfb8] sm:$0xff]  ;;  %4073 = vmatpush.msra.mxu1 %v3437_v53  ;;  %4018 = vmatpush.msra.mxu3 %v3225_v44  ;;  %v4154_v44 = vld [vmem:[%s8438_s12 + $0x1d0] sm:$0xff] }
 0xa97   :  { %v3221_v28 = vld [vmem:[%s8435_s10 + $0x918] sm:$0xff]  ;;  %4038 = vmatpush.msra.mxu2 %v3289_v42  ;;  %4054 = vmatpush.msra.mxu0 %v3369_v18 }
 0xa98   :  { %v3285_v32 = vld [vmem:[%s8435_s10 + $0xb18] sm:$0xff]  ;;  %4074 = vmatpush.msra.mxu1 %v3433_v8  ;;  %4019 = vmatpush.msra.mxu3 %v3221_v28  ;;  %v7922_v8 = vpop.f32.mrf.mxu1  ;;  %v3649_v28 = vpop.f32.mrf.mxu2 }
 0xa99   :  { %v3365_v15 = vld [vmem:[%s8435_s10 + $0xd98] sm:$0xff]  ;;  %4039 = vmatpush.msra.mxu2 %v3285_v32  ;;  %v4120_v32 = vld [vmem:[%s8438_s12 + $0xc0] sm:$0xff] }
 0xa9a   :  { %v3429_v9 = vld [vmem:[%s8435_s10 + $0xf98] sm:$0xff]  ;;  %4055 = vmatpush.msra.mxu0 %v3365_v15  ;;  %v4152_v15 = vld [vmem:[%s8438_s12 + $0x1c0] sm:$0xff] }
 0xa9b   :  { %v3217_v39 = vld [vmem:[%s8435_s10 + $0x8f8] sm:$0xff]  ;;  %4075 = vmatpush.msra.mxu1 %v3429_v9  ;;  %v3490_v9 = vadd.f32 %v7810_v36, %v3470_v26 }
 0xa9c   :  { %v3281_v40 = vld [vmem:[%s8435_s10 + $0xaf8] sm:$0xff]  ;;  %4020 = vmatpush.msra.mxu3 %v3217_v39  ;;  %v3650_v39 = vadd.f32 %v3649_v28, %v3630_v50  ;;  %v4098_v50 = vld [vmem:[%s8438_s12 + $0x10] sm:$0xff] }
 0xa9d   :  { %v3361_v61 = vld [vmem:[%s8435_s10 + $0xd78] sm:$0xff]  ;;  %4040 = vmatpush.msra.mxu2 %v3281_v40 }
 0xa9e   :  { %v3425_v58 = vld [vmem:[%s8435_s10 + $0xf78] sm:$0xff]  ;;  %4056 = vmatpush.msra.mxu0 %v3361_v61  ;;  %v4118_v61 = vld [vmem:[%s8438_s12 + $0xb0] sm:$0xff] }
 0xa9f   :  { %v3213_v45 = vld [vmem:[%s8435_s10 + $0x8d8] sm:$0xff]  ;;  %4076 = vmatpush.msra.mxu1 %v3425_v58  ;;  %v4150_v58 = vld [vmem:[%s8438_s12 + $0x1b0] sm:$0xff] }
 0xaa0   :  { %v3277_v16 = vld [vmem:[%s8435_s10 + $0xad8] sm:$0xff]  ;;  %4021 = vmatpush.msra.mxu3 %v3213_v45  ;;  %v3669_v45 = vpop.f32.mrf.mxu0 }
 0xaa1   :  { %v3357_v10 = vld [vmem:[%s8435_s10 + $0xd58] sm:$0xff]  ;;  %4041 = vmatpush.msra.mxu2 %v3277_v16  ;;  %v4190_v16 = vld [vmem:[%s8438_s12 + $0x2f0] sm:$0xff] }
 0xaa2   :  { %v3421_v14 = vld [vmem:[%s8435_s10 + $0xf58] sm:$0xff]  ;;  %4057 = vmatpush.msra.mxu0 %v3357_v10  ;;  %v3510_v10 = vadd.f32 %v7838_v37, %v3490_v9  ;;  %v4182_v37 = vld [vmem:[%s8438_s12 + $0x2b0] sm:$0xff]  ;;  %v4157_v9 = vld [vmem:[%s8438_s12 + $0x1e8] sm:$0xff] }
 0xaa3   :  { %v3209_v0 = vld [vmem:[%s8435_s10 + $0x8b8] sm:$0xff]  ;;  %4077 = vmatpush.msra.mxu1 %v3421_v14  ;;  %v3670_v14 = vadd.f32 %v3669_v45, %v3650_v39  ;;  %v4166_v39 = vld [vmem:[%s8438_s12 + $0x230] sm:$0xff]  ;;  %v4153_v45 = vld [vmem:[%s8438_s12 + $0x1c8] sm:$0xff] }
 0xaa4   :  { %v3273_v56 = vld [vmem:[%s8435_s10 + $0xab8] sm:$0xff]  ;;  %4022 = vmatpush.msra.mxu3 %v3209_v0  ;;  %v4116_v0 = vld [vmem:[%s8438_s12 + $0xa0] sm:$0xff]  ;;  %v3530_v36 = vadd.f32 %v7869_v12, %v3510_v10 }
 0xaa5   :  { %v3353_v19 = vld [vmem:[%s8435_s10 + $0xd38] sm:$0xff]  ;;  %4042 = vmatpush.msra.mxu2 %v3273_v56  ;;  %v4148_v56 = vld [vmem:[%s8438_s12 + $0x1a0] sm:$0xff] }
 0xaa6   :  { %v3417_v31 = vld [vmem:[%s8435_s10 + $0xf38] sm:$0xff]  ;;  %4058 = vmatpush.msra.mxu0 %v3353_v19  ;;  %v4188_v19 = vld [vmem:[%s8438_s12 + $0x2e0] sm:$0xff] }
 0xaa7   :  { %v3205_v46 = vld [vmem:[%s8435_s10 + $0x898] sm:$0xff]  ;;  %4078 = vmatpush.msra.mxu1 %v3417_v31  ;;  %v3689_v31 = vpop.f32.mrf.mxu1  ;;  %v4104_v12 = vld [vmem:[%s8438_s12 + $0x40] sm:$0xff] }
 0xaa8   :  { %v3269_v55 = vld [vmem:[%s8435_s10 + $0xa98] sm:$0xff]  ;;  %4023 = vmatpush.msra.mxu3 %v3205_v46  ;;  %v3709_v46 = vpop.f32.mrf.mxu3 }
 0xaa9   :  { %v3349_v38 = vld [vmem:[%s8435_s10 + $0xd18] sm:$0xff]  ;;  %4043 = vmatpush.msra.mxu2 %v3269_v55  ;;  %v4186_v55 = vld [vmem:[%s8438_s12 + $0x2d0] sm:$0xff] }
 0xaaa   :  { %v3413_v48 = vld [vmem:[%s8435_s10 + $0xf18] sm:$0xff]  ;;  %4059 = vmatpush.msra.mxu0 %v3349_v38  ;;  %v3690_v38 = vadd.f32 %v3689_v31, %v3670_v14 }
 0xaab   :  { %v3201_v43 = vld [vmem:[%s8435_s10 + $0x878] sm:$0xff]  ;;  %4079 = vmatpush.msra.mxu1 %v3413_v48  ;;  %v4112_v48 = vld [vmem:[%s8438_s12 + $0x80] sm:$0xff] }
 0xaac   :  { %v3265_v63 = vld [vmem:[%s8435_s10 + $0xa78] sm:$0xff]  ;;  %4024 = vmatpush.msra.mxu3 %v3201_v43  ;;  %v4144_v43 = vld [vmem:[%s8438_s12 + $0x180] sm:$0xff] }
 0xaad   :  { %v3345_v49 = vld [vmem:[%s8435_s10 + $0xcf8] sm:$0xff]  ;;  %4044 = vmatpush.msra.mxu2 %v3265_v63  ;;  %v4184_v63 = vld [vmem:[%s8438_s12 + $0x2c0] sm:$0xff] }
 0xaae   :  { %v3409_v13 = vld [vmem:[%s8435_s10 + $0xef8] sm:$0xff]  ;;  %4060 = vmatpush.msra.mxu0 %v3345_v49  ;;  %v3550_v49 = vadd.f32 %v7824_v1, %v3530_v36  ;;  %v4108_v1 = vld [vmem:[%s8438_s12 + $0x60] sm:$0xff]  ;;  %v4145_v36 = vld [vmem:[%s8438_s12 + $0x188] sm:$0xff] }
 0xaaf   :  { %v3197_v3 = vld [vmem:[%s8435_s10 + $0x858] sm:$0xff]  ;;  %4080 = vmatpush.msra.mxu1 %v3409_v13  ;;  %v3710_v13 = vadd.f32 %v3709_v46, %v3690_v38  ;;  %v4189_v46 = vld [vmem:[%s8438_s12 + $0x2e8] sm:$0xff]  ;;  %v4222_v38 = vld [vmem:[%s8438_s12 + $0x3f0] sm:$0xff] }
 0xab0   :  { %v3261_v30 = vld [vmem:[%s8435_s10 + $0xa58] sm:$0xff]  ;;  %4025 = vmatpush.msra.mxu3 %v3197_v3  ;;  %v4110_v3 = vld [vmem:[%s8438_s12 + $0x70] sm:$0xff] }
 0xab1   :  { %v3341_v24 = vld [vmem:[%s8435_s10 + $0xcd8] sm:$0xff]  ;;  %4045 = vmatpush.msra.mxu2 %v3261_v30  ;;  %v4142_v30 = vld [vmem:[%s8438_s12 + $0x170] sm:$0xff] }
 0xab2   :  { %v3405_v17 = vld [vmem:[%s8435_s10 + $0xed8] sm:$0xff]  ;;  %4061 = vmatpush.msra.mxu0 %v3341_v24  ;;  %v4140_v24 = vld [vmem:[%s8438_s12 + $0x160] sm:$0xff] }
 0xab3   :  { %v3193_v27 = vld [vmem:[%s8435_s10 + $0x838] sm:$0xff]  ;;  %4081 = vmatpush.msra.mxu1 %v3405_v17  ;;  %v3729_v17 = vpop.f32.mrf.mxu2 }
 0xab4   :  { %v3257_v29 = vld [vmem:[%s8435_s10 + $0xa38] sm:$0xff]  ;;  %4026 = vmatpush.msra.mxu3 %v3193_v27  ;;  %v4180_v27 = vld [vmem:[%s8438_s12 + $0x2a0] sm:$0xff] }
 0xab5   :  { %v3337_v54 = vld [vmem:[%s8435_s10 + $0xcb8] sm:$0xff]  ;;  %4046 = vmatpush.msra.mxu2 %v3257_v29  ;;  %v3570_v29 = vadd.f32 %v7871_v60, %v3550_v49  ;;  %v4136_v60 = vld [vmem:[%s8438_s12 + $0x140] sm:$0xff] }
 0xab6   :  { %v3401_v51 = vld [vmem:[%s8435_s10 + $0xeb8] sm:$0xff]  ;;  %4062 = vmatpush.msra.mxu0 %v3337_v54  ;;  %v3730_v54 = vadd.f32 %v3729_v17, %v3710_v13  ;;  %v4220_v17 = vld [vmem:[%s8438_s12 + $0x3e0] sm:$0xff] }
 0xab7   :  { %v3189_v52 = vld [vmem:[%s8435_s10 + $0x818] sm:$0xff]  ;;  %4082 = vmatpush.msra.mxu1 %v3401_v51  ;;  %v4106_v51 = vld [vmem:[%s8438_s12 + $0x50] sm:$0xff]  ;;  %v3590_v11 = vadd.f32 %v7893_v34, %v3570_v29  ;;  %v3769_v34 = vpop.f32.mrf.mxu1 }
 0xab8   :  { %v3253_v4 = vld [vmem:[%s8435_s10 + $0xa18] sm:$0xff]  ;;  %4027 = vmatpush.msra.mxu3 %v3189_v52  ;;  %v4138_v52 = vld [vmem:[%s8438_s12 + $0x150] sm:$0xff] }
 0xab9   :  { %v3333_v47 = vld [vmem:[%s8435_s10 + $0xc98] sm:$0xff]  ;;  %4047 = vmatpush.msra.mxu2 %v3253_v4  ;;  %4028 = vmatmul.f32.vlgmr.msra.gmra.mxu3 %v6770_v59  ;;  %v4178_v4 = vld [vmem:[%s8438_s12 + $0x290] sm:$0xff] }
 0xaba   :  { %v3397_v62 = vld [vmem:[%s8435_s10 + $0xe98] sm:$0xff]  ;;  %4063 = vmatpush.msra.mxu0 %v3333_v47  ;;  %4048 = vmatmul.f32.vlgmr.msra.gmra.mxu2 %v6772_v33  ;;  %v4122_v33 = vld [vmem:[%s8438_s12 + $0xd0] sm:$0xff]  ;;  %v3749_v47 = vpop.f32.mrf.mxu0 }
 0xabb   :  { %4083 = vmatpush.msra.mxu1 %v3397_v62  ;;  %v3329_v5 = vld [vmem:[%s8435_s10 + $0xc78] sm:$0xff]  ;;  %4230 = vmatpush.msrb.mxu3 %v4126_v21  ;;  %v4176_v62 = vld [vmem:[%s8438_s12 + $0x280] sm:$0xff]  ;;  %v3750_v6 = vadd.f32 %v3749_v47, %v3730_v54  ;;  %v4134_v21 = vld [vmem:[%s8438_s12 + $0x130] sm:$0xff] }
 0xabc   :  { %v3393_v20 = vld [vmem:[%s8435_s10 + $0xe78] sm:$0xff]  ;;  %4250 = vmatpush.msrb.mxu2 %v4158_v7  ;;  %4064 = vmatpush.msra.mxu0 %v3329_v5  ;;  %v4174_v7 = vld [vmem:[%s8438_s12 + $0x270] sm:$0xff]  ;;  %v4100_v5 = vld [vmem:[%s8438_s12 + $0x20] sm:$0xff] }
 0xabd   :  { %v3325_v53 = vld [vmem:[%s8435_s10 + $0xc58] sm:$0xff]  ;;  %4084 = vmatpush.msra.mxu1 %v3393_v20  ;;  %4231 = vmatpush.msrb.mxu3 %v4124_v23  ;;  %v4132_v20 = vld [vmem:[%s8438_s12 + $0x120] sm:$0xff]  ;;  %v8037_v26 = vadd.f32 %v3769_v34, %v3750_v6  ;;  %v4133_v34 = vld [vmem:[%s8438_s12 + $0x128] sm:$0xff] }
 0xabe   :  { %v3389_v59 = vld [vmem:[%s8435_s10 + $0xe58] sm:$0xff]  ;;  %4251 = vmatpush.msrb.mxu2 %v4156_v35  ;;  %4065 = vmatpush.msra.mxu0 %v3325_v53  ;;  %v4172_v23 = vld [vmem:[%s8438_s12 + $0x260] sm:$0xff]  ;;  %v8035_v35 = vadd.f32 %v7922_v8, %v3590_v11  ;;  %v4130_v53 = vld [vmem:[%s8438_s12 + $0x110] sm:$0xff] }
 0xabf   :  { %v3321_v42 = vld [vmem:[%s8435_s10 + $0xc38] sm:$0xff]  ;;  %4085 = vmatpush.msra.mxu1 %v3389_v59  ;;  %4232 = vmatpush.msrb.mxu3 %v4122_v33  ;;  %v4170_v59 = vld [vmem:[%s8438_s12 + $0x250] sm:$0xff]  ;;  %v4096_v33 = vld [vmem:[%s8438_s12] sm:$0xff] }
 0xac0   :  { %v3385_v18 = vld [vmem:[%s8435_s10 + $0xe38] sm:$0xff]  ;;  %4252 = vmatpush.msrb.mxu2 %v4154_v44  ;;  %4066 = vmatpush.msra.mxu0 %v3321_v42  ;;  %v4128_v44 = vld [vmem:[%s8438_s12 + $0x100] sm:$0xff]  ;;  %v4092_v42 = vmax.f32 %v8035_v35, 0.0  ;;  %v4214_v11 = vld [vmem:[%s8438_s12 + $0x3b0] sm:$0xff] }
 0xac1   :  { %v3317_v40 = vld [vmem:[%s8435_s10 + $0xc18] sm:$0xff]  ;;  %4086 = vmatpush.msra.mxu1 %v3385_v18  ;;  %4233 = vmatpush.msrb.mxu3 %v4120_v32  ;;  %v4093_v18 = vmax.f32 %v8037_v26, 0.0  ;;  %v4168_v32 = vld [vmem:[%s8438_s12 + $0x240] sm:$0xff]  ;;  %v4210_v35 = vld [vmem:[%s8438_s12 + $0x390] sm:$0xff] }
 0xac2   :  { %v3381_v41 = vld [vmem:[%s8435_s10 + $0xe18] sm:$0xff]  ;;  %4253 = vmatpush.msrb.mxu2 %v4152_v15  ;;  %4067 = vmatpush.msra.mxu0 %v3317_v40  ;;  %v4125_v15 = vld [vmem:[%s8438_s12 + $0xe8] sm:$0xff] }
 0xac3   :  { %4087 = vmatpush.msra.mxu1 %v3381_v41  ;;  %4068 = vmatmul.f32.vlgmr.msra.gmra.mxu0 %v6822_v57  ;;  %v4114_v57 = vld [vmem:[%s8438_s12 + $0x90] sm:$0xff]  ;;  %v4127_v8 = vld [vmem:[%s8438_s12 + $0xf8] sm:$0xff] }
 0xac4   :  { %4088 = vmatmul.f32.vlgmr.msra.gmra.mxu1 %v6824_v22  ;;  %4234 = vmatpush.msrb.mxu3 %v4118_v61  ;;  %v4146_v22 = vld [vmem:[%s8438_s12 + $0x190] sm:$0xff]  ;;  %v4159_v28 = vld [vmem:[%s8438_s12 + $0x1f8] sm:$0xff]  ;;  %v4164_v61 = vld [vmem:[%s8438_s12 + $0x220] sm:$0xff] }
 0xac5   :  { %4254 = vmatpush.msrb.mxu2 %v4150_v58  ;;  %4270 = vmatpush.msrb.mxu0 %v4190_v16  ;;  %v4123_v40 = vld [vmem:[%s8438_s12 + $0xd8] sm:$0xff]  ;;  %v4121_v58 = vld [vmem:[%s8438_s12 + $0xc8] sm:$0xff]  ;;  %v4162_v16 = vld [vmem:[%s8438_s12 + $0x210] sm:$0xff] }
 0xac6   :  { %4235 = vmatpush.msrb.mxu3 %v4116_v0  ;;  %v4155_v41 = vld [vmem:[%s8438_s12 + $0x1d8] sm:$0xff]  ;;  %v4160_v0 = vld [vmem:[%s8438_s12 + $0x200] sm:$0xff]  ;;  %4290 = vmatpush.msrb.mxu1 %v4222_v38 }
 0xac7   :  { %4255 = vmatpush.msrb.mxu2 %v4148_v56  ;;  %4271 = vmatpush.msrb.mxu0 %v4188_v19  ;;  %v4119_v10 = vld [vmem:[%s8438_s12 + $0xb8] sm:$0xff]  ;;  %v4117_v56 = vld [vmem:[%s8438_s12 + $0xa8] sm:$0xff]  ;;  %v4192_v38 = vld [vmem:[%s8438_s12 + $0x300] sm:$0xff] }
 0xac8   :  { %4236 = vmatpush.msrb.mxu3 %v4114_v57  ;;  %v4151_v14 = vld [vmem:[%s8438_s12 + $0x1b8] sm:$0xff]  ;;  %v4149_v19 = vld [vmem:[%s8438_s12 + $0x1a8] sm:$0xff]  ;;  %4291 = vmatpush.msrb.mxu1 %v4220_v17 }
 0xac9   :  { %4256 = vmatpush.msrb.mxu2 %v4146_v22  ;;  %4272 = vmatpush.msrb.mxu0 %v4186_v55  ;;  %v4191_v57 = vld [vmem:[%s8438_s12 + $0x2f8] sm:$0xff]  ;;  %v4113_v55 = vld [vmem:[%s8438_s12 + $0x88] sm:$0xff] }
 0xaca   :  { %4237 = vmatpush.msrb.mxu3 %v4112_v48  ;;  %v4115_v22 = vld [vmem:[%s8438_s12 + $0x98] sm:$0xff]  ;;  %v3446_v48 = vperm.slane %v7855_v2, 2 }
 0xacb   :  { %4257 = vmatpush.msrb.mxu2 %v4144_v43  ;;  %4273 = vmatpush.msrb.mxu0 %v4184_v63  ;;  %v4147_v31 = vld [vmem:[%s8438_s12 + $0x198] sm:$0xff]  ;;  %v3789_v63 = vpop.f32.mrf.mxu3 }
 0xacc   :  { %4238 = vmatpush.msrb.mxu3 %v4110_v3  ;;  %v4187_v43 = vld [vmem:[%s8438_s12 + $0x2d8] sm:$0xff]  ;;  %v4185_v3 = vld [vmem:[%s8438_s12 + $0x2c8] sm:$0xff] }
 0xacd   :  { %4258 = vmatpush.msrb.mxu2 %v4142_v30  ;;  %4274 = vmatpush.msrb.mxu0 %v4182_v37  ;;  %v4111_v49 = vld [vmem:[%s8438_s12 + $0x78] sm:$0xff]  ;;  %v4109_v30 = vld [vmem:[%s8438_s12 + $0x68] sm:$0xff] }
 0xace   :  { %4239 = vmatpush.msrb.mxu3 %v4108_v1  ;;  %v4143_v13 = vld [vmem:[%s8438_s12 + $0x178] sm:$0xff]  ;;  %v4141_v37 = vld [vmem:[%s8438_s12 + $0x168] sm:$0xff]  ;;  %v3790_v1 = vadd.f32 %v3789_v63, %v3446_v48 }
 0xacf   :  { %4259 = vmatpush.msrb.mxu2 %v4140_v24  ;;  %4275 = vmatpush.msrb.mxu0 %v4180_v27  ;;  %v4183_v24 = vld [vmem:[%s8438_s12 + $0x2b8] sm:$0xff]  ;;  %v4218_v27 = vld [vmem:[%s8438_s12 + $0x3d0] sm:$0xff] }
 0xad0   :  { %4240 = vmatpush.msrb.mxu3 %v4106_v51  ;;  %v4107_v29 = vld [vmem:[%s8438_s12 + $0x58] sm:$0xff]  ;;  %v4181_v51 = vld [vmem:[%s8438_s12 + $0x2a8] sm:$0xff]  ;;  %4292 = vmatpush.msrb.mxu1 %v4218_v27 }
 0xad1   :  { %4260 = vmatpush.msrb.mxu2 %v4138_v52  ;;  %4276 = vmatpush.msrb.mxu0 %v4178_v4  ;;  %v4139_v54 = vld [vmem:[%s8438_s12 + $0x158] sm:$0xff]  ;;  %v4216_v52 = vld [vmem:[%s8438_s12 + $0x3c0] sm:$0xff]  ;;  %v3809_v4 = vpop.f32.mrf.mxu2  ;;  %v4201_v27 = vld [vmem:[%s8438_s12 + $0x348] sm:$0xff] }
 0xad2   :  { %4241 = vmatpush.msrb.mxu3 %v4104_v12  ;;  %v4105_v12 = vld [vmem:[%s8438_s12 + $0x48] sm:$0xff]  ;;  %v3810_v47 = vadd.f32 %v3809_v4, %v3790_v1  ;;  %v4103_v6 = vld [vmem:[%s8438_s12 + $0x38] sm:$0xff]  ;;  %4293 = vmatpush.msrb.mxu1 %v4216_v52 }
 0xad3   :  { %4261 = vmatpush.msrb.mxu2 %v4136_v60  ;;  %4277 = vmatpush.msrb.mxu0 %v4176_v62  ;;  %v4137_v60 = vld [vmem:[%s8438_s12 + $0x148] sm:$0xff]  ;;  %v4179_v62 = vld [vmem:[%s8438_s12 + $0x298] sm:$0xff] }
 0xad4   :  { %4242 = vmatpush.msrb.mxu3 %v4102_v25  ;;  %v4135_v25 = vld [vmem:[%s8438_s12 + $0x138] sm:$0xff]  ;;  %4294 = vmatpush.msrb.mxu1 %v4214_v11 }
 0xad5   :  { %4262 = vmatpush.msrb.mxu2 %v4134_v21  ;;  %4278 = vmatpush.msrb.mxu0 %v4174_v7  ;;  %v4177_v21 = vld [vmem:[%s8438_s12 + $0x288] sm:$0xff]  ;;  %v4212_v7 = vld [vmem:[%s8438_s12 + $0x3a0] sm:$0xff]  ;;  %v4223_v48 = vld [vmem:[%s8438_s12 + $0x3f8] sm:$0xff] }
 0xad6   :  { %4243 = vmatpush.msrb.mxu3 %v4100_v5  ;;  %v3829_v5 = vpop.f32.mrf.mxu0  ;;  %4295 = vmatpush.msrb.mxu1 %v4212_v7  ;;  %v4219_v63 = vld [vmem:[%s8438_s12 + $0x3d8] sm:$0xff] }
 0xad7   :  { %4263 = vmatpush.msrb.mxu2 %v4132_v20  ;;  %4279 = vmatpush.msrb.mxu0 %v4172_v23  ;;  %v4101_v20 = vld [vmem:[%s8438_s12 + $0x28] sm:$0xff]  ;;  %v3830_v23 = vadd.f32 %v3829_v5, %v3810_v47  ;;  %v4207_v1 = vld [vmem:[%s8438_s12 + $0x378] sm:$0xff] }
 0xad8   :  { %4244 = vmatpush.msrb.mxu3 %v4098_v50  ;;  %v4175_v50 = vld [vmem:[%s8438_s12 + $0x278] sm:$0xff]  ;;  %4296 = vmatpush.msrb.mxu1 %v4210_v35  ;;  %v4400_v35 = vld [vmem:[%s8440_s14 + $0x40] sm:$0xff] }
 0xad9   :  { %4264 = vmatpush.msrb.mxu2 %v4130_v53  ;;  %4280 = vmatpush.msrb.mxu0 %v4170_v59  ;;  %v4099_v53 = vld [vmem:[%s8438_s12 + $0x18] sm:$0xff] }
 0xada   :  { %4245 = vmatpush.msrb.mxu3 %v4096_v33  ;;  %v4131_v59 = vld [vmem:[%s8438_s12 + $0x118] sm:$0xff]  ;;  %v4173_v33 = vld [vmem:[%s8438_s12 + $0x268] sm:$0xff] }
 0xadb   :  { %4265 = vmatpush.msrb.mxu2 %v4128_v44  ;;  %4246 = vmatmul.f32.vlgmr.msrb.gmra.mxu3 %v4092_v42  ;;  %v3849_v44 = vpop.f32.mrf.mxu1  ;;  %v4203_v17 = vld [vmem:[%s8438_s12 + $0x358] sm:$0xff] }
 0xadc   :  { %4266 = vmatmul.f32.vlgmr.msrb.gmra.mxu2 %v4093_v18  ;;  %4310 = vmatpush.msra.mxu3 %v4127_v8  ;;  %v4097_v8 = vld [vmem:[%s8438_s12 + $0x8] sm:$0xff]  ;;  %v4195_v4 = vld [vmem:[%s8438_s12 + $0x318] sm:$0xff] }
 0xadd   :  { %4330 = vmatpush.msra.mxu2 %v4159_v28  ;;  %4281 = vmatpush.msrb.mxu0 %v4168_v32  ;;  %v4129_v28 = vld [vmem:[%s8438_s12 + $0x108] sm:$0xff]  ;;  %v3850_v32 = vadd.f32 %v3849_v44, %v3830_v23  ;;  %v4406_v44 = vld [vmem:[%s8440_s14 + $0x70] sm:$0xff] }
 0xade   :  { %4311 = vmatpush.msra.mxu3 %v4125_v15 }
 0xadf   :  { %4331 = vmatpush.msra.mxu2 %v4157_v9  ;;  %4282 = vmatpush.msrb.mxu0 %v4166_v39  ;;  %v4171_v9 = vld [vmem:[%s8438_s12 + $0x258] sm:$0xff] }
 0xae0   :  { %4312 = vmatpush.msra.mxu3 %v4123_v40 }
 0xae1   :  { %4332 = vmatpush.msra.mxu2 %v4155_v41  ;;  %4283 = vmatpush.msrb.mxu0 %v4164_v61  ;;  %v4169_v41 = vld [vmem:[%s8438_s12 + $0x248] sm:$0xff] }
 0xae2   :  { %4313 = vmatpush.msra.mxu3 %v4121_v58 }
 0xae3   :  { %4333 = vmatpush.msra.mxu2 %v4153_v45  ;;  %4284 = vmatpush.msrb.mxu0 %v4162_v16  ;;  %v4167_v45 = vld [vmem:[%s8438_s12 + $0x238] sm:$0xff] }
 0xae4   :  { %4314 = vmatpush.msra.mxu3 %v4119_v10 }
 0xae5   :  { %4334 = vmatpush.msra.mxu2 %v4151_v14  ;;  %4285 = vmatpush.msrb.mxu0 %v4160_v0  ;;  %v4163_v14 = vld [vmem:[%s8438_s12 + $0x218] sm:$0xff]  ;;  %v4208_v0 = vld [vmem:[%s8438_s12 + $0x380] sm:$0xff] }
 0xae6   :  { %4315 = vmatpush.msra.mxu3 %v4117_v56  ;;  %v4206_v56 = vld [vmem:[%s8438_s12 + $0x370] sm:$0xff]  ;;  %4297 = vmatpush.msrb.mxu1 %v4208_v0  ;;  %v4396_v0 = vld [vmem:[%s8440_s14 + $0x20] sm:$0xff] }
 0xae7   :  { %4335 = vmatpush.msra.mxu2 %v4149_v19  ;;  %4350 = vmatpush.msra.mxu0 %v4191_v57  ;;  %v4161_v19 = vld [vmem:[%s8438_s12 + $0x208] sm:$0xff]  ;;  %v4204_v57 = vld [vmem:[%s8438_s12 + $0x360] sm:$0xff] }
 0xae8   :  { %4316 = vmatpush.msra.mxu3 %v4115_v22  ;;  %v3869_v15 = vpop.f32.mrf.mxu3  ;;  %4298 = vmatpush.msrb.mxu1 %v4206_v56  ;;  %v4202_v22 = vld [vmem:[%s8438_s12 + $0x350] sm:$0xff]  ;;  %v4395_v56 = vld [vmem:[%s8440_s14 + $0x18] sm:$0xff] }
 0xae9   :  { %4336 = vmatpush.msra.mxu2 %v4147_v31  ;;  %4351 = vmatpush.msra.mxu0 %v4189_v46  ;;  %v3870_v39 = vadd.f32 %v3869_v15, %v3850_v32  ;;  %v3889_v40 = vpop.f32.mrf.mxu2  ;;  %v4200_v31 = vld [vmem:[%s8438_s12 + $0x340] sm:$0xff]  ;;  %v4198_v46 = vld [vmem:[%s8438_s12 + $0x330] sm:$0xff]  ;;  %v4421_v15 = vld [vmem:[%s8440_s14 + $0xe8] sm:$0xff] }
 0xaea   :  { %4317 = vmatpush.msra.mxu3 %v4113_v55  ;;  %4299 = vmatpush.msrb.mxu1 %v4204_v57  ;;  %v4196_v55 = vld [vmem:[%s8438_s12 + $0x320] sm:$0xff]  ;;  %v4422_v32 = vld [vmem:[%s8440_s14 + $0xf0] sm:$0xff] }
 0xaeb   :  { %4337 = vmatpush.msra.mxu2 %v4145_v36  ;;  %4352 = vmatpush.msra.mxu0 %v4187_v43  ;;  %v3890_v61 = vadd.f32 %v3889_v40, %v3870_v39  ;;  %v4194_v36 = vld [vmem:[%s8438_s12 + $0x310] sm:$0xff]  ;;  %v4221_v43 = vld [vmem:[%s8438_s12 + $0x3e8] sm:$0xff]  ;;  %v4420_v39 = vld [vmem:[%s8440_s14 + $0xe0] sm:$0xff] }
 0xaec   :  { %4318 = vmatpush.msra.mxu3 %v4111_v49  ;;  %v3909_v58 = vpop.f32.mrf.mxu0  ;;  %4300 = vmatpush.msrb.mxu1 %v4202_v22  ;;  %v4217_v49 = vld [vmem:[%s8438_s12 + $0x3c8] sm:$0xff]  ;;  %v4403_v40 = vld [vmem:[%s8440_s14 + $0x58] sm:$0xff]  ;;  %v4414_v57 = vld [vmem:[%s8440_s14 + $0xb0] sm:$0xff] }
 0xaed   :  { %4338 = vmatpush.msra.mxu2 %v4143_v13  ;;  %4353 = vmatpush.msra.mxu0 %v4185_v3  ;;  %v3910_v16 = vadd.f32 %v3909_v58, %v3890_v61  ;;  %v3929_v26 = vpop.f32.mrf.mxu1  ;;  %v4215_v13 = vld [vmem:[%s8438_s12 + $0x3b8] sm:$0xff]  ;;  %v4213_v3 = vld [vmem:[%s8438_s12 + $0x3a8] sm:$0xff]  ;;  %v4402_v61 = vld [vmem:[%s8440_s14 + $0x50] sm:$0xff] }
 0xaee   :  { %4319 = vmatpush.msra.mxu3 %v4109_v30  ;;  %4301 = vmatpush.msrb.mxu1 %v4200_v31  ;;  %v4211_v30 = vld [vmem:[%s8438_s12 + $0x398] sm:$0xff]  ;;  %v4418_v58 = vld [vmem:[%s8440_s14 + $0xd0] sm:$0xff]  ;;  %v4393_v22 = vld [vmem:[%s8440_s14 + $0x8] sm:$0xff] }
 0xaef   :  { %4339 = vmatpush.msra.mxu2 %v4141_v37  ;;  %4354 = vmatpush.msra.mxu0 %v4183_v24  ;;  %v4209_v37 = vld [vmem:[%s8438_s12 + $0x388] sm:$0xff] }
 0xaf0   :  { %4320 = vmatpush.msra.mxu3 %v4107_v29  ;;  %4302 = vmatpush.msrb.mxu1 %v4198_v46  ;;  %v4205_v24 = vld [vmem:[%s8438_s12 + $0x368] sm:$0xff]  ;;  %v4199_v29 = vld [vmem:[%s8438_s12 + $0x338] sm:$0xff]  ;;  %v4392_v46 = vld [vmem:[%s8440_s14] sm:$0xff] }
 0xaf1   :  { %4340 = vmatpush.msra.mxu2 %v4139_v54  ;;  %4355 = vmatpush.msra.mxu0 %v4181_v51  ;;  %v4197_v54 = vld [vmem:[%s8438_s12 + $0x328] sm:$0xff]  ;;  %v3447_v51 = vperm.slane %v7855_v2, 3 }
 0xaf2   :  { %4321 = vmatpush.msra.mxu3 %v4105_v12  ;;  %4303 = vmatpush.msrb.mxu1 %v4196_v55  ;;  %v4193_v12 = vld [vmem:[%s8438_s12 + $0x308] sm:$0xff]  ;;  %v4412_v55 = vld [vmem:[%s8440_s14 + $0xa0] sm:$0xff] }
 0xaf3   :  { %4341 = vmatpush.msra.mxu2 %v4137_v60  ;;  %4356 = vmatpush.msra.mxu0 %v4179_v62  ;;  %v4413_v31 = vld [vmem:[%s8440_s14 + $0xa8] sm:$0xff] }
 0xaf4   :  { %4322 = vmatpush.msra.mxu3 %v4103_v6  ;;  %4304 = vmatpush.msrb.mxu1 %v4194_v36  ;;  %v4411_v36 = vld [vmem:[%s8440_s14 + $0x98] sm:$0xff] }
 0xaf5   :  { %4342 = vmatpush.msra.mxu2 %v4135_v25  ;;  %4357 = vmatpush.msra.mxu0 %v4177_v21 }
 0xaf6   :  { %4323 = vmatpush.msra.mxu3 %v4101_v20  ;;  %4305 = vmatpush.msrb.mxu1 %v4192_v38  ;;  %v4410_v38 = vld [vmem:[%s8440_s14 + $0x90] sm:$0xff] }
 0xaf7   :  { %4343 = vmatpush.msra.mxu2 %v4133_v34  ;;  %4358 = vmatpush.msra.mxu0 %v4175_v50 }
 0xaf8   :  { %4324 = vmatpush.msra.mxu3 %v4099_v53  ;;  %4370 = vmatpush.msra.mxu1 %v4223_v48  ;;  %v4409_v48 = vld [vmem:[%s8440_s14 + $0x88] sm:$0xff] }
 0xaf9   :  { %4344 = vmatpush.msra.mxu2 %v4131_v59  ;;  %4359 = vmatpush.msra.mxu0 %v4173_v33  ;;  %v4407_v33 = vld [vmem:[%s8440_s14 + $0x78] sm:$0xff] }
 0xafa   :  { %4325 = vmatpush.msra.mxu3 %v4097_v8  ;;  %4371 = vmatpush.msra.mxu1 %v4221_v43  ;;  %v4423_v8 = vld [vmem:[%s8440_s14 + $0xf8] sm:$0xff]  ;;  %v4408_v43 = vld [vmem:[%s8440_s14 + $0x80] sm:$0xff] }
 0xafb   :  { %4345 = vmatpush.msra.mxu2 %v4129_v28  ;;  %4326 = vmatmul.f32.vlgmr.msra.gmra.mxu3 %v4092_v42  ;;  %v4165_v42 = vld [vmem:[%s8438_s12 + $0x228] sm:$0xff] }
 0xafc   :  { %4346 = vmatmul.f32.vlgmr.msra.gmra.mxu2 %v4093_v18  ;;  %4360 = vmatpush.msra.mxu0 %v4171_v9  ;;  %v3930_v18 = vadd.f32 %v3929_v26, %v3910_v16  ;;  %v4405_v28 = vld [vmem:[%s8440_s14 + $0x68] sm:$0xff]  ;;  %v4404_v9 = vld [vmem:[%s8440_s14 + $0x60] sm:$0xff] }
 0xafd   :  { %4372 = vmatpush.msra.mxu1 %v4219_v63  ;;  %4428 = vmatpush.msrb.mxu3 %v4407_v33  ;;  %v4417_v16 = vld [vmem:[%s8440_s14 + $0xc8] sm:$0xff]  ;;  %v4416_v26 = vld [vmem:[%s8440_s14 + $0xc0] sm:$0xff] }
 0xafe   :  { %4361 = vmatpush.msra.mxu0 %v4169_v41  ;;  %v4094_v10 = vmax.f32 %v3930_v18, 0.0  ;;  %4448 = vmatpush.msrb.mxu2 %v4423_v8  ;;  %v4419_v41 = vld [vmem:[%s8440_s14 + $0xd8] sm:$0xff]  ;;  %v4224_v63 = vld [vmem:[%s8441_s13] sm:$0x3] }
 0xaff   :  { %4373 = vmatpush.msra.mxu1 %v4217_v49  ;;  %4429 = vmatpush.msrb.mxu3 %v4406_v44  ;;  %v4415_v18 = vld [vmem:[%s8440_s14 + $0xb8] sm:$0xff]  ;;  %v4226_v49 = vperm.slane %v4224_v63, 0 }
 0xb00   :  { %4362 = vmatpush.msra.mxu0 %v4167_v45  ;;  %4449 = vmatpush.msrb.mxu2 %v4422_v32  ;;  %v4401_v45 = vld [vmem:[%s8440_s14 + $0x48] sm:$0xff] }
 0xb01   :  { %4286 = vmatmul.f32.vlgmr.msrb.gmra.mxu0 %v4094_v10  ;;  %4374 = vmatpush.msra.mxu1 %v4215_v13 }
 0xb02   :  { %4363 = vmatpush.msra.mxu0 %v4165_v42  ;;  %4430 = vmatpush.msrb.mxu3 %v4405_v28  ;;  %v4399_v42 = vld [vmem:[%s8440_s14 + $0x38] sm:$0xff] }
 0xb03   :  { %4375 = vmatpush.msra.mxu1 %v4213_v3  ;;  %4450 = vmatpush.msrb.mxu2 %v4421_v15 }
 0xb04   :  { %4364 = vmatpush.msra.mxu0 %v4163_v14  ;;  %4431 = vmatpush.msrb.mxu3 %v4404_v9  ;;  %v4397_v14 = vld [vmem:[%s8440_s14 + $0x28] sm:$0xff] }
 0xb05   :  { %4376 = vmatpush.msra.mxu1 %v4211_v30  ;;  %4451 = vmatpush.msrb.mxu2 %v4420_v39 }
 0xb06   :  { %4365 = vmatpush.msra.mxu0 %v4161_v19  ;;  %4432 = vmatpush.msrb.mxu3 %v4403_v40  ;;  %v4394_v19 = vld [vmem:[%s8440_s14 + $0x10] sm:$0xff] }
 0xb07   :  { %4377 = vmatpush.msra.mxu1 %v4209_v37  ;;  %4452 = vmatpush.msrb.mxu2 %v4419_v41 }
 0xb08   :  { %4433 = vmatpush.msrb.mxu3 %v4402_v61 }
 0xb09   :  { %4366 = vmatmul.f32.vlgmr.msra.gmra.mxu0 %v4094_v10  ;;  %4378 = vmatpush.msra.mxu1 %v4207_v1  ;;  %v4398_v10 = vld [vmem:[%s8440_s14 + $0x30] sm:$0xff] }
 0xb0a   :  { %4453 = vmatpush.msrb.mxu2 %v4418_v58  ;;  %4434 = vmatpush.msrb.mxu3 %v4401_v45 }
 0xb0b   :  { %4379 = vmatpush.msra.mxu1 %v4205_v24  ;;  %v3949_v52 = vpop.f32.mrf.mxu3  ;;  %v4227_v24 = vperm.slane %v4224_v63, 1 }
 0xb0c   :  { %v3950_v60 = vadd.f32 %v3949_v52, %v3447_v51  ;;  %v3969_v47 = vpop.f32.mrf.mxu2  ;;  %4454 = vmatpush.msrb.mxu2 %v4417_v16  ;;  %4435 = vmatpush.msrb.mxu3 %v4400_v35 }
 0xb0d   :  { %4380 = vmatpush.msra.mxu1 %v4203_v17 }
 0xb0e   :  { %v3970_v62 = vadd.f32 %v3969_v47, %v3950_v60  ;;  %v3989_v11 = vpop.f32.mrf.mxu0  ;;  %4455 = vmatpush.msrb.mxu2 %v4416_v26  ;;  %4436 = vmatpush.msrb.mxu3 %v4399_v42 }
 0xb0f   :  { %4381 = vmatpush.msra.mxu1 %v4201_v27  ;;  %v4009_v25 = vpop.f32.mrf.mxu1 }
 0xb10   :  { %v3990_v6 = vadd.f32 %v3989_v11, %v3970_v62  ;;  %4456 = vmatpush.msrb.mxu2 %v4415_v18  ;;  %4437 = vmatpush.msrb.mxu3 %v4398_v10 }
 0xb11   :  { %4382 = vmatpush.msra.mxu1 %v4199_v29 }
 0xb12   :  { %v4010_v2 = vadd.f32 %v4009_v25, %v3990_v6  ;;  %4438 = vmatpush.msrb.mxu3 %v4397_v14  ;;  %4457 = vmatpush.msrb.mxu2 %v4414_v57  ;;  %v4789_v25 = vld [vmem:[%s8439_s15] ss:$0 sm:$0xff] }
 0xb13   :  { %4383 = vmatpush.msra.mxu1 %v4197_v54 }
 0xb14   :  { %4439 = vmatpush.msrb.mxu3 %v4396_v0  ;;  %4458 = vmatpush.msrb.mxu2 %v4413_v31 }
 0xb15   :  { %4384 = vmatpush.msra.mxu1 %v4195_v4 }
 0xb16   :  { %4440 = vmatpush.msrb.mxu3 %v4395_v56  ;;  %4459 = vmatpush.msrb.mxu2 %v4412_v55 }
 0xb17   :  { %4385 = vmatpush.msra.mxu1 %v4193_v12 }
 0xb18   :  { %4441 = vmatpush.msrb.mxu3 %v4394_v19  ;;  %4460 = vmatpush.msrb.mxu2 %v4411_v36 }
 0xb1a   :  { %4442 = vmatpush.msrb.mxu3 %v4393_v22  ;;  %4461 = vmatpush.msrb.mxu2 %v4410_v38 }
 0xb1c   :  { %4443 = vmatpush.msrb.mxu3 %v4392_v46  ;;  %4462 = vmatpush.msrb.mxu2 %v4409_v48 }
 0xb1e   :  { %4463 = vmatpush.msrb.mxu2 %v4408_v43 }
 0xb3c   :  { %v4029_v21 = vpop.f32.mrf.mxu3 }
 0xb3d   :  { %v4030_v7 = vadd.f32 %v4029_v21, %v4010_v2  ;;  %v4049_v5 = vpop.f32.mrf.mxu2 }
 0xb3f   :  { %v4050_v20 = vadd.f32 %v4049_v5, %v4030_v7 }
 0xb40   :  { %v4069_v34 = vpop.f32.mrf.mxu0 }
 0xb41   :  { %v4070_v23 = vadd.f32 %v4069_v34, %v4050_v20  ;;  %v4089_v50 = vpop.f32.mrf.mxu1 }
 0xb43   :  { %v4090_v53 = vadd.f32 %v4089_v50, %v4070_v23 }
 0xb45   :  { %v4095_v59 = vmax.f32 %v4090_v53, 0.0 }
 0xb47   :  { %4306 = vmatmul.f32.vlgmr.msrb.gmra.mxu1 %v4095_v59 }
 0xb4f   :  { %4386 = vmatmul.f32.vlgmr.msra.gmra.mxu1 %v4095_v59 }
 0xb5e   :  { %v4247_v13 = vpop.f32.mrf.mxu3 }
 0xb5f   :  { %v4248_v3 = vadd.f32 %v4247_v13, %v4226_v49  ;;  %v4267_v37 = vpop.f32.mrf.mxu2 }
 0xb61   :  { %v4268_v1 = vadd.f32 %v4267_v37, %v4248_v3 }
 0xb7e   :  { %v4287_v30 = vpop.f32.mrf.mxu0  ;;  %v4327_v17 = vpop.f32.mrf.mxu3 }
 0xb7f   :  { %v4288_v27 = vadd.f32 %v4287_v30, %v4268_v1  ;;  %v4328_v54 = vadd.f32 %v4327_v17, %v4227_v24  ;;  %v4347_v4 = vpop.f32.mrf.mxu2 }
 0xb81   :  { %v4348_v60 = vadd.f32 %v4347_v4, %v4328_v54 }
 0xb86   :  { %v4367_v12 = vpop.f32.mrf.mxu0 }
 0xb87   :  { %v4368_v47 = vadd.f32 %v4367_v12, %v4348_v60 }
 0xbc4   :  { %v4307_v29 = vpop.f32.mrf.mxu1 }
 0xbc5   :  { %v4308_v51 = vadd.f32 %v4307_v29, %v4288_v27 }
 0xbc7   :  { %v4390_v52 = vmax.f32 %v4308_v51, 0.0 }
 0xbc9   :  { %4444 = vmatmul.f32.vlgmr.msrb.gmra.mxu3 %v4390_v52 }
 0xbcc   :  { %v4387_v62 = vpop.f32.mrf.mxu1 }
 0xbcd   :  { %v4388_v11 = vadd.f32 %v4387_v62, %v4368_v47 }
 0xbcf   :  { %v4391_v6 = vmax.f32 %v4388_v11, 0.0 }
 0xbd1   :  { %4464 = vmatmul.f32.vlgmr.msrb.gmra.mxu2 %v4391_v6 }
 0xc4c   :  { %v4445_v2 = vpop.f32.mrf.mxu3 }
 0xc4d   :  { %v4446_v21 = vadd.f32 %v4789_v25, %v4445_v2 }
 0xc54   :  { %v4465_v7 = vpop.f32.mrf.mxu2 }
 0xc55   :  { %v4466_v5 = vadd.f32 %v4465_v7, %v4446_v21 }
 0xc57   :  { %4468 = vmax.xlane.f32.xlu0 %v4466_v5 }
 0xcca   :  { %v4469_v20 = vpop.xlane.xlu0 %4468 }
 0xccb   :  { %v4470_v34 = vsub.f32 %v4466_v5, %v4469_v20 }
 0xccd   :  { %v4471_v23 = vmul.f32 1.442695, %v4470_v34 }
 0xccf   :  { %4790 = vpow2.f32 %v4471_v23 }
 0xcd5   :  { %v4791_v50 = vpop.eup %4790 }
 0xcd6   :  { %4473 = vadd.xlane.f32.xlu2 %v4791_v50 }
 0xd49   :  { %v4474_v53 = vpop.xlane.xlu2 %4473 }
 0xd4a   :  { %4792 = vlog2.f32 %v4474_v53 }
 0xd50   :  { %v4793_v59 = vpop.eup %4792 }
 0xd51   :  { %v4476_v33 = vmul.f32 0.6931472, %v4793_v59 }
 0xd53   :  { %v4477_v44 = vsub.f32 %v4470_v34, %v4476_v33 }
 0xd55   :  { %4478 = vst [vmem:[%s8442_s16] sm:$0xff] %v4477_v44 }

</bundles_post_ra>
